<compile_context>
chip_gen: v7x
topology: tpu7x:2x2x1
jax: 0.10.0
libtpu: 0.0.40
codegen_flags: <defaults>
</compile_context>

<pallas_src>
import functools
import numpy as np

import jax
import jax.numpy as jnp
from jax.experimental import pallas as pl
from jax.experimental.pallas import tpu as pltpu


# ------------------------------------------------------------------
# Host-side constant builders (bilinear taps, tiny per-axis operators)
# ------------------------------------------------------------------

def _interp_matrix(out_size, in_size):
    """1-D bilinear (align_corners=False, PyTorch semantics) matrix [out, in]."""
    a = np.zeros((out_size, in_size), np.float32)
    for o in range(out_size):
        src = (o + 0.5) * in_size / out_size - 0.5
        src = max(src, 0.0)
        i0 = min(int(np.floor(src)), in_size - 1)
        i1 = min(i0 + 1, in_size - 1)
        w1 = src - i0
        a[o, i0] += 1.0 - w1
        a[o, i1] += w1
    return a


def _up_taps(out_size, in_size):
    """Static per-output-row (lo, hi, weight_on_hi) taps for the H axis."""
    lo, hi, wt = [], [], []
    for o in range(out_size):
        src = (o + 0.5) * in_size / out_size - 0.5
        src = max(src, 0.0)
        i0 = min(int(np.floor(src)), in_size - 1)
        i1 = min(i0 + 1, in_size - 1)
        lo.append(i0)
        hi.append(i1)
        wt.append(float(src - i0))
    return tuple(lo), tuple(hi), tuple(wt)


# ------------------------------------------------------------------
# In-kernel helpers
# ------------------------------------------------------------------

def _tap_masks(H, W, M):
    """Boundary masks for the 9 taps of a 3x3/pad-1 conv on the flattened
    per-image (C, H*W) layout, built in-kernel from iota (no mask DMA).
    Center tap -> None (no mask multiply)."""
    pos = jax.lax.broadcasted_iota(jnp.int32, (1, M), 1)
    if W & (W - 1) == 0:
        wpos = jnp.bitwise_and(pos, W - 1)
    else:
        wpos = pos % W  # TODO(synk): only pow-2 widths exercised in this demo.
    vh = {-1: pos >= W, 0: None, 1: pos < (H - 1) * W}
    vw = {-1: wpos >= 1, 0: None, 1: wpos <= W - 2}
    masks = {}
    for dh in (-1, 0, 1):
        for dw in (-1, 0, 1):
            conds = [c for c in (vh[dh], vw[dw]) if c is not None]
            if not conds:
                masks[(dh, dw)] = None
            elif len(conds) == 1:
                masks[(dh, dw)] = jnp.where(conds[0], 1.0, 0.0)
            else:
                masks[(dh, dw)] = jnp.where(
                    jnp.logical_and(conds[0], conds[1]), 1.0, 0.0)
    return masks


def _conv3x3(x, w_ref, masks, W, M):
    """3x3 / stride-1 / pad-1 conv on the flattened (Cin, M) layout.

    Accumulates three K=3*Cin bf16 matmuls (one per kernel row dh) instead of
    materializing the full (9*Cin, M) slab.  w_ref: (3, Cout, 3*Cin) bf16 with
    BN scale already folded in.  Returns (Cout, M) f32.
    """
    acc = None
    for di, dh in enumerate((-1, 0, 1)):
        xh = x if dh == 0 else pltpu.roll(x, shift=(-dh * W) % M, axis=1)
        taps = []
        for dw in (-1, 0, 1):
            t = xh if dw == 0 else pltpu.roll(xh, shift=(-dw) % M, axis=1)
            msk = masks[(dh, dw)]
            if msk is not None:
                t = t * msk
            taps.append(t)
        slab = jnp.concatenate(taps, axis=0).astype(jnp.bfloat16)   # (3Cin, M)
        part = jnp.dot(w_ref[di, :, :], slab,
                       preferred_element_type=jnp.float32)          # (Cout, M)
        acc = part if acc is None else acc + part
    return acc


def _basic_block(x, w1_ref, b1_ref, w2_ref, b2_ref, masks, W, M):
    """BasicBlock (expansion=1, no downsample), BN folded: 
       relu( conv2(relu(conv1(x)+b1)) + b2 + x )."""
    t = jnp.maximum(_conv3x3(x, w1_ref, masks, W, M) + b1_ref[...], 0.0)
    y = _conv3x3(t, w2_ref, masks, W, M) + b2_ref[...]
    return jnp.maximum(y + x, 0.0)


# ------------------------------------------------------------------
# Fused Pallas kernel (whole HighResolutionModule forward, one image / step)
# ------------------------------------------------------------------

def _hrm_kernel(*refs, C0, H0, W0, C1, H1, W1, nblk0, nblk1,
                up_lo, up_hi, up_wt):
    M0, M1 = H0 * W0, H1 * W1

    pos = 2
    x0_ref, x1_ref = refs[0], refs[1]
    br0 = refs[pos:pos + 4 * nblk0]; pos += 4 * nblk0
    br1 = refs[pos:pos + 4 * nblk1]; pos += 4 * nblk1
    fuw_ref, fub_ref, fdw_ref, fdb_ref, awt_ref, selt_ref = refs[pos:pos + 6]
    pos += 6
    o0_ref, o1_ref = refs[pos], refs[pos + 1]

    masks0 = _tap_masks(H0, W0, M0)
    masks1 = _tap_masks(H1, W1, M1)

    # ---- residual branches (all intermediates stay in VMEM) ----
    x0 = x0_ref[0, :, :]
    x1 = x1_ref[0, :, :]
    for bi in range(nblk0):
        w1r, b1r, w2r, b2r = br0[4 * bi:4 * bi + 4]
        x0 = _basic_block(x0, w1r, b1r, w2r, b2r, masks0, W0, M0)
    for bi in range(nblk1):
        w1r, b1r, w2r, b2r = br1[4 * bi:4 * bi + 4]
        x1 = _basic_block(x1, w1r, b1r, w2r, b2r, masks1, W1, M1)

    # ---- fuse output 0: relu(x0 + bilinear_up(bn(conv1x1(x1)))) ----
    z = jnp.dot(fuw_ref[...], x1.astype(jnp.bfloat16),
                preferred_element_type=jnp.float32) + fub_ref[...]   # (C0, M1)
    awt = awt_ref[...]                                               # (W1, W0) bf16
    zrows = [z[:, a * W1:(a + 1) * W1] for a in range(H1)]           # coarse rows
    up_blocks = []
    for o in range(H0):
        lo, hi, wt = up_lo[o], up_hi[o], up_wt[o]
        if wt == 0.0:
            r = zrows[lo]
        else:
            r = (1.0 - wt) * zrows[lo] + wt * zrows[hi]              # H-axis lerp
        up_blocks.append(jnp.dot(r.astype(jnp.bfloat16), awt,
                                 preferred_element_type=jnp.float32))  # W-axis interp
    up = jnp.concatenate(up_blocks, axis=1)                          # (C0, M0)
    o0_ref[0, :, :] = jnp.maximum(x0 + up, 0.0)

    # ---- fuse output 1: relu(x1 + bn(conv3x3/stride-2(x0))) ----
    # stride-2 conv = stride-1 conv + even-(h,w) selection; per-channel BN bias
    # commutes with the selection.  Selection = per-row lane slice + tiny
    # (W0, W1) 0/1 matmul (no O(M0*M1) operator).
    d = _conv3x3(x0, fdw_ref, masks0, W0, M0)                        # (C1, M0)
    selt = selt_ref[...]                                             # (W0, W1) bf16
    drows = []
    for a in range(H1):
        blk = d[:, (2 * a) * W0:(2 * a) * W0 + W0]                   # even fine row
        drows.append(jnp.dot(blk.astype(jnp.bfloat16), selt,
                             preferred_element_type=jnp.float32))    # even cols
    dsel = jnp.concatenate(drows, axis=1) + fdb_ref[...]             # (C1, M1)
    o1_ref[0, :, :] = jnp.maximum(x1 + dsel, 0.0)


# ------------------------------------------------------------------
# Wrapper
# ------------------------------------------------------------------

def _img_spec(c, m):
    return pl.BlockSpec((1, c, m), lambda n: (n, 0, 0))


def _const_spec(shape):
    nd = len(shape)
    return pl.BlockSpec(tuple(shape), lambda n: (0,) * nd)


def hrm_forward_nchw(x0, x1, params):
    """HighResolutionModule forward (2 branches, SUM fuse, multi_scale_output).

    NCHW in/out; only free contiguous reshapes at the boundary.  One
    pallas_call gridded over the batch.
    """
    N, C0, H0, W0 = x0.shape
    N1, C1, H1, W1 = x1.shape
    assert N1 == N and H0 == 2 * H1 and W0 == 2 * W1
    M0, M1 = H0 * W0, H1 * W1

    x0r = x0.reshape(N, C0, M0)          # free (contiguous) reshape, no transpose
    x1r = x1.reshape(N, C1, M1)

    # Tiny per-axis operators (exact 0.25/0.75/1.0 entries; bf16-representable).
    awt = jnp.asarray(np.ascontiguousarray(_interp_matrix(W0, W1).T)
                      ).astype(jnp.bfloat16)                 # (W1, W0)
    sel = np.zeros((W0, W1), np.float32)
    sel[2 * np.arange(W1), np.arange(W1)] = 1.0
    selt = jnp.asarray(sel).astype(jnp.bfloat16)             # (W0, W1)
    up_lo, up_hi, up_wt = _up_taps(H0, H1)

    args = [x0r, x1r]
    nblk = []
    for br in params['branch']:
        nblk.append(len(br))
        for blk in br:
            args += [blk['conv1']['wk'], blk['conv1']['b'],
                     blk['conv2']['wk'], blk['conv2']['b']]
    args += [params['fuse_up']['wk'], params['fuse_up']['b'],
             params['fuse_down']['wk'], params['fuse_down']['b'],
             awt, selt]

    in_specs = ([_img_spec(C0, M0), _img_spec(C1, M1)]
                + [_const_spec(a.shape) for a in args[2:]])
    out_specs = (_img_spec(C0, M0), _img_spec(C1, M1))
    out_shape = (jax.ShapeDtypeStruct((N, C0, M0), jnp.float32),
                 jax.ShapeDtypeStruct((N, C1, M1), jnp.float32))

    # VMEM limit derived from actual buffer sizes (+ headroom), not hard-coded.
    blk_bytes = 4 * (C0 * M0 + C1 * M1) * 2                  # per-image in+out blocks
    par_bytes = sum(int(np.prod(a.shape)) * a.dtype.itemsize for a in args[2:])
    vmem_limit = int(min(2 * blk_bytes + 2 * par_bytes + (8 << 20), 100 << 20))

    # Advisory cost estimate.
    flops = 0
    for (cc, mm, nb) in ((C0, M0, nblk[0]), (C1, M1, nblk[1])):
        flops += nb * 2 * (2 * cc * (9 * cc) * mm)
    flops += 2 * C0 * C1 * M1 + 2 * C0 * W1 * W0 * H0        # 1x1 conv + separable up
    flops += 2 * C1 * (9 * C0) * M0 + 2 * C1 * W0 * W1 * H1  # s2 conv + selection
    flops *= N
    bytes_accessed = (sum(int(np.prod(a.shape)) * a.dtype.itemsize for a in args)
                      + 4 * N * (C0 * M0 + C1 * M1))

    kernel = functools.partial(
        _hrm_kernel, C0=C0, H0=H0, W0=W0, C1=C1, H1=H1, W1=W1,
        nblk0=nblk[0], nblk1=nblk[1],
        up_lo=up_lo, up_hi=up_hi, up_wt=up_wt)

    out0, out1 = pl.pallas_call(
        kernel,
        out_shape=out_shape,
        grid=(N,),
        in_specs=in_specs,
        out_specs=out_specs,
        compiler_params=pltpu.CompilerParams(
            dimension_semantics=("parallel",),
            vmem_limit_bytes=vmem_limit),
        cost_estimate=pl.CostEstimate(flops=int(flops), transcendentals=0,
                                      bytes_accessed=int(bytes_accessed)),
    )(*args)

    return [out0.reshape(N, C0, H0, W0), out1.reshape(N, C1, H1, W1)]


# ------------------------------------------------------------------
# Parameter construction (deterministic synthetic; BN folded into weights)
# ------------------------------------------------------------------

def _fold_conv_bn(key, cin, cout, ksize):
    k1, k2, k3, k4, k5 = jax.random.split(key, 5)
    w = 0.1 * jax.random.normal(k1, (cout, ksize * ksize * cin), jnp.float32)
    gamma = 1.0 + 0.1 * jax.random.normal(k2, (cout,), jnp.float32)
    beta = 0.1 * jax.random.normal(k3, (cout,), jnp.float32)
    mean = 0.1 * jax.random.normal(k4, (cout,), jnp.float32)
    var = jnp.abs(jax.random.normal(k5, (cout,), jnp.float32)) + 0.5
    scale = gamma / jnp.sqrt(var + 1e-5)
    bias = (beta - mean * scale).reshape(cout, 1)
    wf_bf16 = (w * scale[:, None]).astype(jnp.bfloat16)      # BN scale folded, bf16
    w_ref = wf_bf16.astype(jnp.float32)                      # identical weights for ref
    if ksize == 3:
        # (Cout, 9*Cin) with (kh, kw, cin) ordering -> (3, Cout, 3*Cin) per kernel row.
        wk = wf_bf16.reshape(cout, 3, 3 * cin).transpose(1, 0, 2)
    else:
        wk = wf_bf16                                          # (Cout, Cin)
    return {'wk': wk, 'b': bias, 'w_ref': w_ref}


def build_params(key, num_blocks, channels):
    c0, c1 = channels
    params = {'branch': []}
    for ci, nb in zip(channels, num_blocks):
        blocks = []
        for _ in range(nb):
            key, ka, kb = jax.random.split(key, 3)
            blocks.append({'conv1': _fold_conv_bn(ka, ci, ci, 3),
                           'conv2': _fold_conv_bn(kb, ci, ci, 3)})
        params['branch'].append(blocks)
    key, ku, kd = jax.random.split(key, 3)
    params['fuse_up'] = _fold_conv_bn(ku, c1, c0, 1)     # 1x1: C1 -> C0 (output 0)
    params['fuse_down'] = _fold_conv_bn(kd, c0, c1, 3)   # 3x3 s2: C0 -> C1 (output 1)
    return params


# ------------------------------------------------------------------
# Pure-JAX reference (PyTorch semantics, f32 HIGHEST) for the correctness check
# ------------------------------------------------------------------

def _ref_conv(x, conv, ksize, stride, relu=False):
    w, b = conv['w_ref'], conv['b']
    cout, cin = w.shape[0], x.shape[1]
    w4 = w.reshape(cout, ksize, ksize, cin).transpose(0, 3, 1, 2)  # OIHW
    pad = (ksize - 1) // 2
    y = jax.lax.conv_general_dilated(
        x, w4, (stride, stride), ((pad, pad), (pad, pad)),
        dimension_numbers=('NCHW', 'OIHW', 'NCHW'),
        precision=jax.lax.Precision.HIGHEST)
    y = y + b.reshape(1, cout, 1, 1)
    return jnp.maximum(y, 0.0) if relu else y


def _ref_forward(x0, x1, params):
    def block(x, blk):
        t = _ref_conv(x, blk['conv1'], 3, 1, relu=True)
        y = _ref_conv(t, blk['conv2'], 3, 1, relu=False)
        return jnp.maximum(y + x, 0.0)

    for blk in params['branch'][0]:
        x0 = block(x0, blk)
    for blk in params['branch'][1]:
        x1 = block(x1, blk)

    _, _, H0, W0 = x0.shape
    _, _, H1, W1 = x1.shape
    z = _ref_conv(x1, params['fuse_up'], 1, 1, relu=False)
    ah = jnp.asarray(_interp_matrix(H0, H1))
    aw = jnp.asarray(_interp_matrix(W0, W1))
    up = jnp.einsum('Hh,Ww,nchw->ncHW', ah, aw, z,
                    precision=jax.lax.Precision.HIGHEST)
    out0 = jnp.maximum(x0 + up, 0.0)
    d = _ref_conv(x0, params['fuse_down'], 3, 2, relu=False)
    out1 = jnp.maximum(x1 + d, 0.0)
    return [out0, out1]


# ------------------------------------------------------------------
# Demo
# ------------------------------------------------------------------

if __name__ == "__main__":
    # num_branches=2, BasicBlock (expansion=1), num_blocks=[2,2],
    # num_inchannels == num_channels = [8,16], fuse_method='SUM',
    # multi_scale_output=True
    NUM_BLOCKS = [2, 2]
    NUM_CHANNELS = [8, 16]

    key = jax.random.PRNGKey(0)
    key, kx0, kx1, kp = jax.random.split(key, 4)

    # PyTorch-style NCHW inputs: branch 0 high-res, branch 1 half-res.
    x0 = jax.random.normal(kx0, (2, NUM_CHANNELS[0], 16, 16), jnp.float32)
    x1 = jax.random.normal(kx1, (2, NUM_CHANNELS[1], 8, 8), jnp.float32)

    params = build_params(kp, NUM_BLOCKS, NUM_CHANNELS)

    outs = jax.jit(hrm_forward_nchw)(x0, x1, params)
    outs = [jax.block_until_ready(o) for o in outs]

    assert outs[0].shape == (2, NUM_CHANNELS[0], 16, 16), outs[0].shape
    assert outs[1].shape == (2, NUM_CHANNELS[1], 8, 8), outs[1].shape
    assert all(bool(jnp.all(jnp.isfinite(o))) for o in outs)

    # Reference check.  Kernel uses bf16 MXU operands (per perf review) vs the
    # f32/HIGHEST reference, so the tolerance reflects bf16 operand rounding
    # (same folded weights are used on both sides).
    refs_out = _ref_forward(x0, x1, params)
    for o, r in zip(outs, refs_out):
        max_err = float(jnp.max(jnp.abs(o - r)))
        assert bool(jnp.allclose(o, r, atol=5e-2, rtol=5e-2)), max_err

    print("KERNEL_OK")
</pallas_src>

<mosaic_0001>
module attributes {stable_mosaic.version = 11 : i64} {
  func.func @_hrm_kernel(%arg0: i32, %arg1: memref<1x8x256xf32, #tpu.memory_space<vmem>>, %arg2: memref<1x16x64xf32, #tpu.memory_space<vmem>>, %arg3: memref<3x8x24xbf16, #tpu.memory_space<vmem>>, %arg4: memref<8x1xf32, #tpu.memory_space<vmem>>, %arg5: memref<3x8x24xbf16, #tpu.memory_space<vmem>>, %arg6: memref<8x1xf32, #tpu.memory_space<vmem>>, %arg7: memref<3x8x24xbf16, #tpu.memory_space<vmem>>, %arg8: memref<8x1xf32, #tpu.memory_space<vmem>>, %arg9: memref<3x8x24xbf16, #tpu.memory_space<vmem>>, %arg10: memref<8x1xf32, #tpu.memory_space<vmem>>, %arg11: memref<3x16x48xbf16, #tpu.memory_space<vmem>>, %arg12: memref<16x1xf32, #tpu.memory_space<vmem>>, %arg13: memref<3x16x48xbf16, #tpu.memory_space<vmem>>, %arg14: memref<16x1xf32, #tpu.memory_space<vmem>>, %arg15: memref<3x16x48xbf16, #tpu.memory_space<vmem>>, %arg16: memref<16x1xf32, #tpu.memory_space<vmem>>, %arg17: memref<3x16x48xbf16, #tpu.memory_space<vmem>>, %arg18: memref<16x1xf32, #tpu.memory_space<vmem>>, %arg19: memref<8x16xbf16, #tpu.memory_space<vmem>>, %arg20: memref<8x1xf32, #tpu.memory_space<vmem>>, %arg21: memref<3x16x24xbf16, #tpu.memory_space<vmem>>, %arg22: memref<16x1xf32, #tpu.memory_space<vmem>>, %arg23: memref<8x16xbf16, #tpu.memory_space<vmem>>, %arg24: memref<16x8xbf16, #tpu.memory_space<vmem>>, %arg25: memref<1x8x256xf32, #tpu.memory_space<vmem>>, %arg26: memref<1x16x64xf32, #tpu.memory_space<vmem>>) attributes {dimension_semantics = [#tpu.dimension_semantics<parallel>], iteration_bounds = array<i64: 2>, scalar_prefetch = 0 : i64, scratch_operands = 0 : i64, tpu.core_type = #tpu.core_type<tc>, window_params = [{transform_indices = @transform_0, window_bounds = array<i64: 1, 8, 256>}, {transform_indices = @transform_1, window_bounds = array<i64: 1, 16, 64>}, {pipeline_mode = #tpu.pipeline_mode<synchronous>, transform_indices = @transform_2, window_bounds = array<i64: 3, 8, 24>}, {pipeline_mode = #tpu.pipeline_mode<synchronous>, transform_indices = @transform_3, window_bounds = array<i64: 8, 1>}, {pipeline_mode = #tpu.pipeline_mode<synchronous>, transform_indices = @transform_4, window_bounds = array<i64: 3, 8, 24>}, {pipeline_mode = #tpu.pipeline_mode<synchronous>, transform_indices = @transform_5, window_bounds = array<i64: 8, 1>}, {pipeline_mode = #tpu.pipeline_mode<synchronous>, transform_indices = @transform_6, window_bounds = array<i64: 3, 8, 24>}, {pipeline_mode = #tpu.pipeline_mode<synchronous>, transform_indices = @transform_7, window_bounds = array<i64: 8, 1>}, {pipeline_mode = #tpu.pipeline_mode<synchronous>, transform_indices = @transform_8, window_bounds = array<i64: 3, 8, 24>}, {pipeline_mode = #tpu.pipeline_mode<synchronous>, transform_indices = @transform_9, window_bounds = array<i64: 8, 1>}, {pipeline_mode = #tpu.pipeline_mode<synchronous>, transform_indices = @transform_10, window_bounds = array<i64: 3, 16, 48>}, {pipeline_mode = #tpu.pipeline_mode<synchronous>, transform_indices = @transform_11, window_bounds = array<i64: 16, 1>}, {pipeline_mode = #tpu.pipeline_mode<synchronous>, transform_indices = @transform_12, window_bounds = array<i64: 3, 16, 48>}, {pipeline_mode = #tpu.pipeline_mode<synchronous>, transform_indices = @transform_13, window_bounds = array<i64: 16, 1>}, {pipeline_mode = #tpu.pipeline_mode<synchronous>, transform_indices = @transform_14, window_bounds = array<i64: 3, 16, 48>}, {pipeline_mode = #tpu.pipeline_mode<synchronous>, transform_indices = @transform_15, window_bounds = array<i64: 16, 1>}, {pipeline_mode = #tpu.pipeline_mode<synchronous>, transform_indices = @transform_16, window_bounds = array<i64: 3, 16, 48>}, {pipeline_mode = #tpu.pipeline_mode<synchronous>, transform_indices = @transform_17, window_bounds = array<i64: 16, 1>}, {pipeline_mode = #tpu.pipeline_mode<synchronous>, transform_indices = @transform_18, window_bounds = array<i64: 8, 16>}, {pipeline_mode = #tpu.pipeline_mode<synchronous>, transform_indices = @transform_19, window_bounds = array<i64: 8, 1>}, {pipeline_mode = #tpu.pipeline_mode<synchronous>, transform_indices = @transform_20, window_bounds = array<i64: 3, 16, 24>}, {pipeline_mode = #tpu.pipeline_mode<synchronous>, transform_indices = @transform_21, window_bounds = array<i64: 16, 1>}, {pipeline_mode = #tpu.pipeline_mode<synchronous>, transform_indices = @transform_22, window_bounds = array<i64: 8, 16>}, {pipeline_mode = #tpu.pipeline_mode<synchronous>, transform_indices = @transform_23, window_bounds = array<i64: 16, 8>}, {transform_indices = @transform_24, window_bounds = array<i64: 1, 8, 256>}, {transform_indices = @transform_25, window_bounds = array<i64: 1, 16, 64>}]} {
    %0 = tpu.iota {dimensions = array<i32: 1>} : vector<1x256xi32>
    %c15_i32 = arith.constant 15 : i32
    %1 = vector.broadcast %c15_i32 : i32 to vector<1x256xi32>
    %2 = arith.andi %0, %1 : vector<1x256xi32>
    %c16_i32 = arith.constant 16 : i32
    %3 = vector.broadcast %c16_i32 : i32 to vector<1x256xi32>
    %4 = arith.cmpi sge, %0, %3 : vector<1x256xi32>
    %c240_i32 = arith.constant 240 : i32
    %5 = vector.broadcast %c240_i32 : i32 to vector<1x256xi32>
    %6 = arith.cmpi slt, %0, %5 : vector<1x256xi32>
    %c1_i32 = arith.constant 1 : i32
    %7 = vector.broadcast %c1_i32 : i32 to vector<1x256xi32>
    %8 = arith.cmpi sge, %2, %7 : vector<1x256xi32>
    %c14_i32 = arith.constant 14 : i32
    %9 = vector.broadcast %c14_i32 : i32 to vector<1x256xi32>
    %10 = arith.cmpi sle, %2, %9 : vector<1x256xi32>
    %11 = arith.andi %4, %8 : vector<1x256xi1>
    %cst = arith.constant 1.000000e+00 : f32
    %cst_0 = arith.constant 0.000000e+00 : f32
    %12 = vector.broadcast %cst : f32 to vector<1x256xf32>
    %13 = vector.broadcast %cst_0 : f32 to vector<1x256xf32>
    %14 = arith.select %11, %12, %13 : vector<1x256xi1>, vector<1x256xf32>
    %cst_1 = arith.constant 1.000000e+00 : f32
    %cst_2 = arith.constant 0.000000e+00 : f32
    %15 = vector.broadcast %cst_1 : f32 to vector<1x256xf32>
    %16 = vector.broadcast %cst_2 : f32 to vector<1x256xf32>
    %17 = arith.select %4, %15, %16 : vector<1x256xi1>, vector<1x256xf32>
    %18 = arith.andi %4, %10 : vector<1x256xi1>
    %cst_3 = arith.constant 1.000000e+00 : f32
    %cst_4 = arith.constant 0.000000e+00 : f32
    %19 = vector.broadcast %cst_3 : f32 to vector<1x256xf32>
    %20 = vector.broadcast %cst_4 : f32 to vector<1x256xf32>
    %21 = arith.select %18, %19, %20 : vector<1x256xi1>, vector<1x256xf32>
    %cst_5 = arith.constant 1.000000e+00 : f32
    %cst_6 = arith.constant 0.000000e+00 : f32
    %22 = vector.broadcast %cst_5 : f32 to vector<1x256xf32>
    %23 = vector.broadcast %cst_6 : f32 to vector<1x256xf32>
    %24 = arith.select %8, %22, %23 : vector<1x256xi1>, vector<1x256xf32>
    %cst_7 = arith.constant 1.000000e+00 : f32
    %cst_8 = arith.constant 0.000000e+00 : f32
    %25 = vector.broadcast %cst_7 : f32 to vector<1x256xf32>
    %26 = vector.broadcast %cst_8 : f32 to vector<1x256xf32>
    %27 = arith.select %10, %25, %26 : vector<1x256xi1>, vector<1x256xf32>
    %28 = arith.andi %6, %8 : vector<1x256xi1>
    %cst_9 = arith.constant 1.000000e+00 : f32
    %cst_10 = arith.constant 0.000000e+00 : f32
    %29 = vector.broadcast %cst_9 : f32 to vector<1x256xf32>
    %30 = vector.broadcast %cst_10 : f32 to vector<1x256xf32>
    %31 = arith.select %28, %29, %30 : vector<1x256xi1>, vector<1x256xf32>
    %cst_11 = arith.constant 1.000000e+00 : f32
    %cst_12 = arith.constant 0.000000e+00 : f32
    %32 = vector.broadcast %cst_11 : f32 to vector<1x256xf32>
    %33 = vector.broadcast %cst_12 : f32 to vector<1x256xf32>
    %34 = arith.select %6, %32, %33 : vector<1x256xi1>, vector<1x256xf32>
    %35 = arith.andi %6, %10 : vector<1x256xi1>
    %cst_13 = arith.constant 1.000000e+00 : f32
    %cst_14 = arith.constant 0.000000e+00 : f32
    %36 = vector.broadcast %cst_13 : f32 to vector<1x256xf32>
    %37 = vector.broadcast %cst_14 : f32 to vector<1x256xf32>
    %38 = arith.select %35, %36, %37 : vector<1x256xi1>, vector<1x256xf32>
    %39 = tpu.iota {dimensions = array<i32: 1>} : vector<1x64xi32>
    %c7_i32 = arith.constant 7 : i32
    %40 = vector.broadcast %c7_i32 : i32 to vector<1x64xi32>
    %41 = arith.andi %39, %40 : vector<1x64xi32>
    %c8_i32 = arith.constant 8 : i32
    %42 = vector.broadcast %c8_i32 : i32 to vector<1x64xi32>
    %43 = arith.cmpi sge, %39, %42 : vector<1x64xi32>
    %c56_i32 = arith.constant 56 : i32
    %44 = vector.broadcast %c56_i32 : i32 to vector<1x64xi32>
    %45 = arith.cmpi slt, %39, %44 : vector<1x64xi32>
    %c1_i32_15 = arith.constant 1 : i32
    %46 = vector.broadcast %c1_i32_15 : i32 to vector<1x64xi32>
    %47 = arith.cmpi sge, %41, %46 : vector<1x64xi32>
    %c6_i32 = arith.constant 6 : i32
    %48 = vector.broadcast %c6_i32 : i32 to vector<1x64xi32>
    %49 = arith.cmpi sle, %41, %48 : vector<1x64xi32>
    %50 = arith.andi %43, %47 : vector<1x64xi1>
    %cst_16 = arith.constant 1.000000e+00 : f32
    %cst_17 = arith.constant 0.000000e+00 : f32
    %51 = vector.broadcast %cst_16 : f32 to vector<1x64xf32>
    %52 = vector.broadcast %cst_17 : f32 to vector<1x64xf32>
    %53 = arith.select %50, %51, %52 : vector<1x64xi1>, vector<1x64xf32>
    %cst_18 = arith.constant 1.000000e+00 : f32
    %cst_19 = arith.constant 0.000000e+00 : f32
    %54 = vector.broadcast %cst_18 : f32 to vector<1x64xf32>
    %55 = vector.broadcast %cst_19 : f32 to vector<1x64xf32>
    %56 = arith.select %43, %54, %55 : vector<1x64xi1>, vector<1x64xf32>
    %57 = arith.andi %43, %49 : vector<1x64xi1>
    %cst_20 = arith.constant 1.000000e+00 : f32
    %cst_21 = arith.constant 0.000000e+00 : f32
    %58 = vector.broadcast %cst_20 : f32 to vector<1x64xf32>
    %59 = vector.broadcast %cst_21 : f32 to vector<1x64xf32>
    %60 = arith.select %57, %58, %59 : vector<1x64xi1>, vector<1x64xf32>
    %cst_22 = arith.constant 1.000000e+00 : f32
    %cst_23 = arith.constant 0.000000e+00 : f32
    %61 = vector.broadcast %cst_22 : f32 to vector<1x64xf32>
    %62 = vector.broadcast %cst_23 : f32 to vector<1x64xf32>
    %63 = arith.select %47, %61, %62 : vector<1x64xi1>, vector<1x64xf32>
    %cst_24 = arith.constant 1.000000e+00 : f32
    %cst_25 = arith.constant 0.000000e+00 : f32
    %64 = vector.broadcast %cst_24 : f32 to vector<1x64xf32>
    %65 = vector.broadcast %cst_25 : f32 to vector<1x64xf32>
    %66 = arith.select %49, %64, %65 : vector<1x64xi1>, vector<1x64xf32>
    %67 = arith.andi %45, %47 : vector<1x64xi1>
    %cst_26 = arith.constant 1.000000e+00 : f32
    %cst_27 = arith.constant 0.000000e+00 : f32
    %68 = vector.broadcast %cst_26 : f32 to vector<1x64xf32>
    %69 = vector.broadcast %cst_27 : f32 to vector<1x64xf32>
    %70 = arith.select %67, %68, %69 : vector<1x64xi1>, vector<1x64xf32>
    %cst_28 = arith.constant 1.000000e+00 : f32
    %cst_29 = arith.constant 0.000000e+00 : f32
    %71 = vector.broadcast %cst_28 : f32 to vector<1x64xf32>
    %72 = vector.broadcast %cst_29 : f32 to vector<1x64xf32>
    %73 = arith.select %45, %71, %72 : vector<1x64xi1>, vector<1x64xf32>
    %74 = arith.andi %45, %49 : vector<1x64xi1>
    %cst_30 = arith.constant 1.000000e+00 : f32
    %cst_31 = arith.constant 0.000000e+00 : f32
    %75 = vector.broadcast %cst_30 : f32 to vector<1x64xf32>
    %76 = vector.broadcast %cst_31 : f32 to vector<1x64xf32>
    %77 = arith.select %74, %75, %76 : vector<1x64xi1>, vector<1x64xf32>
    %c0 = arith.constant 0 : index
    %c0_32 = arith.constant 0 : index
    %c0_33 = arith.constant 0 : index
    %78 = vector.load %arg1[%c0, %c0_32, %c0_33] : memref<1x8x256xf32, #tpu.memory_space<vmem>>, vector<1x8x256xf32>
    %79 = vector.shape_cast %78 : vector<1x8x256xf32> to vector<8x256xf32>
    %c0_34 = arith.constant 0 : index
    %c0_35 = arith.constant 0 : index
    %c0_36 = arith.constant 0 : index
    %80 = vector.load %arg2[%c0_34, %c0_35, %c0_36] : memref<1x16x64xf32, #tpu.memory_space<vmem>>, vector<1x16x64xf32>
    %81 = vector.shape_cast %80 : vector<1x16x64xf32> to vector<16x64xf32>
    %c16_i32_37 = arith.constant 16 : i32
    %82 = tpu.dynamic_rotate %79 by %c16_i32_37 dim 1 : vector<8x256xf32>, i32 -> vector<8x256xf32>
    %c1_i32_38 = arith.constant 1 : i32
    %83 = tpu.dynamic_rotate %82 by %c1_i32_38 dim 1 : vector<8x256xf32>, i32 -> vector<8x256xf32>
    %84 = vector.broadcast %14 : vector<1x256xf32> to vector<8x256xf32>
    %85 = arith.mulf %83, %84 : vector<8x256xf32>
    %86 = vector.broadcast %17 : vector<1x256xf32> to vector<8x256xf32>
    %87 = arith.mulf %82, %86 : vector<8x256xf32>
    %c255_i32 = arith.constant 255 : i32
    %88 = tpu.dynamic_rotate %82 by %c255_i32 dim 1 : vector<8x256xf32>, i32 -> vector<8x256xf32>
    %89 = vector.broadcast %21 : vector<1x256xf32> to vector<8x256xf32>
    %90 = arith.mulf %88, %89 : vector<8x256xf32>
    %91 = tpu.concatenate %85, %87, %90 in 0 : vector<8x256xf32>, vector<8x256xf32>, vector<8x256xf32> -> vector<24x256xf32>
    %92 = arith.truncf %91 : vector<24x256xf32> to vector<24x256xbf16>
    %c0_39 = arith.constant 0 : index
    %c0_40 = arith.constant 0 : index
    %c0_41 = arith.constant 0 : index
    %93 = vector.load %arg3[%c0_39, %c0_40, %c0_41] : memref<3x8x24xbf16, #tpu.memory_space<vmem>>, vector<1x8x24xbf16>
    %94 = vector.shape_cast %93 : vector<1x8x24xbf16> to vector<8x24xbf16>
    %cst_42 = arith.constant dense<0.000000e+00> : vector<8x256xf32>
    %95 = tpu.matmul %94, %92, %cst_42 {dimension_numbers = #tpu.dot_dimension_numbers<[1], [0], [0], [1], [0, 0, 1, 1], [], []>} : vector<8x24xbf16>, vector<24x256xbf16>, vector<8x256xf32> -> vector<8x256xf32>
    %c1_i32_43 = arith.constant 1 : i32
    %96 = tpu.dynamic_rotate %79 by %c1_i32_43 dim 1 : vector<8x256xf32>, i32 -> vector<8x256xf32>
    %97 = vector.broadcast %24 : vector<1x256xf32> to vector<8x256xf32>
    %98 = arith.mulf %96, %97 : vector<8x256xf32>
    %c255_i32_44 = arith.constant 255 : i32
    %99 = tpu.dynamic_rotate %79 by %c255_i32_44 dim 1 : vector<8x256xf32>, i32 -> vector<8x256xf32>
    %100 = vector.broadcast %27 : vector<1x256xf32> to vector<8x256xf32>
    %101 = arith.mulf %99, %100 : vector<8x256xf32>
    %102 = tpu.concatenate %98, %79, %101 in 0 : vector<8x256xf32>, vector<8x256xf32>, vector<8x256xf32> -> vector<24x256xf32>
    %103 = arith.truncf %102 : vector<24x256xf32> to vector<24x256xbf16>
    %c1 = arith.constant 1 : index
    %c0_45 = arith.constant 0 : index
    %c0_46 = arith.constant 0 : index
    %104 = vector.load %arg3[%c1, %c0_45, %c0_46] : memref<3x8x24xbf16, #tpu.memory_space<vmem>>, vector<1x8x24xbf16>
    %105 = vector.shape_cast %104 : vector<1x8x24xbf16> to vector<8x24xbf16>
    %cst_47 = arith.constant dense<0.000000e+00> : vector<8x256xf32>
    %106 = tpu.matmul %105, %103, %cst_47 {dimension_numbers = #tpu.dot_dimension_numbers<[1], [0], [0], [1], [0, 0, 1, 1], [], []>} : vector<8x24xbf16>, vector<24x256xbf16>, vector<8x256xf32> -> vector<8x256xf32>
    %107 = arith.addf %95, %106 : vector<8x256xf32>
    %c240_i32_48 = arith.constant 240 : i32
    %108 = tpu.dynamic_rotate %79 by %c240_i32_48 dim 1 : vector<8x256xf32>, i32 -> vector<8x256xf32>
    %c1_i32_49 = arith.constant 1 : i32
    %109 = tpu.dynamic_rotate %108 by %c1_i32_49 dim 1 : vector<8x256xf32>, i32 -> vector<8x256xf32>
    %110 = vector.broadcast %31 : vector<1x256xf32> to vector<8x256xf32>
    %111 = arith.mulf %109, %110 : vector<8x256xf32>
    %112 = vector.broadcast %34 : vector<1x256xf32> to vector<8x256xf32>
    %113 = arith.mulf %108, %112 : vector<8x256xf32>
    %c255_i32_50 = arith.constant 255 : i32
    %114 = tpu.dynamic_rotate %108 by %c255_i32_50 dim 1 : vector<8x256xf32>, i32 -> vector<8x256xf32>
    %115 = vector.broadcast %38 : vector<1x256xf32> to vector<8x256xf32>
    %116 = arith.mulf %114, %115 : vector<8x256xf32>
    %117 = tpu.concatenate %111, %113, %116 in 0 : vector<8x256xf32>, vector<8x256xf32>, vector<8x256xf32> -> vector<24x256xf32>
    %118 = arith.truncf %117 : vector<24x256xf32> to vector<24x256xbf16>
    %c2 = arith.constant 2 : index
    %c0_51 = arith.constant 0 : index
    %c0_52 = arith.constant 0 : index
    %119 = vector.load %arg3[%c2, %c0_51, %c0_52] : memref<3x8x24xbf16, #tpu.memory_space<vmem>>, vector<1x8x24xbf16>
    %120 = vector.shape_cast %119 : vector<1x8x24xbf16> to vector<8x24xbf16>
    %cst_53 = arith.constant dense<0.000000e+00> : vector<8x256xf32>
    %121 = tpu.matmul %120, %118, %cst_53 {dimension_numbers = #tpu.dot_dimension_numbers<[1], [0], [0], [1], [0, 0, 1, 1], [], []>} : vector<8x24xbf16>, vector<24x256xbf16>, vector<8x256xf32> -> vector<8x256xf32>
    %122 = arith.addf %107, %121 : vector<8x256xf32>
    %c0_54 = arith.constant 0 : index
    %c0_55 = arith.constant 0 : index
    %123 = vector.load %arg4[%c0_54, %c0_55] : memref<8x1xf32, #tpu.memory_space<vmem>>, vector<8x1xf32>
    %124 = vector.broadcast %123 : vector<8x1xf32> to vector<8x256xf32>
    %125 = arith.addf %122, %124 : vector<8x256xf32>
    %cst_56 = arith.constant 0.000000e+00 : f32
    %126 = vector.broadcast %cst_56 : f32 to vector<8x256xf32>
    %127 = arith.maximumf %125, %126 : vector<8x256xf32>
    %c16_i32_57 = arith.constant 16 : i32
    %128 = tpu.dynamic_rotate %127 by %c16_i32_57 dim 1 : vector<8x256xf32>, i32 -> vector<8x256xf32>
    %c1_i32_58 = arith.constant 1 : i32
    %129 = tpu.dynamic_rotate %128 by %c1_i32_58 dim 1 : vector<8x256xf32>, i32 -> vector<8x256xf32>
    %130 = vector.broadcast %14 : vector<1x256xf32> to vector<8x256xf32>
    %131 = arith.mulf %129, %130 : vector<8x256xf32>
    %132 = vector.broadcast %17 : vector<1x256xf32> to vector<8x256xf32>
    %133 = arith.mulf %128, %132 : vector<8x256xf32>
    %c255_i32_59 = arith.constant 255 : i32
    %134 = tpu.dynamic_rotate %128 by %c255_i32_59 dim 1 : vector<8x256xf32>, i32 -> vector<8x256xf32>
    %135 = vector.broadcast %21 : vector<1x256xf32> to vector<8x256xf32>
    %136 = arith.mulf %134, %135 : vector<8x256xf32>
    %137 = tpu.concatenate %131, %133, %136 in 0 : vector<8x256xf32>, vector<8x256xf32>, vector<8x256xf32> -> vector<24x256xf32>
    %138 = arith.truncf %137 : vector<24x256xf32> to vector<24x256xbf16>
    %c0_60 = arith.constant 0 : index
    %c0_61 = arith.constant 0 : index
    %c0_62 = arith.constant 0 : index
    %139 = vector.load %arg5[%c0_60, %c0_61, %c0_62] : memref<3x8x24xbf16, #tpu.memory_space<vmem>>, vector<1x8x24xbf16>
    %140 = vector.shape_cast %139 : vector<1x8x24xbf16> to vector<8x24xbf16>
    %cst_63 = arith.constant dense<0.000000e+00> : vector<8x256xf32>
    %141 = tpu.matmul %140, %138, %cst_63 {dimension_numbers = #tpu.dot_dimension_numbers<[1], [0], [0], [1], [0, 0, 1, 1], [], []>} : vector<8x24xbf16>, vector<24x256xbf16>, vector<8x256xf32> -> vector<8x256xf32>
    %c1_i32_64 = arith.constant 1 : i32
    %142 = tpu.dynamic_rotate %127 by %c1_i32_64 dim 1 : vector<8x256xf32>, i32 -> vector<8x256xf32>
    %143 = vector.broadcast %24 : vector<1x256xf32> to vector<8x256xf32>
    %144 = arith.mulf %142, %143 : vector<8x256xf32>
    %c255_i32_65 = arith.constant 255 : i32
    %145 = tpu.dynamic_rotate %127 by %c255_i32_65 dim 1 : vector<8x256xf32>, i32 -> vector<8x256xf32>
    %146 = vector.broadcast %27 : vector<1x256xf32> to vector<8x256xf32>
    %147 = arith.mulf %145, %146 : vector<8x256xf32>
    %148 = tpu.concatenate %144, %127, %147 in 0 : vector<8x256xf32>, vector<8x256xf32>, vector<8x256xf32> -> vector<24x256xf32>
    %149 = arith.truncf %148 : vector<24x256xf32> to vector<24x256xbf16>
    %c1_66 = arith.constant 1 : index
    %c0_67 = arith.constant 0 : index
    %c0_68 = arith.constant 0 : index
    %150 = vector.load %arg5[%c1_66, %c0_67, %c0_68] : memref<3x8x24xbf16, #tpu.memory_space<vmem>>, vector<1x8x24xbf16>
    %151 = vector.shape_cast %150 : vector<1x8x24xbf16> to vector<8x24xbf16>
    %cst_69 = arith.constant dense<0.000000e+00> : vector<8x256xf32>
    %152 = tpu.matmul %151, %149, %cst_69 {dimension_numbers = #tpu.dot_dimension_numbers<[1], [0], [0], [1], [0, 0, 1, 1], [], []>} : vector<8x24xbf16>, vector<24x256xbf16>, vector<8x256xf32> -> vector<8x256xf32>
    %153 = arith.addf %141, %152 : vector<8x256xf32>
    %c240_i32_70 = arith.constant 240 : i32
    %154 = tpu.dynamic_rotate %127 by %c240_i32_70 dim 1 : vector<8x256xf32>, i32 -> vector<8x256xf32>
    %c1_i32_71 = arith.constant 1 : i32
    %155 = tpu.dynamic_rotate %154 by %c1_i32_71 dim 1 : vector<8x256xf32>, i32 -> vector<8x256xf32>
    %156 = vector.broadcast %31 : vector<1x256xf32> to vector<8x256xf32>
    %157 = arith.mulf %155, %156 : vector<8x256xf32>
    %158 = vector.broadcast %34 : vector<1x256xf32> to vector<8x256xf32>
    %159 = arith.mulf %154, %158 : vector<8x256xf32>
    %c255_i32_72 = arith.constant 255 : i32
    %160 = tpu.dynamic_rotate %154 by %c255_i32_72 dim 1 : vector<8x256xf32>, i32 -> vector<8x256xf32>
    %161 = vector.broadcast %38 : vector<1x256xf32> to vector<8x256xf32>
    %162 = arith.mulf %160, %161 : vector<8x256xf32>
    %163 = tpu.concatenate %157, %159, %162 in 0 : vector<8x256xf32>, vector<8x256xf32>, vector<8x256xf32> -> vector<24x256xf32>
    %164 = arith.truncf %163 : vector<24x256xf32> to vector<24x256xbf16>
    %c2_73 = arith.constant 2 : index
    %c0_74 = arith.constant 0 : index
    %c0_75 = arith.constant 0 : index
    %165 = vector.load %arg5[%c2_73, %c0_74, %c0_75] : memref<3x8x24xbf16, #tpu.memory_space<vmem>>, vector<1x8x24xbf16>
    %166 = vector.shape_cast %165 : vector<1x8x24xbf16> to vector<8x24xbf16>
    %cst_76 = arith.constant dense<0.000000e+00> : vector<8x256xf32>
    %167 = tpu.matmul %166, %164, %cst_76 {dimension_numbers = #tpu.dot_dimension_numbers<[1], [0], [0], [1], [0, 0, 1, 1], [], []>} : vector<8x24xbf16>, vector<24x256xbf16>, vector<8x256xf32> -> vector<8x256xf32>
    %168 = arith.addf %153, %167 : vector<8x256xf32>
    %c0_77 = arith.constant 0 : index
    %c0_78 = arith.constant 0 : index
    %169 = vector.load %arg6[%c0_77, %c0_78] : memref<8x1xf32, #tpu.memory_space<vmem>>, vector<8x1xf32>
    %170 = vector.broadcast %169 : vector<8x1xf32> to vector<8x256xf32>
    %171 = arith.addf %168, %170 : vector<8x256xf32>
    %172 = arith.addf %171, %79 : vector<8x256xf32>
    %cst_79 = arith.constant 0.000000e+00 : f32
    %173 = vector.broadcast %cst_79 : f32 to vector<8x256xf32>
    %174 = arith.maximumf %172, %173 : vector<8x256xf32>
    %c16_i32_80 = arith.constant 16 : i32
    %175 = tpu.dynamic_rotate %174 by %c16_i32_80 dim 1 : vector<8x256xf32>, i32 -> vector<8x256xf32>
    %c1_i32_81 = arith.constant 1 : i32
    %176 = tpu.dynamic_rotate %175 by %c1_i32_81 dim 1 : vector<8x256xf32>, i32 -> vector<8x256xf32>
    %177 = vector.broadcast %14 : vector<1x256xf32> to vector<8x256xf32>
    %178 = arith.mulf %176, %177 : vector<8x256xf32>
    %179 = vector.broadcast %17 : vector<1x256xf32> to vector<8x256xf32>
    %180 = arith.mulf %175, %179 : vector<8x256xf32>
    %c255_i32_82 = arith.constant 255 : i32
    %181 = tpu.dynamic_rotate %175 by %c255_i32_82 dim 1 : vector<8x256xf32>, i32 -> vector<8x256xf32>
    %182 = vector.broadcast %21 : vector<1x256xf32> to vector<8x256xf32>
    %183 = arith.mulf %181, %182 : vector<8x256xf32>
    %184 = tpu.concatenate %178, %180, %183 in 0 : vector<8x256xf32>, vector<8x256xf32>, vector<8x256xf32> -> vector<24x256xf32>
    %185 = arith.truncf %184 : vector<24x256xf32> to vector<24x256xbf16>
    %c0_83 = arith.constant 0 : index
    %c0_84 = arith.constant 0 : index
    %c0_85 = arith.constant 0 : index
    %186 = vector.load %arg7[%c0_83, %c0_84, %c0_85] : memref<3x8x24xbf16, #tpu.memory_space<vmem>>, vector<1x8x24xbf16>
    %187 = vector.shape_cast %186 : vector<1x8x24xbf16> to vector<8x24xbf16>
    %cst_86 = arith.constant dense<0.000000e+00> : vector<8x256xf32>
    %188 = tpu.matmul %187, %185, %cst_86 {dimension_numbers = #tpu.dot_dimension_numbers<[1], [0], [0], [1], [0, 0, 1, 1], [], []>} : vector<8x24xbf16>, vector<24x256xbf16>, vector<8x256xf32> -> vector<8x256xf32>
    %c1_i32_87 = arith.constant 1 : i32
    %189 = tpu.dynamic_rotate %174 by %c1_i32_87 dim 1 : vector<8x256xf32>, i32 -> vector<8x256xf32>
    %190 = vector.broadcast %24 : vector<1x256xf32> to vector<8x256xf32>
    %191 = arith.mulf %189, %190 : vector<8x256xf32>
    %c255_i32_88 = arith.constant 255 : i32
    %192 = tpu.dynamic_rotate %174 by %c255_i32_88 dim 1 : vector<8x256xf32>, i32 -> vector<8x256xf32>
    %193 = vector.broadcast %27 : vector<1x256xf32> to vector<8x256xf32>
    %194 = arith.mulf %192, %193 : vector<8x256xf32>
    %195 = tpu.concatenate %191, %174, %194 in 0 : vector<8x256xf32>, vector<8x256xf32>, vector<8x256xf32> -> vector<24x256xf32>
    %196 = arith.truncf %195 : vector<24x256xf32> to vector<24x256xbf16>
    %c1_89 = arith.constant 1 : index
    %c0_90 = arith.constant 0 : index
    %c0_91 = arith.constant 0 : index
    %197 = vector.load %arg7[%c1_89, %c0_90, %c0_91] : memref<3x8x24xbf16, #tpu.memory_space<vmem>>, vector<1x8x24xbf16>
    %198 = vector.shape_cast %197 : vector<1x8x24xbf16> to vector<8x24xbf16>
    %cst_92 = arith.constant dense<0.000000e+00> : vector<8x256xf32>
    %199 = tpu.matmul %198, %196, %cst_92 {dimension_numbers = #tpu.dot_dimension_numbers<[1], [0], [0], [1], [0, 0, 1, 1], [], []>} : vector<8x24xbf16>, vector<24x256xbf16>, vector<8x256xf32> -> vector<8x256xf32>
    %200 = arith.addf %188, %199 : vector<8x256xf32>
    %c240_i32_93 = arith.constant 240 : i32
    %201 = tpu.dynamic_rotate %174 by %c240_i32_93 dim 1 : vector<8x256xf32>, i32 -> vector<8x256xf32>
    %c1_i32_94 = arith.constant 1 : i32
    %202 = tpu.dynamic_rotate %201 by %c1_i32_94 dim 1 : vector<8x256xf32>, i32 -> vector<8x256xf32>
    %203 = vector.broadcast %31 : vector<1x256xf32> to vector<8x256xf32>
    %204 = arith.mulf %202, %203 : vector<8x256xf32>
    %205 = vector.broadcast %34 : vector<1x256xf32> to vector<8x256xf32>
    %206 = arith.mulf %201, %205 : vector<8x256xf32>
    %c255_i32_95 = arith.constant 255 : i32
    %207 = tpu.dynamic_rotate %201 by %c255_i32_95 dim 1 : vector<8x256xf32>, i32 -> vector<8x256xf32>
    %208 = vector.broadcast %38 : vector<1x256xf32> to vector<8x256xf32>
    %209 = arith.mulf %207, %208 : vector<8x256xf32>
    %210 = tpu.concatenate %204, %206, %209 in 0 : vector<8x256xf32>, vector<8x256xf32>, vector<8x256xf32> -> vector<24x256xf32>
    %211 = arith.truncf %210 : vector<24x256xf32> to vector<24x256xbf16>
    %c2_96 = arith.constant 2 : index
    %c0_97 = arith.constant 0 : index
    %c0_98 = arith.constant 0 : index
    %212 = vector.load %arg7[%c2_96, %c0_97, %c0_98] : memref<3x8x24xbf16, #tpu.memory_space<vmem>>, vector<1x8x24xbf16>
    %213 = vector.shape_cast %212 : vector<1x8x24xbf16> to vector<8x24xbf16>
    %cst_99 = arith.constant dense<0.000000e+00> : vector<8x256xf32>
    %214 = tpu.matmul %213, %211, %cst_99 {dimension_numbers = #tpu.dot_dimension_numbers<[1], [0], [0], [1], [0, 0, 1, 1], [], []>} : vector<8x24xbf16>, vector<24x256xbf16>, vector<8x256xf32> -> vector<8x256xf32>
    %215 = arith.addf %200, %214 : vector<8x256xf32>
    %c0_100 = arith.constant 0 : index
    %c0_101 = arith.constant 0 : index
    %216 = vector.load %arg8[%c0_100, %c0_101] : memref<8x1xf32, #tpu.memory_space<vmem>>, vector<8x1xf32>
    %217 = vector.broadcast %216 : vector<8x1xf32> to vector<8x256xf32>
    %218 = arith.addf %215, %217 : vector<8x256xf32>
    %cst_102 = arith.constant 0.000000e+00 : f32
    %219 = vector.broadcast %cst_102 : f32 to vector<8x256xf32>
    %220 = arith.maximumf %218, %219 : vector<8x256xf32>
    %c16_i32_103 = arith.constant 16 : i32
    %221 = tpu.dynamic_rotate %220 by %c16_i32_103 dim 1 : vector<8x256xf32>, i32 -> vector<8x256xf32>
    %c1_i32_104 = arith.constant 1 : i32
    %222 = tpu.dynamic_rotate %221 by %c1_i32_104 dim 1 : vector<8x256xf32>, i32 -> vector<8x256xf32>
    %223 = vector.broadcast %14 : vector<1x256xf32> to vector<8x256xf32>
    %224 = arith.mulf %222, %223 : vector<8x256xf32>
    %225 = vector.broadcast %17 : vector<1x256xf32> to vector<8x256xf32>
    %226 = arith.mulf %221, %225 : vector<8x256xf32>
    %c255_i32_105 = arith.constant 255 : i32
    %227 = tpu.dynamic_rotate %221 by %c255_i32_105 dim 1 : vector<8x256xf32>, i32 -> vector<8x256xf32>
    %228 = vector.broadcast %21 : vector<1x256xf32> to vector<8x256xf32>
    %229 = arith.mulf %227, %228 : vector<8x256xf32>
    %230 = tpu.concatenate %224, %226, %229 in 0 : vector<8x256xf32>, vector<8x256xf32>, vector<8x256xf32> -> vector<24x256xf32>
    %231 = arith.truncf %230 : vector<24x256xf32> to vector<24x256xbf16>
    %c0_106 = arith.constant 0 : index
    %c0_107 = arith.constant 0 : index
    %c0_108 = arith.constant 0 : index
    %232 = vector.load %arg9[%c0_106, %c0_107, %c0_108] : memref<3x8x24xbf16, #tpu.memory_space<vmem>>, vector<1x8x24xbf16>
    %233 = vector.shape_cast %232 : vector<1x8x24xbf16> to vector<8x24xbf16>
    %cst_109 = arith.constant dense<0.000000e+00> : vector<8x256xf32>
    %234 = tpu.matmul %233, %231, %cst_109 {dimension_numbers = #tpu.dot_dimension_numbers<[1], [0], [0], [1], [0, 0, 1, 1], [], []>} : vector<8x24xbf16>, vector<24x256xbf16>, vector<8x256xf32> -> vector<8x256xf32>
    %c1_i32_110 = arith.constant 1 : i32
    %235 = tpu.dynamic_rotate %220 by %c1_i32_110 dim 1 : vector<8x256xf32>, i32 -> vector<8x256xf32>
    %236 = vector.broadcast %24 : vector<1x256xf32> to vector<8x256xf32>
    %237 = arith.mulf %235, %236 : vector<8x256xf32>
    %c255_i32_111 = arith.constant 255 : i32
    %238 = tpu.dynamic_rotate %220 by %c255_i32_111 dim 1 : vector<8x256xf32>, i32 -> vector<8x256xf32>
    %239 = vector.broadcast %27 : vector<1x256xf32> to vector<8x256xf32>
    %240 = arith.mulf %238, %239 : vector<8x256xf32>
    %241 = tpu.concatenate %237, %220, %240 in 0 : vector<8x256xf32>, vector<8x256xf32>, vector<8x256xf32> -> vector<24x256xf32>
    %242 = arith.truncf %241 : vector<24x256xf32> to vector<24x256xbf16>
    %c1_112 = arith.constant 1 : index
    %c0_113 = arith.constant 0 : index
    %c0_114 = arith.constant 0 : index
    %243 = vector.load %arg9[%c1_112, %c0_113, %c0_114] : memref<3x8x24xbf16, #tpu.memory_space<vmem>>, vector<1x8x24xbf16>
    %244 = vector.shape_cast %243 : vector<1x8x24xbf16> to vector<8x24xbf16>
    %cst_115 = arith.constant dense<0.000000e+00> : vector<8x256xf32>
    %245 = tpu.matmul %244, %242, %cst_115 {dimension_numbers = #tpu.dot_dimension_numbers<[1], [0], [0], [1], [0, 0, 1, 1], [], []>} : vector<8x24xbf16>, vector<24x256xbf16>, vector<8x256xf32> -> vector<8x256xf32>
    %246 = arith.addf %234, %245 : vector<8x256xf32>
    %c240_i32_116 = arith.constant 240 : i32
    %247 = tpu.dynamic_rotate %220 by %c240_i32_116 dim 1 : vector<8x256xf32>, i32 -> vector<8x256xf32>
    %c1_i32_117 = arith.constant 1 : i32
    %248 = tpu.dynamic_rotate %247 by %c1_i32_117 dim 1 : vector<8x256xf32>, i32 -> vector<8x256xf32>
    %249 = vector.broadcast %31 : vector<1x256xf32> to vector<8x256xf32>
    %250 = arith.mulf %248, %249 : vector<8x256xf32>
    %251 = vector.broadcast %34 : vector<1x256xf32> to vector<8x256xf32>
    %252 = arith.mulf %247, %251 : vector<8x256xf32>
    %c255_i32_118 = arith.constant 255 : i32
    %253 = tpu.dynamic_rotate %247 by %c255_i32_118 dim 1 : vector<8x256xf32>, i32 -> vector<8x256xf32>
    %254 = vector.broadcast %38 : vector<1x256xf32> to vector<8x256xf32>
    %255 = arith.mulf %253, %254 : vector<8x256xf32>
    %256 = tpu.concatenate %250, %252, %255 in 0 : vector<8x256xf32>, vector<8x256xf32>, vector<8x256xf32> -> vector<24x256xf32>
    %257 = arith.truncf %256 : vector<24x256xf32> to vector<24x256xbf16>
    %c2_119 = arith.constant 2 : index
    %c0_120 = arith.constant 0 : index
    %c0_121 = arith.constant 0 : index
    %258 = vector.load %arg9[%c2_119, %c0_120, %c0_121] : memref<3x8x24xbf16, #tpu.memory_space<vmem>>, vector<1x8x24xbf16>
    %259 = vector.shape_cast %258 : vector<1x8x24xbf16> to vector<8x24xbf16>
    %cst_122 = arith.constant dense<0.000000e+00> : vector<8x256xf32>
    %260 = tpu.matmul %259, %257, %cst_122 {dimension_numbers = #tpu.dot_dimension_numbers<[1], [0], [0], [1], [0, 0, 1, 1], [], []>} : vector<8x24xbf16>, vector<24x256xbf16>, vector<8x256xf32> -> vector<8x256xf32>
    %261 = arith.addf %246, %260 : vector<8x256xf32>
    %c0_123 = arith.constant 0 : index
    %c0_124 = arith.constant 0 : index
    %262 = vector.load %arg10[%c0_123, %c0_124] : memref<8x1xf32, #tpu.memory_space<vmem>>, vector<8x1xf32>
    %263 = vector.broadcast %262 : vector<8x1xf32> to vector<8x256xf32>
    %264 = arith.addf %261, %263 : vector<8x256xf32>
    %265 = arith.addf %264, %174 : vector<8x256xf32>
    %cst_125 = arith.constant 0.000000e+00 : f32
    %266 = vector.broadcast %cst_125 : f32 to vector<8x256xf32>
    %267 = arith.maximumf %265, %266 : vector<8x256xf32>
    %c8_i32_126 = arith.constant 8 : i32
    %268 = tpu.dynamic_rotate %81 by %c8_i32_126 dim 1 : vector<16x64xf32>, i32 -> vector<16x64xf32>
    %c1_i32_127 = arith.constant 1 : i32
    %269 = tpu.dynamic_rotate %268 by %c1_i32_127 dim 1 : vector<16x64xf32>, i32 -> vector<16x64xf32>
    %270 = vector.broadcast %53 : vector<1x64xf32> to vector<16x64xf32>
    %271 = arith.mulf %269, %270 : vector<16x64xf32>
    %272 = vector.broadcast %56 : vector<1x64xf32> to vector<16x64xf32>
    %273 = arith.mulf %268, %272 : vector<16x64xf32>
    %c63_i32 = arith.constant 63 : i32
    %274 = tpu.dynamic_rotate %268 by %c63_i32 dim 1 : vector<16x64xf32>, i32 -> vector<16x64xf32>
    %275 = vector.broadcast %60 : vector<1x64xf32> to vector<16x64xf32>
    %276 = arith.mulf %274, %275 : vector<16x64xf32>
    %277 = tpu.concatenate %271, %273, %276 in 0 : vector<16x64xf32>, vector<16x64xf32>, vector<16x64xf32> -> vector<48x64xf32>
    %278 = arith.truncf %277 : vector<48x64xf32> to vector<48x64xbf16>
    %c0_128 = arith.constant 0 : index
    %c0_129 = arith.constant 0 : index
    %c0_130 = arith.constant 0 : index
    %279 = vector.load %arg11[%c0_128, %c0_129, %c0_130] : memref<3x16x48xbf16, #tpu.memory_space<vmem>>, vector<1x16x48xbf16>
    %280 = vector.shape_cast %279 : vector<1x16x48xbf16> to vector<16x48xbf16>
    %cst_131 = arith.constant dense<0.000000e+00> : vector<16x64xf32>
    %281 = tpu.matmul %280, %278, %cst_131 {dimension_numbers = #tpu.dot_dimension_numbers<[1], [0], [0], [1], [0, 0, 1, 1], [], []>} : vector<16x48xbf16>, vector<48x64xbf16>, vector<16x64xf32> -> vector<16x64xf32>
    %c1_i32_132 = arith.constant 1 : i32
    %282 = tpu.dynamic_rotate %81 by %c1_i32_132 dim 1 : vector<16x64xf32>, i32 -> vector<16x64xf32>
    %283 = vector.broadcast %63 : vector<1x64xf32> to vector<16x64xf32>
    %284 = arith.mulf %282, %283 : vector<16x64xf32>
    %c63_i32_133 = arith.constant 63 : i32
    %285 = tpu.dynamic_rotate %81 by %c63_i32_133 dim 1 : vector<16x64xf32>, i32 -> vector<16x64xf32>
    %286 = vector.broadcast %66 : vector<1x64xf32> to vector<16x64xf32>
    %287 = arith.mulf %285, %286 : vector<16x64xf32>
    %288 = tpu.concatenate %284, %81, %287 in 0 : vector<16x64xf32>, vector<16x64xf32>, vector<16x64xf32> -> vector<48x64xf32>
    %289 = arith.truncf %288 : vector<48x64xf32> to vector<48x64xbf16>
    %c1_134 = arith.constant 1 : index
    %c0_135 = arith.constant 0 : index
    %c0_136 = arith.constant 0 : index
    %290 = vector.load %arg11[%c1_134, %c0_135, %c0_136] : memref<3x16x48xbf16, #tpu.memory_space<vmem>>, vector<1x16x48xbf16>
    %291 = vector.shape_cast %290 : vector<1x16x48xbf16> to vector<16x48xbf16>
    %cst_137 = arith.constant dense<0.000000e+00> : vector<16x64xf32>
    %292 = tpu.matmul %291, %289, %cst_137 {dimension_numbers = #tpu.dot_dimension_numbers<[1], [0], [0], [1], [0, 0, 1, 1], [], []>} : vector<16x48xbf16>, vector<48x64xbf16>, vector<16x64xf32> -> vector<16x64xf32>
    %293 = arith.addf %281, %292 : vector<16x64xf32>
    %c56_i32_138 = arith.constant 56 : i32
    %294 = tpu.dynamic_rotate %81 by %c56_i32_138 dim 1 : vector<16x64xf32>, i32 -> vector<16x64xf32>
    %c1_i32_139 = arith.constant 1 : i32
    %295 = tpu.dynamic_rotate %294 by %c1_i32_139 dim 1 : vector<16x64xf32>, i32 -> vector<16x64xf32>
    %296 = vector.broadcast %70 : vector<1x64xf32> to vector<16x64xf32>
    %297 = arith.mulf %295, %296 : vector<16x64xf32>
    %298 = vector.broadcast %73 : vector<1x64xf32> to vector<16x64xf32>
    %299 = arith.mulf %294, %298 : vector<16x64xf32>
    %c63_i32_140 = arith.constant 63 : i32
    %300 = tpu.dynamic_rotate %294 by %c63_i32_140 dim 1 : vector<16x64xf32>, i32 -> vector<16x64xf32>
    %301 = vector.broadcast %77 : vector<1x64xf32> to vector<16x64xf32>
    %302 = arith.mulf %300, %301 : vector<16x64xf32>
    %303 = tpu.concatenate %297, %299, %302 in 0 : vector<16x64xf32>, vector<16x64xf32>, vector<16x64xf32> -> vector<48x64xf32>
    %304 = arith.truncf %303 : vector<48x64xf32> to vector<48x64xbf16>
    %c2_141 = arith.constant 2 : index
    %c0_142 = arith.constant 0 : index
    %c0_143 = arith.constant 0 : index
    %305 = vector.load %arg11[%c2_141, %c0_142, %c0_143] : memref<3x16x48xbf16, #tpu.memory_space<vmem>>, vector<1x16x48xbf16>
    %306 = vector.shape_cast %305 : vector<1x16x48xbf16> to vector<16x48xbf16>
    %cst_144 = arith.constant dense<0.000000e+00> : vector<16x64xf32>
    %307 = tpu.matmul %306, %304, %cst_144 {dimension_numbers = #tpu.dot_dimension_numbers<[1], [0], [0], [1], [0, 0, 1, 1], [], []>} : vector<16x48xbf16>, vector<48x64xbf16>, vector<16x64xf32> -> vector<16x64xf32>
    %308 = arith.addf %293, %307 : vector<16x64xf32>
    %c0_145 = arith.constant 0 : index
    %c0_146 = arith.constant 0 : index
    %309 = vector.load %arg12[%c0_145, %c0_146] : memref<16x1xf32, #tpu.memory_space<vmem>>, vector<16x1xf32>
    %310 = vector.broadcast %309 : vector<16x1xf32> to vector<16x64xf32>
    %311 = arith.addf %308, %310 : vector<16x64xf32>
    %cst_147 = arith.constant 0.000000e+00 : f32
    %312 = vector.broadcast %cst_147 : f32 to vector<16x64xf32>
    %313 = arith.maximumf %311, %312 : vector<16x64xf32>
    %c8_i32_148 = arith.constant 8 : i32
    %314 = tpu.dynamic_rotate %313 by %c8_i32_148 dim 1 : vector<16x64xf32>, i32 -> vector<16x64xf32>
    %c1_i32_149 = arith.constant 1 : i32
    %315 = tpu.dynamic_rotate %314 by %c1_i32_149 dim 1 : vector<16x64xf32>, i32 -> vector<16x64xf32>
    %316 = vector.broadcast %53 : vector<1x64xf32> to vector<16x64xf32>
    %317 = arith.mulf %315, %316 : vector<16x64xf32>
    %318 = vector.broadcast %56 : vector<1x64xf32> to vector<16x64xf32>
    %319 = arith.mulf %314, %318 : vector<16x64xf32>
    %c63_i32_150 = arith.constant 63 : i32
    %320 = tpu.dynamic_rotate %314 by %c63_i32_150 dim 1 : vector<16x64xf32>, i32 -> vector<16x64xf32>
    %321 = vector.broadcast %60 : vector<1x64xf32> to vector<16x64xf32>
    %322 = arith.mulf %320, %321 : vector<16x64xf32>
    %323 = tpu.concatenate %317, %319, %322 in 0 : vector<16x64xf32>, vector<16x64xf32>, vector<16x64xf32> -> vector<48x64xf32>
    %324 = arith.truncf %323 : vector<48x64xf32> to vector<48x64xbf16>
    %c0_151 = arith.constant 0 : index
    %c0_152 = arith.constant 0 : index
    %c0_153 = arith.constant 0 : index
    %325 = vector.load %arg13[%c0_151, %c0_152, %c0_153] : memref<3x16x48xbf16, #tpu.memory_space<vmem>>, vector<1x16x48xbf16>
    %326 = vector.shape_cast %325 : vector<1x16x48xbf16> to vector<16x48xbf16>
    %cst_154 = arith.constant dense<0.000000e+00> : vector<16x64xf32>
    %327 = tpu.matmul %326, %324, %cst_154 {dimension_numbers = #tpu.dot_dimension_numbers<[1], [0], [0], [1], [0, 0, 1, 1], [], []>} : vector<16x48xbf16>, vector<48x64xbf16>, vector<16x64xf32> -> vector<16x64xf32>
    %c1_i32_155 = arith.constant 1 : i32
    %328 = tpu.dynamic_rotate %313 by %c1_i32_155 dim 1 : vector<16x64xf32>, i32 -> vector<16x64xf32>
    %329 = vector.broadcast %63 : vector<1x64xf32> to vector<16x64xf32>
    %330 = arith.mulf %328, %329 : vector<16x64xf32>
    %c63_i32_156 = arith.constant 63 : i32
    %331 = tpu.dynamic_rotate %313 by %c63_i32_156 dim 1 : vector<16x64xf32>, i32 -> vector<16x64xf32>
    %332 = vector.broadcast %66 : vector<1x64xf32> to vector<16x64xf32>
    %333 = arith.mulf %331, %332 : vector<16x64xf32>
    %334 = tpu.concatenate %330, %313, %333 in 0 : vector<16x64xf32>, vector<16x64xf32>, vector<16x64xf32> -> vector<48x64xf32>
    %335 = arith.truncf %334 : vector<48x64xf32> to vector<48x64xbf16>
    %c1_157 = arith.constant 1 : index
    %c0_158 = arith.constant 0 : index
    %c0_159 = arith.constant 0 : index
    %336 = vector.load %arg13[%c1_157, %c0_158, %c0_159] : memref<3x16x48xbf16, #tpu.memory_space<vmem>>, vector<1x16x48xbf16>
    %337 = vector.shape_cast %336 : vector<1x16x48xbf16> to vector<16x48xbf16>
    %cst_160 = arith.constant dense<0.000000e+00> : vector<16x64xf32>
    %338 = tpu.matmul %337, %335, %cst_160 {dimension_numbers = #tpu.dot_dimension_numbers<[1], [0], [0], [1], [0, 0, 1, 1], [], []>} : vector<16x48xbf16>, vector<48x64xbf16>, vector<16x64xf32> -> vector<16x64xf32>
    %339 = arith.addf %327, %338 : vector<16x64xf32>
    %c56_i32_161 = arith.constant 56 : i32
    %340 = tpu.dynamic_rotate %313 by %c56_i32_161 dim 1 : vector<16x64xf32>, i32 -> vector<16x64xf32>
    %c1_i32_162 = arith.constant 1 : i32
    %341 = tpu.dynamic_rotate %340 by %c1_i32_162 dim 1 : vector<16x64xf32>, i32 -> vector<16x64xf32>
    %342 = vector.broadcast %70 : vector<1x64xf32> to vector<16x64xf32>
    %343 = arith.mulf %341, %342 : vector<16x64xf32>
    %344 = vector.broadcast %73 : vector<1x64xf32> to vector<16x64xf32>
    %345 = arith.mulf %340, %344 : vector<16x64xf32>
    %c63_i32_163 = arith.constant 63 : i32
    %346 = tpu.dynamic_rotate %340 by %c63_i32_163 dim 1 : vector<16x64xf32>, i32 -> vector<16x64xf32>
    %347 = vector.broadcast %77 : vector<1x64xf32> to vector<16x64xf32>
    %348 = arith.mulf %346, %347 : vector<16x64xf32>
    %349 = tpu.concatenate %343, %345, %348 in 0 : vector<16x64xf32>, vector<16x64xf32>, vector<16x64xf32> -> vector<48x64xf32>
    %350 = arith.truncf %349 : vector<48x64xf32> to vector<48x64xbf16>
    %c2_164 = arith.constant 2 : index
    %c0_165 = arith.constant 0 : index
    %c0_166 = arith.constant 0 : index
    %351 = vector.load %arg13[%c2_164, %c0_165, %c0_166] : memref<3x16x48xbf16, #tpu.memory_space<vmem>>, vector<1x16x48xbf16>
    %352 = vector.shape_cast %351 : vector<1x16x48xbf16> to vector<16x48xbf16>
    %cst_167 = arith.constant dense<0.000000e+00> : vector<16x64xf32>
    %353 = tpu.matmul %352, %350, %cst_167 {dimension_numbers = #tpu.dot_dimension_numbers<[1], [0], [0], [1], [0, 0, 1, 1], [], []>} : vector<16x48xbf16>, vector<48x64xbf16>, vector<16x64xf32> -> vector<16x64xf32>
    %354 = arith.addf %339, %353 : vector<16x64xf32>
    %c0_168 = arith.constant 0 : index
    %c0_169 = arith.constant 0 : index
    %355 = vector.load %arg14[%c0_168, %c0_169] : memref<16x1xf32, #tpu.memory_space<vmem>>, vector<16x1xf32>
    %356 = vector.broadcast %355 : vector<16x1xf32> to vector<16x64xf32>
    %357 = arith.addf %354, %356 : vector<16x64xf32>
    %358 = arith.addf %357, %81 : vector<16x64xf32>
    %cst_170 = arith.constant 0.000000e+00 : f32
    %359 = vector.broadcast %cst_170 : f32 to vector<16x64xf32>
    %360 = arith.maximumf %358, %359 : vector<16x64xf32>
    %c8_i32_171 = arith.constant 8 : i32
    %361 = tpu.dynamic_rotate %360 by %c8_i32_171 dim 1 : vector<16x64xf32>, i32 -> vector<16x64xf32>
    %c1_i32_172 = arith.constant 1 : i32
    %362 = tpu.dynamic_rotate %361 by %c1_i32_172 dim 1 : vector<16x64xf32>, i32 -> vector<16x64xf32>
    %363 = vector.broadcast %53 : vector<1x64xf32> to vector<16x64xf32>
    %364 = arith.mulf %362, %363 : vector<16x64xf32>
    %365 = vector.broadcast %56 : vector<1x64xf32> to vector<16x64xf32>
    %366 = arith.mulf %361, %365 : vector<16x64xf32>
    %c63_i32_173 = arith.constant 63 : i32
    %367 = tpu.dynamic_rotate %361 by %c63_i32_173 dim 1 : vector<16x64xf32>, i32 -> vector<16x64xf32>
    %368 = vector.broadcast %60 : vector<1x64xf32> to vector<16x64xf32>
    %369 = arith.mulf %367, %368 : vector<16x64xf32>
    %370 = tpu.concatenate %364, %366, %369 in 0 : vector<16x64xf32>, vector<16x64xf32>, vector<16x64xf32> -> vector<48x64xf32>
    %371 = arith.truncf %370 : vector<48x64xf32> to vector<48x64xbf16>
    %c0_174 = arith.constant 0 : index
    %c0_175 = arith.constant 0 : index
    %c0_176 = arith.constant 0 : index
    %372 = vector.load %arg15[%c0_174, %c0_175, %c0_176] : memref<3x16x48xbf16, #tpu.memory_space<vmem>>, vector<1x16x48xbf16>
    %373 = vector.shape_cast %372 : vector<1x16x48xbf16> to vector<16x48xbf16>
    %cst_177 = arith.constant dense<0.000000e+00> : vector<16x64xf32>
    %374 = tpu.matmul %373, %371, %cst_177 {dimension_numbers = #tpu.dot_dimension_numbers<[1], [0], [0], [1], [0, 0, 1, 1], [], []>} : vector<16x48xbf16>, vector<48x64xbf16>, vector<16x64xf32> -> vector<16x64xf32>
    %c1_i32_178 = arith.constant 1 : i32
    %375 = tpu.dynamic_rotate %360 by %c1_i32_178 dim 1 : vector<16x64xf32>, i32 -> vector<16x64xf32>
    %376 = vector.broadcast %63 : vector<1x64xf32> to vector<16x64xf32>
    %377 = arith.mulf %375, %376 : vector<16x64xf32>
    %c63_i32_179 = arith.constant 63 : i32
    %378 = tpu.dynamic_rotate %360 by %c63_i32_179 dim 1 : vector<16x64xf32>, i32 -> vector<16x64xf32>
    %379 = vector.broadcast %66 : vector<1x64xf32> to vector<16x64xf32>
    %380 = arith.mulf %378, %379 : vector<16x64xf32>
    %381 = tpu.concatenate %377, %360, %380 in 0 : vector<16x64xf32>, vector<16x64xf32>, vector<16x64xf32> -> vector<48x64xf32>
    %382 = arith.truncf %381 : vector<48x64xf32> to vector<48x64xbf16>
    %c1_180 = arith.constant 1 : index
    %c0_181 = arith.constant 0 : index
    %c0_182 = arith.constant 0 : index
    %383 = vector.load %arg15[%c1_180, %c0_181, %c0_182] : memref<3x16x48xbf16, #tpu.memory_space<vmem>>, vector<1x16x48xbf16>
    %384 = vector.shape_cast %383 : vector<1x16x48xbf16> to vector<16x48xbf16>
    %cst_183 = arith.constant dense<0.000000e+00> : vector<16x64xf32>
    %385 = tpu.matmul %384, %382, %cst_183 {dimension_numbers = #tpu.dot_dimension_numbers<[1], [0], [0], [1], [0, 0, 1, 1], [], []>} : vector<16x48xbf16>, vector<48x64xbf16>, vector<16x64xf32> -> vector<16x64xf32>
    %386 = arith.addf %374, %385 : vector<16x64xf32>
    %c56_i32_184 = arith.constant 56 : i32
    %387 = tpu.dynamic_rotate %360 by %c56_i32_184 dim 1 : vector<16x64xf32>, i32 -> vector<16x64xf32>
    %c1_i32_185 = arith.constant 1 : i32
    %388 = tpu.dynamic_rotate %387 by %c1_i32_185 dim 1 : vector<16x64xf32>, i32 -> vector<16x64xf32>
    %389 = vector.broadcast %70 : vector<1x64xf32> to vector<16x64xf32>
    %390 = arith.mulf %388, %389 : vector<16x64xf32>
    %391 = vector.broadcast %73 : vector<1x64xf32> to vector<16x64xf32>
    %392 = arith.mulf %387, %391 : vector<16x64xf32>
    %c63_i32_186 = arith.constant 63 : i32
    %393 = tpu.dynamic_rotate %387 by %c63_i32_186 dim 1 : vector<16x64xf32>, i32 -> vector<16x64xf32>
    %394 = vector.broadcast %77 : vector<1x64xf32> to vector<16x64xf32>
    %395 = arith.mulf %393, %394 : vector<16x64xf32>
    %396 = tpu.concatenate %390, %392, %395 in 0 : vector<16x64xf32>, vector<16x64xf32>, vector<16x64xf32> -> vector<48x64xf32>
    %397 = arith.truncf %396 : vector<48x64xf32> to vector<48x64xbf16>
    %c2_187 = arith.constant 2 : index
    %c0_188 = arith.constant 0 : index
    %c0_189 = arith.constant 0 : index
    %398 = vector.load %arg15[%c2_187, %c0_188, %c0_189] : memref<3x16x48xbf16, #tpu.memory_space<vmem>>, vector<1x16x48xbf16>
    %399 = vector.shape_cast %398 : vector<1x16x48xbf16> to vector<16x48xbf16>
    %cst_190 = arith.constant dense<0.000000e+00> : vector<16x64xf32>
    %400 = tpu.matmul %399, %397, %cst_190 {dimension_numbers = #tpu.dot_dimension_numbers<[1], [0], [0], [1], [0, 0, 1, 1], [], []>} : vector<16x48xbf16>, vector<48x64xbf16>, vector<16x64xf32> -> vector<16x64xf32>
    %401 = arith.addf %386, %400 : vector<16x64xf32>
    %c0_191 = arith.constant 0 : index
    %c0_192 = arith.constant 0 : index
    %402 = vector.load %arg16[%c0_191, %c0_192] : memref<16x1xf32, #tpu.memory_space<vmem>>, vector<16x1xf32>
    %403 = vector.broadcast %402 : vector<16x1xf32> to vector<16x64xf32>
    %404 = arith.addf %401, %403 : vector<16x64xf32>
    %cst_193 = arith.constant 0.000000e+00 : f32
    %405 = vector.broadcast %cst_193 : f32 to vector<16x64xf32>
    %406 = arith.maximumf %404, %405 : vector<16x64xf32>
    %c8_i32_194 = arith.constant 8 : i32
    %407 = tpu.dynamic_rotate %406 by %c8_i32_194 dim 1 : vector<16x64xf32>, i32 -> vector<16x64xf32>
    %c1_i32_195 = arith.constant 1 : i32
    %408 = tpu.dynamic_rotate %407 by %c1_i32_195 dim 1 : vector<16x64xf32>, i32 -> vector<16x64xf32>
    %409 = vector.broadcast %53 : vector<1x64xf32> to vector<16x64xf32>
    %410 = arith.mulf %408, %409 : vector<16x64xf32>
    %411 = vector.broadcast %56 : vector<1x64xf32> to vector<16x64xf32>
    %412 = arith.mulf %407, %411 : vector<16x64xf32>
    %c63_i32_196 = arith.constant 63 : i32
    %413 = tpu.dynamic_rotate %407 by %c63_i32_196 dim 1 : vector<16x64xf32>, i32 -> vector<16x64xf32>
    %414 = vector.broadcast %60 : vector<1x64xf32> to vector<16x64xf32>
    %415 = arith.mulf %413, %414 : vector<16x64xf32>
    %416 = tpu.concatenate %410, %412, %415 in 0 : vector<16x64xf32>, vector<16x64xf32>, vector<16x64xf32> -> vector<48x64xf32>
    %417 = arith.truncf %416 : vector<48x64xf32> to vector<48x64xbf16>
    %c0_197 = arith.constant 0 : index
    %c0_198 = arith.constant 0 : index
    %c0_199 = arith.constant 0 : index
    %418 = vector.load %arg17[%c0_197, %c0_198, %c0_199] : memref<3x16x48xbf16, #tpu.memory_space<vmem>>, vector<1x16x48xbf16>
    %419 = vector.shape_cast %418 : vector<1x16x48xbf16> to vector<16x48xbf16>
    %cst_200 = arith.constant dense<0.000000e+00> : vector<16x64xf32>
    %420 = tpu.matmul %419, %417, %cst_200 {dimension_numbers = #tpu.dot_dimension_numbers<[1], [0], [0], [1], [0, 0, 1, 1], [], []>} : vector<16x48xbf16>, vector<48x64xbf16>, vector<16x64xf32> -> vector<16x64xf32>
    %c1_i32_201 = arith.constant 1 : i32
    %421 = tpu.dynamic_rotate %406 by %c1_i32_201 dim 1 : vector<16x64xf32>, i32 -> vector<16x64xf32>
    %422 = vector.broadcast %63 : vector<1x64xf32> to vector<16x64xf32>
    %423 = arith.mulf %421, %422 : vector<16x64xf32>
    %c63_i32_202 = arith.constant 63 : i32
    %424 = tpu.dynamic_rotate %406 by %c63_i32_202 dim 1 : vector<16x64xf32>, i32 -> vector<16x64xf32>
    %425 = vector.broadcast %66 : vector<1x64xf32> to vector<16x64xf32>
    %426 = arith.mulf %424, %425 : vector<16x64xf32>
    %427 = tpu.concatenate %423, %406, %426 in 0 : vector<16x64xf32>, vector<16x64xf32>, vector<16x64xf32> -> vector<48x64xf32>
    %428 = arith.truncf %427 : vector<48x64xf32> to vector<48x64xbf16>
    %c1_203 = arith.constant 1 : index
    %c0_204 = arith.constant 0 : index
    %c0_205 = arith.constant 0 : index
    %429 = vector.load %arg17[%c1_203, %c0_204, %c0_205] : memref<3x16x48xbf16, #tpu.memory_space<vmem>>, vector<1x16x48xbf16>
    %430 = vector.shape_cast %429 : vector<1x16x48xbf16> to vector<16x48xbf16>
    %cst_206 = arith.constant dense<0.000000e+00> : vector<16x64xf32>
    %431 = tpu.matmul %430, %428, %cst_206 {dimension_numbers = #tpu.dot_dimension_numbers<[1], [0], [0], [1], [0, 0, 1, 1], [], []>} : vector<16x48xbf16>, vector<48x64xbf16>, vector<16x64xf32> -> vector<16x64xf32>
    %432 = arith.addf %420, %431 : vector<16x64xf32>
    %c56_i32_207 = arith.constant 56 : i32
    %433 = tpu.dynamic_rotate %406 by %c56_i32_207 dim 1 : vector<16x64xf32>, i32 -> vector<16x64xf32>
    %c1_i32_208 = arith.constant 1 : i32
    %434 = tpu.dynamic_rotate %433 by %c1_i32_208 dim 1 : vector<16x64xf32>, i32 -> vector<16x64xf32>
    %435 = vector.broadcast %70 : vector<1x64xf32> to vector<16x64xf32>
    %436 = arith.mulf %434, %435 : vector<16x64xf32>
    %437 = vector.broadcast %73 : vector<1x64xf32> to vector<16x64xf32>
    %438 = arith.mulf %433, %437 : vector<16x64xf32>
    %c63_i32_209 = arith.constant 63 : i32
    %439 = tpu.dynamic_rotate %433 by %c63_i32_209 dim 1 : vector<16x64xf32>, i32 -> vector<16x64xf32>
    %440 = vector.broadcast %77 : vector<1x64xf32> to vector<16x64xf32>
    %441 = arith.mulf %439, %440 : vector<16x64xf32>
    %442 = tpu.concatenate %436, %438, %441 in 0 : vector<16x64xf32>, vector<16x64xf32>, vector<16x64xf32> -> vector<48x64xf32>
    %443 = arith.truncf %442 : vector<48x64xf32> to vector<48x64xbf16>
    %c2_210 = arith.constant 2 : index
    %c0_211 = arith.constant 0 : index
    %c0_212 = arith.constant 0 : index
    %444 = vector.load %arg17[%c2_210, %c0_211, %c0_212] : memref<3x16x48xbf16, #tpu.memory_space<vmem>>, vector<1x16x48xbf16>
    %445 = vector.shape_cast %444 : vector<1x16x48xbf16> to vector<16x48xbf16>
    %cst_213 = arith.constant dense<0.000000e+00> : vector<16x64xf32>
    %446 = tpu.matmul %445, %443, %cst_213 {dimension_numbers = #tpu.dot_dimension_numbers<[1], [0], [0], [1], [0, 0, 1, 1], [], []>} : vector<16x48xbf16>, vector<48x64xbf16>, vector<16x64xf32> -> vector<16x64xf32>
    %447 = arith.addf %432, %446 : vector<16x64xf32>
    %c0_214 = arith.constant 0 : index
    %c0_215 = arith.constant 0 : index
    %448 = vector.load %arg18[%c0_214, %c0_215] : memref<16x1xf32, #tpu.memory_space<vmem>>, vector<16x1xf32>
    %449 = vector.broadcast %448 : vector<16x1xf32> to vector<16x64xf32>
    %450 = arith.addf %447, %449 : vector<16x64xf32>
    %451 = arith.addf %450, %360 : vector<16x64xf32>
    %cst_216 = arith.constant 0.000000e+00 : f32
    %452 = vector.broadcast %cst_216 : f32 to vector<16x64xf32>
    %453 = arith.maximumf %451, %452 : vector<16x64xf32>
    %c0_217 = arith.constant 0 : index
    %c0_218 = arith.constant 0 : index
    %454 = vector.load %arg19[%c0_217, %c0_218] : memref<8x16xbf16, #tpu.memory_space<vmem>>, vector<8x16xbf16>
    %455 = arith.truncf %453 : vector<16x64xf32> to vector<16x64xbf16>
    %cst_219 = arith.constant dense<0.000000e+00> : vector<8x64xf32>
    %456 = tpu.matmul %454, %455, %cst_219 {dimension_numbers = #tpu.dot_dimension_numbers<[1], [0], [0], [1], [0, 0, 1, 1], [], []>} : vector<8x16xbf16>, vector<16x64xbf16>, vector<8x64xf32> -> vector<8x64xf32>
    %c0_220 = arith.constant 0 : index
    %c0_221 = arith.constant 0 : index
    %457 = vector.load %arg20[%c0_220, %c0_221] : memref<8x1xf32, #tpu.memory_space<vmem>>, vector<8x1xf32>
    %458 = vector.broadcast %457 : vector<8x1xf32> to vector<8x64xf32>
    %459 = arith.addf %456, %458 : vector<8x64xf32>
    %c0_222 = arith.constant 0 : index
    %c0_223 = arith.constant 0 : index
    %460 = vector.load %arg23[%c0_222, %c0_223] : memref<8x16xbf16, #tpu.memory_space<vmem>>, vector<8x16xbf16>
    %461 = vector.extract_strided_slice %459 {offsets = [0, 0], sizes = [8, 8], strides = [1, 1]} : vector<8x64xf32> to vector<8x8xf32>
    %462 = vector.extract_strided_slice %459 {offsets = [0, 8], sizes = [8, 8], strides = [1, 1]} : vector<8x64xf32> to vector<8x8xf32>
    %463 = vector.extract_strided_slice %459 {offsets = [0, 16], sizes = [8, 8], strides = [1, 1]} : vector<8x64xf32> to vector<8x8xf32>
    %464 = vector.extract_strided_slice %459 {offsets = [0, 24], sizes = [8, 8], strides = [1, 1]} : vector<8x64xf32> to vector<8x8xf32>
    %465 = vector.extract_strided_slice %459 {offsets = [0, 32], sizes = [8, 8], strides = [1, 1]} : vector<8x64xf32> to vector<8x8xf32>
    %466 = vector.extract_strided_slice %459 {offsets = [0, 40], sizes = [8, 8], strides = [1, 1]} : vector<8x64xf32> to vector<8x8xf32>
    %467 = vector.extract_strided_slice %459 {offsets = [0, 48], sizes = [8, 8], strides = [1, 1]} : vector<8x64xf32> to vector<8x8xf32>
    %468 = vector.extract_strided_slice %459 {offsets = [0, 56], sizes = [8, 8], strides = [1, 1]} : vector<8x64xf32> to vector<8x8xf32>
    %469 = arith.truncf %461 : vector<8x8xf32> to vector<8x8xbf16>
    %cst_224 = arith.constant dense<0.000000e+00> : vector<8x16xf32>
    %470 = tpu.matmul %469, %460, %cst_224 {dimension_numbers = #tpu.dot_dimension_numbers<[1], [0], [0], [1], [0, 0, 1, 1], [], []>} : vector<8x8xbf16>, vector<8x16xbf16>, vector<8x16xf32> -> vector<8x16xf32>
    %cst_225 = arith.constant 7.500000e-01 : f32
    %471 = vector.broadcast %cst_225 : f32 to vector<8x8xf32>
    %472 = arith.mulf %471, %461 : vector<8x8xf32>
    %cst_226 = arith.constant 2.500000e-01 : f32
    %473 = vector.broadcast %cst_226 : f32 to vector<8x8xf32>
    %474 = arith.mulf %473, %462 : vector<8x8xf32>
    %475 = arith.addf %472, %474 : vector<8x8xf32>
    %476 = arith.truncf %475 : vector<8x8xf32> to vector<8x8xbf16>
    %cst_227 = arith.constant dense<0.000000e+00> : vector<8x16xf32>
    %477 = tpu.matmul %476, %460, %cst_227 {dimension_numbers = #tpu.dot_dimension_numbers<[1], [0], [0], [1], [0, 0, 1, 1], [], []>} : vector<8x8xbf16>, vector<8x16xbf16>, vector<8x16xf32> -> vector<8x16xf32>
    %cst_228 = arith.constant 2.500000e-01 : f32
    %478 = vector.broadcast %cst_228 : f32 to vector<8x8xf32>
    %479 = arith.mulf %478, %461 : vector<8x8xf32>
    %cst_229 = arith.constant 7.500000e-01 : f32
    %480 = vector.broadcast %cst_229 : f32 to vector<8x8xf32>
    %481 = arith.mulf %480, %462 : vector<8x8xf32>
    %482 = arith.addf %479, %481 : vector<8x8xf32>
    %483 = arith.truncf %482 : vector<8x8xf32> to vector<8x8xbf16>
    %cst_230 = arith.constant dense<0.000000e+00> : vector<8x16xf32>
    %484 = tpu.matmul %483, %460, %cst_230 {dimension_numbers = #tpu.dot_dimension_numbers<[1], [0], [0], [1], [0, 0, 1, 1], [], []>} : vector<8x8xbf16>, vector<8x16xbf16>, vector<8x16xf32> -> vector<8x16xf32>
    %cst_231 = arith.constant 7.500000e-01 : f32
    %485 = vector.broadcast %cst_231 : f32 to vector<8x8xf32>
    %486 = arith.mulf %485, %462 : vector<8x8xf32>
    %cst_232 = arith.constant 2.500000e-01 : f32
    %487 = vector.broadcast %cst_232 : f32 to vector<8x8xf32>
    %488 = arith.mulf %487, %463 : vector<8x8xf32>
    %489 = arith.addf %486, %488 : vector<8x8xf32>
    %490 = arith.truncf %489 : vector<8x8xf32> to vector<8x8xbf16>
    %cst_233 = arith.constant dense<0.000000e+00> : vector<8x16xf32>
    %491 = tpu.matmul %490, %460, %cst_233 {dimension_numbers = #tpu.dot_dimension_numbers<[1], [0], [0], [1], [0, 0, 1, 1], [], []>} : vector<8x8xbf16>, vector<8x16xbf16>, vector<8x16xf32> -> vector<8x16xf32>
    %cst_234 = arith.constant 2.500000e-01 : f32
    %492 = vector.broadcast %cst_234 : f32 to vector<8x8xf32>
    %493 = arith.mulf %492, %462 : vector<8x8xf32>
    %cst_235 = arith.constant 7.500000e-01 : f32
    %494 = vector.broadcast %cst_235 : f32 to vector<8x8xf32>
    %495 = arith.mulf %494, %463 : vector<8x8xf32>
    %496 = arith.addf %493, %495 : vector<8x8xf32>
    %497 = arith.truncf %496 : vector<8x8xf32> to vector<8x8xbf16>
    %cst_236 = arith.constant dense<0.000000e+00> : vector<8x16xf32>
    %498 = tpu.matmul %497, %460, %cst_236 {dimension_numbers = #tpu.dot_dimension_numbers<[1], [0], [0], [1], [0, 0, 1, 1], [], []>} : vector<8x8xbf16>, vector<8x16xbf16>, vector<8x16xf32> -> vector<8x16xf32>
    %cst_237 = arith.constant 7.500000e-01 : f32
    %499 = vector.broadcast %cst_237 : f32 to vector<8x8xf32>
    %500 = arith.mulf %499, %463 : vector<8x8xf32>
    %cst_238 = arith.constant 2.500000e-01 : f32
    %501 = vector.broadcast %cst_238 : f32 to vector<8x8xf32>
    %502 = arith.mulf %501, %464 : vector<8x8xf32>
    %503 = arith.addf %500, %502 : vector<8x8xf32>
    %504 = arith.truncf %503 : vector<8x8xf32> to vector<8x8xbf16>
    %cst_239 = arith.constant dense<0.000000e+00> : vector<8x16xf32>
    %505 = tpu.matmul %504, %460, %cst_239 {dimension_numbers = #tpu.dot_dimension_numbers<[1], [0], [0], [1], [0, 0, 1, 1], [], []>} : vector<8x8xbf16>, vector<8x16xbf16>, vector<8x16xf32> -> vector<8x16xf32>
    %cst_240 = arith.constant 2.500000e-01 : f32
    %506 = vector.broadcast %cst_240 : f32 to vector<8x8xf32>
    %507 = arith.mulf %506, %463 : vector<8x8xf32>
    %cst_241 = arith.constant 7.500000e-01 : f32
    %508 = vector.broadcast %cst_241 : f32 to vector<8x8xf32>
    %509 = arith.mulf %508, %464 : vector<8x8xf32>
    %510 = arith.addf %507, %509 : vector<8x8xf32>
    %511 = arith.truncf %510 : vector<8x8xf32> to vector<8x8xbf16>
    %cst_242 = arith.constant dense<0.000000e+00> : vector<8x16xf32>
    %512 = tpu.matmul %511, %460, %cst_242 {dimension_numbers = #tpu.dot_dimension_numbers<[1], [0], [0], [1], [0, 0, 1, 1], [], []>} : vector<8x8xbf16>, vector<8x16xbf16>, vector<8x16xf32> -> vector<8x16xf32>
    %cst_243 = arith.constant 7.500000e-01 : f32
    %513 = vector.broadcast %cst_243 : f32 to vector<8x8xf32>
    %514 = arith.mulf %513, %464 : vector<8x8xf32>
    %cst_244 = arith.constant 2.500000e-01 : f32
    %515 = vector.broadcast %cst_244 : f32 to vector<8x8xf32>
    %516 = arith.mulf %515, %465 : vector<8x8xf32>
    %517 = arith.addf %514, %516 : vector<8x8xf32>
    %518 = arith.truncf %517 : vector<8x8xf32> to vector<8x8xbf16>
    %cst_245 = arith.constant dense<0.000000e+00> : vector<8x16xf32>
    %519 = tpu.matmul %518, %460, %cst_245 {dimension_numbers = #tpu.dot_dimension_numbers<[1], [0], [0], [1], [0, 0, 1, 1], [], []>} : vector<8x8xbf16>, vector<8x16xbf16>, vector<8x16xf32> -> vector<8x16xf32>
    %cst_246 = arith.constant 2.500000e-01 : f32
    %520 = vector.broadcast %cst_246 : f32 to vector<8x8xf32>
    %521 = arith.mulf %520, %464 : vector<8x8xf32>
    %cst_247 = arith.constant 7.500000e-01 : f32
    %522 = vector.broadcast %cst_247 : f32 to vector<8x8xf32>
    %523 = arith.mulf %522, %465 : vector<8x8xf32>
    %524 = arith.addf %521, %523 : vector<8x8xf32>
    %525 = arith.truncf %524 : vector<8x8xf32> to vector<8x8xbf16>
    %cst_248 = arith.constant dense<0.000000e+00> : vector<8x16xf32>
    %526 = tpu.matmul %525, %460, %cst_248 {dimension_numbers = #tpu.dot_dimension_numbers<[1], [0], [0], [1], [0, 0, 1, 1], [], []>} : vector<8x8xbf16>, vector<8x16xbf16>, vector<8x16xf32> -> vector<8x16xf32>
    %cst_249 = arith.constant 7.500000e-01 : f32
    %527 = vector.broadcast %cst_249 : f32 to vector<8x8xf32>
    %528 = arith.mulf %527, %465 : vector<8x8xf32>
    %cst_250 = arith.constant 2.500000e-01 : f32
    %529 = vector.broadcast %cst_250 : f32 to vector<8x8xf32>
    %530 = arith.mulf %529, %466 : vector<8x8xf32>
    %531 = arith.addf %528, %530 : vector<8x8xf32>
    %532 = arith.truncf %531 : vector<8x8xf32> to vector<8x8xbf16>
    %cst_251 = arith.constant dense<0.000000e+00> : vector<8x16xf32>
    %533 = tpu.matmul %532, %460, %cst_251 {dimension_numbers = #tpu.dot_dimension_numbers<[1], [0], [0], [1], [0, 0, 1, 1], [], []>} : vector<8x8xbf16>, vector<8x16xbf16>, vector<8x16xf32> -> vector<8x16xf32>
    %cst_252 = arith.constant 2.500000e-01 : f32
    %534 = vector.broadcast %cst_252 : f32 to vector<8x8xf32>
    %535 = arith.mulf %534, %465 : vector<8x8xf32>
    %cst_253 = arith.constant 7.500000e-01 : f32
    %536 = vector.broadcast %cst_253 : f32 to vector<8x8xf32>
    %537 = arith.mulf %536, %466 : vector<8x8xf32>
    %538 = arith.addf %535, %537 : vector<8x8xf32>
    %539 = arith.truncf %538 : vector<8x8xf32> to vector<8x8xbf16>
    %cst_254 = arith.constant dense<0.000000e+00> : vector<8x16xf32>
    %540 = tpu.matmul %539, %460, %cst_254 {dimension_numbers = #tpu.dot_dimension_numbers<[1], [0], [0], [1], [0, 0, 1, 1], [], []>} : vector<8x8xbf16>, vector<8x16xbf16>, vector<8x16xf32> -> vector<8x16xf32>
    %cst_255 = arith.constant 7.500000e-01 : f32
    %541 = vector.broadcast %cst_255 : f32 to vector<8x8xf32>
    %542 = arith.mulf %541, %466 : vector<8x8xf32>
    %cst_256 = arith.constant 2.500000e-01 : f32
    %543 = vector.broadcast %cst_256 : f32 to vector<8x8xf32>
    %544 = arith.mulf %543, %467 : vector<8x8xf32>
    %545 = arith.addf %542, %544 : vector<8x8xf32>
    %546 = arith.truncf %545 : vector<8x8xf32> to vector<8x8xbf16>
    %cst_257 = arith.constant dense<0.000000e+00> : vector<8x16xf32>
    %547 = tpu.matmul %546, %460, %cst_257 {dimension_numbers = #tpu.dot_dimension_numbers<[1], [0], [0], [1], [0, 0, 1, 1], [], []>} : vector<8x8xbf16>, vector<8x16xbf16>, vector<8x16xf32> -> vector<8x16xf32>
    %cst_258 = arith.constant 2.500000e-01 : f32
    %548 = vector.broadcast %cst_258 : f32 to vector<8x8xf32>
    %549 = arith.mulf %548, %466 : vector<8x8xf32>
    %cst_259 = arith.constant 7.500000e-01 : f32
    %550 = vector.broadcast %cst_259 : f32 to vector<8x8xf32>
    %551 = arith.mulf %550, %467 : vector<8x8xf32>
    %552 = arith.addf %549, %551 : vector<8x8xf32>
    %553 = arith.truncf %552 : vector<8x8xf32> to vector<8x8xbf16>
    %cst_260 = arith.constant dense<0.000000e+00> : vector<8x16xf32>
    %554 = tpu.matmul %553, %460, %cst_260 {dimension_numbers = #tpu.dot_dimension_numbers<[1], [0], [0], [1], [0, 0, 1, 1], [], []>} : vector<8x8xbf16>, vector<8x16xbf16>, vector<8x16xf32> -> vector<8x16xf32>
    %cst_261 = arith.constant 7.500000e-01 : f32
    %555 = vector.broadcast %cst_261 : f32 to vector<8x8xf32>
    %556 = arith.mulf %555, %467 : vector<8x8xf32>
    %cst_262 = arith.constant 2.500000e-01 : f32
    %557 = vector.broadcast %cst_262 : f32 to vector<8x8xf32>
    %558 = arith.mulf %557, %468 : vector<8x8xf32>
    %559 = arith.addf %556, %558 : vector<8x8xf32>
    %560 = arith.truncf %559 : vector<8x8xf32> to vector<8x8xbf16>
    %cst_263 = arith.constant dense<0.000000e+00> : vector<8x16xf32>
    %561 = tpu.matmul %560, %460, %cst_263 {dimension_numbers = #tpu.dot_dimension_numbers<[1], [0], [0], [1], [0, 0, 1, 1], [], []>} : vector<8x8xbf16>, vector<8x16xbf16>, vector<8x16xf32> -> vector<8x16xf32>
    %cst_264 = arith.constant 2.500000e-01 : f32
    %562 = vector.broadcast %cst_264 : f32 to vector<8x8xf32>
    %563 = arith.mulf %562, %467 : vector<8x8xf32>
    %cst_265 = arith.constant 7.500000e-01 : f32
    %564 = vector.broadcast %cst_265 : f32 to vector<8x8xf32>
    %565 = arith.mulf %564, %468 : vector<8x8xf32>
    %566 = arith.addf %563, %565 : vector<8x8xf32>
    %567 = arith.truncf %566 : vector<8x8xf32> to vector<8x8xbf16>
    %cst_266 = arith.constant dense<0.000000e+00> : vector<8x16xf32>
    %568 = tpu.matmul %567, %460, %cst_266 {dimension_numbers = #tpu.dot_dimension_numbers<[1], [0], [0], [1], [0, 0, 1, 1], [], []>} : vector<8x8xbf16>, vector<8x16xbf16>, vector<8x16xf32> -> vector<8x16xf32>
    %cst_267 = arith.constant 7.500000e-01 : f32
    %569 = vector.broadcast %cst_267 : f32 to vector<8x8xf32>
    %570 = arith.mulf %569, %468 : vector<8x8xf32>
    %cst_268 = arith.constant 2.500000e-01 : f32
    %571 = vector.broadcast %cst_268 : f32 to vector<8x8xf32>
    %572 = arith.mulf %571, %468 : vector<8x8xf32>
    %573 = arith.addf %570, %572 : vector<8x8xf32>
    %574 = arith.truncf %573 : vector<8x8xf32> to vector<8x8xbf16>
    %cst_269 = arith.constant dense<0.000000e+00> : vector<8x16xf32>
    %575 = tpu.matmul %574, %460, %cst_269 {dimension_numbers = #tpu.dot_dimension_numbers<[1], [0], [0], [1], [0, 0, 1, 1], [], []>} : vector<8x8xbf16>, vector<8x16xbf16>, vector<8x16xf32> -> vector<8x16xf32>
    %576 = tpu.concatenate %470, %477, %484, %491, %498, %505, %512, %519, %526, %533, %540, %547, %554, %561, %568, %575 in 1 : vector<8x16xf32>, vector<8x16xf32>, vector<8x16xf32>, vector<8x16xf32>, vector<8x16xf32>, vector<8x16xf32>, vector<8x16xf32>, vector<8x16xf32>, vector<8x16xf32>, vector<8x16xf32>, vector<8x16xf32>, vector<8x16xf32>, vector<8x16xf32>, vector<8x16xf32>, vector<8x16xf32>, vector<8x16xf32> -> vector<8x256xf32>
    %577 = arith.addf %267, %576 : vector<8x256xf32>
    %cst_270 = arith.constant 0.000000e+00 : f32
    %578 = vector.broadcast %cst_270 : f32 to vector<8x256xf32>
    %579 = arith.maximumf %577, %578 : vector<8x256xf32>
    %c0_271 = arith.constant 0 : index
    %c0_272 = arith.constant 0 : index
    %c0_273 = arith.constant 0 : index
    %580 = vector.load %arg25[%c0_271, %c0_272, %c0_273] : memref<1x8x256xf32, #tpu.memory_space<vmem>>, vector<1x8x256xf32>
    %581 = vector.shape_cast %580 : vector<1x8x256xf32> to vector<8x256xf32>
    %582 = vector.shape_cast %579 : vector<8x256xf32> to vector<1x8x256xf32>
    tpu.vector_store %arg25[%c0_271, %c0_272, %c0_273], %582 {strides = array<i32>} : memref<1x8x256xf32, #tpu.memory_space<vmem>>, vector<1x8x256xf32>,
    %c16_i32_274 = arith.constant 16 : i32
    %583 = tpu.dynamic_rotate %267 by %c16_i32_274 dim 1 : vector<8x256xf32>, i32 -> vector<8x256xf32>
    %c1_i32_275 = arith.constant 1 : i32
    %584 = tpu.dynamic_rotate %583 by %c1_i32_275 dim 1 : vector<8x256xf32>, i32 -> vector<8x256xf32>
    %585 = vector.broadcast %14 : vector<1x256xf32> to vector<8x256xf32>
    %586 = arith.mulf %584, %585 : vector<8x256xf32>
    %587 = vector.broadcast %17 : vector<1x256xf32> to vector<8x256xf32>
    %588 = arith.mulf %583, %587 : vector<8x256xf32>
    %c255_i32_276 = arith.constant 255 : i32
    %589 = tpu.dynamic_rotate %583 by %c255_i32_276 dim 1 : vector<8x256xf32>, i32 -> vector<8x256xf32>
    %590 = vector.broadcast %21 : vector<1x256xf32> to vector<8x256xf32>
    %591 = arith.mulf %589, %590 : vector<8x256xf32>
    %592 = tpu.concatenate %586, %588, %591 in 0 : vector<8x256xf32>, vector<8x256xf32>, vector<8x256xf32> -> vector<24x256xf32>
    %593 = arith.truncf %592 : vector<24x256xf32> to vector<24x256xbf16>
    %c0_277 = arith.constant 0 : index
    %c0_278 = arith.constant 0 : index
    %c0_279 = arith.constant 0 : index
    %594 = vector.load %arg21[%c0_277, %c0_278, %c0_279] : memref<3x16x24xbf16, #tpu.memory_space<vmem>>, vector<1x16x24xbf16>
    %595 = vector.shape_cast %594 : vector<1x16x24xbf16> to vector<16x24xbf16>
    %cst_280 = arith.constant dense<0.000000e+00> : vector<16x256xf32>
    %596 = tpu.matmul %595, %593, %cst_280 {dimension_numbers = #tpu.dot_dimension_numbers<[1], [0], [0], [1], [0, 0, 1, 1], [], []>} : vector<16x24xbf16>, vector<24x256xbf16>, vector<16x256xf32> -> vector<16x256xf32>
    %c1_i32_281 = arith.constant 1 : i32
    %597 = tpu.dynamic_rotate %267 by %c1_i32_281 dim 1 : vector<8x256xf32>, i32 -> vector<8x256xf32>
    %598 = vector.broadcast %24 : vector<1x256xf32> to vector<8x256xf32>
    %599 = arith.mulf %597, %598 : vector<8x256xf32>
    %c255_i32_282 = arith.constant 255 : i32
    %600 = tpu.dynamic_rotate %267 by %c255_i32_282 dim 1 : vector<8x256xf32>, i32 -> vector<8x256xf32>
    %601 = vector.broadcast %27 : vector<1x256xf32> to vector<8x256xf32>
    %602 = arith.mulf %600, %601 : vector<8x256xf32>
    %603 = tpu.concatenate %599, %267, %602 in 0 : vector<8x256xf32>, vector<8x256xf32>, vector<8x256xf32> -> vector<24x256xf32>
    %604 = arith.truncf %603 : vector<24x256xf32> to vector<24x256xbf16>
    %c1_283 = arith.constant 1 : index
    %c0_284 = arith.constant 0 : index
    %c0_285 = arith.constant 0 : index
    %605 = vector.load %arg21[%c1_283, %c0_284, %c0_285] : memref<3x16x24xbf16, #tpu.memory_space<vmem>>, vector<1x16x24xbf16>
    %606 = vector.shape_cast %605 : vector<1x16x24xbf16> to vector<16x24xbf16>
    %cst_286 = arith.constant dense<0.000000e+00> : vector<16x256xf32>
    %607 = tpu.matmul %606, %604, %cst_286 {dimension_numbers = #tpu.dot_dimension_numbers<[1], [0], [0], [1], [0, 0, 1, 1], [], []>} : vector<16x24xbf16>, vector<24x256xbf16>, vector<16x256xf32> -> vector<16x256xf32>
    %608 = arith.addf %596, %607 : vector<16x256xf32>
    %c240_i32_287 = arith.constant 240 : i32
    %609 = tpu.dynamic_rotate %267 by %c240_i32_287 dim 1 : vector<8x256xf32>, i32 -> vector<8x256xf32>
    %c1_i32_288 = arith.constant 1 : i32
    %610 = tpu.dynamic_rotate %609 by %c1_i32_288 dim 1 : vector<8x256xf32>, i32 -> vector<8x256xf32>
    %611 = vector.broadcast %31 : vector<1x256xf32> to vector<8x256xf32>
    %612 = arith.mulf %610, %611 : vector<8x256xf32>
    %613 = vector.broadcast %34 : vector<1x256xf32> to vector<8x256xf32>
    %614 = arith.mulf %609, %613 : vector<8x256xf32>
    %c255_i32_289 = arith.constant 255 : i32
    %615 = tpu.dynamic_rotate %609 by %c255_i32_289 dim 1 : vector<8x256xf32>, i32 -> vector<8x256xf32>
    %616 = vector.broadcast %38 : vector<1x256xf32> to vector<8x256xf32>
    %617 = arith.mulf %615, %616 : vector<8x256xf32>
    %618 = tpu.concatenate %612, %614, %617 in 0 : vector<8x256xf32>, vector<8x256xf32>, vector<8x256xf32> -> vector<24x256xf32>
    %619 = arith.truncf %618 : vector<24x256xf32> to vector<24x256xbf16>
    %c2_290 = arith.constant 2 : index
    %c0_291 = arith.constant 0 : index
    %c0_292 = arith.constant 0 : index
    %620 = vector.load %arg21[%c2_290, %c0_291, %c0_292] : memref<3x16x24xbf16, #tpu.memory_space<vmem>>, vector<1x16x24xbf16>
    %621 = vector.shape_cast %620 : vector<1x16x24xbf16> to vector<16x24xbf16>
    %cst_293 = arith.constant dense<0.000000e+00> : vector<16x256xf32>
    %622 = tpu.matmul %621, %619, %cst_293 {dimension_numbers = #tpu.dot_dimension_numbers<[1], [0], [0], [1], [0, 0, 1, 1], [], []>} : vector<16x24xbf16>, vector<24x256xbf16>, vector<16x256xf32> -> vector<16x256xf32>
    %623 = arith.addf %608, %622 : vector<16x256xf32>
    %c0_294 = arith.constant 0 : index
    %c0_295 = arith.constant 0 : index
    %624 = vector.load %arg24[%c0_294, %c0_295] : memref<16x8xbf16, #tpu.memory_space<vmem>>, vector<16x8xbf16>
    %625 = vector.extract_strided_slice %623 {offsets = [0, 0], sizes = [16, 16], strides = [1, 1]} : vector<16x256xf32> to vector<16x16xf32>
    %626 = arith.truncf %625 : vector<16x16xf32> to vector<16x16xbf16>
    %cst_296 = arith.constant dense<0.000000e+00> : vector<16x8xf32>
    %627 = tpu.matmul %626, %624, %cst_296 {dimension_numbers = #tpu.dot_dimension_numbers<[1], [0], [0], [1], [0, 0, 1, 1], [], []>} : vector<16x16xbf16>, vector<16x8xbf16>, vector<16x8xf32> -> vector<16x8xf32>
    %628 = vector.extract_strided_slice %623 {offsets = [0, 32], sizes = [16, 16], strides = [1, 1]} : vector<16x256xf32> to vector<16x16xf32>
    %629 = arith.truncf %628 : vector<16x16xf32> to vector<16x16xbf16>
    %cst_297 = arith.constant dense<0.000000e+00> : vector<16x8xf32>
    %630 = tpu.matmul %629, %624, %cst_297 {dimension_numbers = #tpu.dot_dimension_numbers<[1], [0], [0], [1], [0, 0, 1, 1], [], []>} : vector<16x16xbf16>, vector<16x8xbf16>, vector<16x8xf32> -> vector<16x8xf32>
    %631 = vector.extract_strided_slice %623 {offsets = [0, 64], sizes = [16, 16], strides = [1, 1]} : vector<16x256xf32> to vector<16x16xf32>
    %632 = arith.truncf %631 : vector<16x16xf32> to vector<16x16xbf16>
    %cst_298 = arith.constant dense<0.000000e+00> : vector<16x8xf32>
    %633 = tpu.matmul %632, %624, %cst_298 {dimension_numbers = #tpu.dot_dimension_numbers<[1], [0], [0], [1], [0, 0, 1, 1], [], []>} : vector<16x16xbf16>, vector<16x8xbf16>, vector<16x8xf32> -> vector<16x8xf32>
    %634 = vector.extract_strided_slice %623 {offsets = [0, 96], sizes = [16, 16], strides = [1, 1]} : vector<16x256xf32> to vector<16x16xf32>
    %635 = arith.truncf %634 : vector<16x16xf32> to vector<16x16xbf16>
    %cst_299 = arith.constant dense<0.000000e+00> : vector<16x8xf32>
    %636 = tpu.matmul %635, %624, %cst_299 {dimension_numbers = #tpu.dot_dimension_numbers<[1], [0], [0], [1], [0, 0, 1, 1], [], []>} : vector<16x16xbf16>, vector<16x8xbf16>, vector<16x8xf32> -> vector<16x8xf32>
    %637 = vector.extract_strided_slice %623 {offsets = [0, 128], sizes = [16, 16], strides = [1, 1]} : vector<16x256xf32> to vector<16x16xf32>
    %638 = arith.truncf %637 : vector<16x16xf32> to vector<16x16xbf16>
    %cst_300 = arith.constant dense<0.000000e+00> : vector<16x8xf32>
    %639 = tpu.matmul %638, %624, %cst_300 {dimension_numbers = #tpu.dot_dimension_numbers<[1], [0], [0], [1], [0, 0, 1, 1], [], []>} : vector<16x16xbf16>, vector<16x8xbf16>, vector<16x8xf32> -> vector<16x8xf32>
    %640 = vector.extract_strided_slice %623 {offsets = [0, 160], sizes = [16, 16], strides = [1, 1]} : vector<16x256xf32> to vector<16x16xf32>
    %641 = arith.truncf %640 : vector<16x16xf32> to vector<16x16xbf16>
    %cst_301 = arith.constant dense<0.000000e+00> : vector<16x8xf32>
    %642 = tpu.matmul %641, %624, %cst_301 {dimension_numbers = #tpu.dot_dimension_numbers<[1], [0], [0], [1], [0, 0, 1, 1], [], []>} : vector<16x16xbf16>, vector<16x8xbf16>, vector<16x8xf32> -> vector<16x8xf32>
    %643 = vector.extract_strided_slice %623 {offsets = [0, 192], sizes = [16, 16], strides = [1, 1]} : vector<16x256xf32> to vector<16x16xf32>
    %644 = arith.truncf %643 : vector<16x16xf32> to vector<16x16xbf16>
    %cst_302 = arith.constant dense<0.000000e+00> : vector<16x8xf32>
    %645 = tpu.matmul %644, %624, %cst_302 {dimension_numbers = #tpu.dot_dimension_numbers<[1], [0], [0], [1], [0, 0, 1, 1], [], []>} : vector<16x16xbf16>, vector<16x8xbf16>, vector<16x8xf32> -> vector<16x8xf32>
    %646 = vector.extract_strided_slice %623 {offsets = [0, 224], sizes = [16, 16], strides = [1, 1]} : vector<16x256xf32> to vector<16x16xf32>
    %647 = arith.truncf %646 : vector<16x16xf32> to vector<16x16xbf16>
    %cst_303 = arith.constant dense<0.000000e+00> : vector<16x8xf32>
    %648 = tpu.matmul %647, %624, %cst_303 {dimension_numbers = #tpu.dot_dimension_numbers<[1], [0], [0], [1], [0, 0, 1, 1], [], []>} : vector<16x16xbf16>, vector<16x8xbf16>, vector<16x8xf32> -> vector<16x8xf32>
    %649 = tpu.concatenate %627, %630, %633, %636, %639, %642, %645, %648 in 1 : vector<16x8xf32>, vector<16x8xf32>, vector<16x8xf32>, vector<16x8xf32>, vector<16x8xf32>, vector<16x8xf32>, vector<16x8xf32>, vector<16x8xf32> -> vector<16x64xf32>
    %c0_304 = arith.constant 0 : index
    %c0_305 = arith.constant 0 : index
    %650 = vector.load %arg22[%c0_304, %c0_305] : memref<16x1xf32, #tpu.memory_space<vmem>>, vector<16x1xf32>
    %651 = vector.broadcast %650 : vector<16x1xf32> to vector<16x64xf32>
    %652 = arith.addf %649, %651 : vector<16x64xf32>
    %653 = arith.addf %453, %652 : vector<16x64xf32>
    %cst_306 = arith.constant 0.000000e+00 : f32
    %654 = vector.broadcast %cst_306 : f32 to vector<16x64xf32>
    %655 = arith.maximumf %653, %654 : vector<16x64xf32>
    %c0_307 = arith.constant 0 : index
    %c0_308 = arith.constant 0 : index
    %c0_309 = arith.constant 0 : index
    %656 = vector.load %arg26[%c0_307, %c0_308, %c0_309] : memref<1x16x64xf32, #tpu.memory_space<vmem>>, vector<1x16x64xf32>
    %657 = vector.shape_cast %656 : vector<1x16x64xf32> to vector<16x64xf32>
    %658 = vector.shape_cast %655 : vector<16x64xf32> to vector<1x16x64xf32>
    tpu.vector_store %arg26[%c0_307, %c0_308, %c0_309], %658 {strides = array<i32>} : memref<1x16x64xf32, #tpu.memory_space<vmem>>, vector<1x16x64xf32>,
    return
  }
  func.func @transform_0(%arg0: i32) -> (i32, i32, i32) {
    %c0_i32 = arith.constant 0 : i32
    %c0_i32_0 = arith.constant 0 : i32
    %c0_i32_1 = arith.constant 0 : i32
    return %arg0, %c0_i32, %c0_i32_0 : i32, i32, i32
  }
  func.func @transform_1(%arg0: i32) -> (i32, i32, i32) {
    %c0_i32 = arith.constant 0 : i32
    %c0_i32_0 = arith.constant 0 : i32
    %c0_i32_1 = arith.constant 0 : i32
    return %arg0, %c0_i32, %c0_i32_0 : i32, i32, i32
  }
  func.func @transform_2(%arg0: i32) -> (i32, i32, i32) {
    %c0_i32 = arith.constant 0 : i32
    %c0_i32_0 = arith.constant 0 : i32
    %c0_i32_1 = arith.constant 0 : i32
    %c0_i32_2 = arith.constant 0 : i32
    return %c0_i32, %c0_i32_0, %c0_i32_1 : i32, i32, i32
  }
  func.func @transform_3(%arg0: i32) -> (i32, i32) {
    %c0_i32 = arith.constant 0 : i32
    %c0_i32_0 = arith.constant 0 : i32
    %c0_i32_1 = arith.constant 0 : i32
    return %c0_i32, %c0_i32_0 : i32, i32
  }
  func.func @transform_4(%arg0: i32) -> (i32, i32, i32) {
    %c0_i32 = arith.constant 0 : i32
    %c0_i32_0 = arith.constant 0 : i32
    %c0_i32_1 = arith.constant 0 : i32
    %c0_i32_2 = arith.constant 0 : i32
    return %c0_i32, %c0_i32_0, %c0_i32_1 : i32, i32, i32
  }
  func.func @transform_5(%arg0: i32) -> (i32, i32) {
    %c0_i32 = arith.constant 0 : i32
    %c0_i32_0 = arith.constant 0 : i32
    %c0_i32_1 = arith.constant 0 : i32
    return %c0_i32, %c0_i32_0 : i32, i32
  }
  func.func @transform_6(%arg0: i32) -> (i32, i32, i32) {
    %c0_i32 = arith.constant 0 : i32
    %c0_i32_0 = arith.constant 0 : i32
    %c0_i32_1 = arith.constant 0 : i32
    %c0_i32_2 = arith.constant 0 : i32
    return %c0_i32, %c0_i32_0, %c0_i32_1 : i32, i32, i32
  }
  func.func @transform_7(%arg0: i32) -> (i32, i32) {
    %c0_i32 = arith.constant 0 : i32
    %c0_i32_0 = arith.constant 0 : i32
    %c0_i32_1 = arith.constant 0 : i32
    return %c0_i32, %c0_i32_0 : i32, i32
  }
  func.func @transform_8(%arg0: i32) -> (i32, i32, i32) {
    %c0_i32 = arith.constant 0 : i32
    %c0_i32_0 = arith.constant 0 : i32
    %c0_i32_1 = arith.constant 0 : i32
    %c0_i32_2 = arith.constant 0 : i32
    return %c0_i32, %c0_i32_0, %c0_i32_1 : i32, i32, i32
  }
  func.func @transform_9(%arg0: i32) -> (i32, i32) {
    %c0_i32 = arith.constant 0 : i32
    %c0_i32_0 = arith.constant 0 : i32
    %c0_i32_1 = arith.constant 0 : i32
    return %c0_i32, %c0_i32_0 : i32, i32
  }
  func.func @transform_10(%arg0: i32) -> (i32, i32, i32) {
    %c0_i32 = arith.constant 0 : i32
    %c0_i32_0 = arith.constant 0 : i32
    %c0_i32_1 = arith.constant 0 : i32
    %c0_i32_2 = arith.constant 0 : i32
    return %c0_i32, %c0_i32_0, %c0_i32_1 : i32, i32, i32
  }
  func.func @transform_11(%arg0: i32) -> (i32, i32) {
    %c0_i32 = arith.constant 0 : i32
    %c0_i32_0 = arith.constant 0 : i32
    %c0_i32_1 = arith.constant 0 : i32
    return %c0_i32, %c0_i32_0 : i32, i32
  }
  func.func @transform_12(%arg0: i32) -> (i32, i32, i32) {
    %c0_i32 = arith.constant 0 : i32
    %c0_i32_0 = arith.constant 0 : i32
    %c0_i32_1 = arith.constant 0 : i32
    %c0_i32_2 = arith.constant 0 : i32
    return %c0_i32, %c0_i32_0, %c0_i32_1 : i32, i32, i32
  }
  func.func @transform_13(%arg0: i32) -> (i32, i32) {
    %c0_i32 = arith.constant 0 : i32
    %c0_i32_0 = arith.constant 0 : i32
    %c0_i32_1 = arith.constant 0 : i32
    return %c0_i32, %c0_i32_0 : i32, i32
  }
  func.func @transform_14(%arg0: i32) -> (i32, i32, i32) {
    %c0_i32 = arith.constant 0 : i32
    %c0_i32_0 = arith.constant 0 : i32
    %c0_i32_1 = arith.constant 0 : i32
    %c0_i32_2 = arith.constant 0 : i32
    return %c0_i32, %c0_i32_0, %c0_i32_1 : i32, i32, i32
  }
  func.func @transform_15(%arg0: i32) -> (i32, i32) {
    %c0_i32 = arith.constant 0 : i32
    %c0_i32_0 = arith.constant 0 : i32
    %c0_i32_1 = arith.constant 0 : i32
    return %c0_i32, %c0_i32_0 : i32, i32
  }
  func.func @transform_16(%arg0: i32) -> (i32, i32, i32) {
    %c0_i32 = arith.constant 0 : i32
    %c0_i32_0 = arith.constant 0 : i32
    %c0_i32_1 = arith.constant 0 : i32
    %c0_i32_2 = arith.constant 0 : i32
    return %c0_i32, %c0_i32_0, %c0_i32_1 : i32, i32, i32
  }
  func.func @transform_17(%arg0: i32) -> (i32, i32) {
    %c0_i32 = arith.constant 0 : i32
    %c0_i32_0 = arith.constant 0 : i32
    %c0_i32_1 = arith.constant 0 : i32
    return %c0_i32, %c0_i32_0 : i32, i32
  }
  func.func @transform_18(%arg0: i32) -> (i32, i32) {
    %c0_i32 = arith.constant 0 : i32
    %c0_i32_0 = arith.constant 0 : i32
    %c0_i32_1 = arith.constant 0 : i32
    return %c0_i32, %c0_i32_0 : i32, i32
  }
  func.func @transform_19(%arg0: i32) -> (i32, i32) {
    %c0_i32 = arith.constant 0 : i32
    %c0_i32_0 = arith.constant 0 : i32
    %c0_i32_1 = arith.constant 0 : i32
    return %c0_i32, %c0_i32_0 : i32, i32
  }
  func.func @transform_20(%arg0: i32) -> (i32, i32, i32) {
    %c0_i32 = arith.constant 0 : i32
    %c0_i32_0 = arith.constant 0 : i32
    %c0_i32_1 = arith.constant 0 : i32
    %c0_i32_2 = arith.constant 0 : i32
    return %c0_i32, %c0_i32_0, %c0_i32_1 : i32, i32, i32
  }
  func.func @transform_21(%arg0: i32) -> (i32, i32) {
    %c0_i32 = arith.constant 0 : i32
    %c0_i32_0 = arith.constant 0 : i32
    %c0_i32_1 = arith.constant 0 : i32
    return %c0_i32, %c0_i32_0 : i32, i32
  }
  func.func @transform_22(%arg0: i32) -> (i32, i32) {
    %c0_i32 = arith.constant 0 : i32
    %c0_i32_0 = arith.constant 0 : i32
    %c0_i32_1 = arith.constant 0 : i32
    return %c0_i32, %c0_i32_0 : i32, i32
  }
  func.func @transform_23(%arg0: i32) -> (i32, i32) {
    %c0_i32 = arith.constant 0 : i32
    %c0_i32_0 = arith.constant 0 : i32
    %c0_i32_1 = arith.constant 0 : i32
    return %c0_i32, %c0_i32_0 : i32, i32
  }
  func.func @transform_24(%arg0: i32) -> (i32, i32, i32) {
    %c0_i32 = arith.constant 0 : i32
    %c0_i32_0 = arith.constant 0 : i32
    %c0_i32_1 = arith.constant 0 : i32
    return %arg0, %c0_i32, %c0_i32_0 : i32, i32, i32
  }
  func.func @transform_25(%arg0: i32) -> (i32, i32, i32) {
    %c0_i32 = arith.constant 0 : i32
    %c0_i32_0 = arith.constant 0 : i32
    %c0_i32_1 = arith.constant 0 : i32
    return %arg0, %c0_i32, %c0_i32_0 : i32, i32, i32
  }
}

</mosaic_0001>

<bundles_post_ra>
// kernel: hrm_forward_nchw.1
= control target key start
LH: loop header
LB: loop body
LE: loop exit
PB: predicated region body
PF: predicated region fallthrough
CT: control target
= control target key end

     0   :  { %s5751_s29 = smov 0   ;;  %s7200_s0 = inlined_call_operand.vmem [shape: f32[2,8,256], index: 0, kind: input, shape index: {}]   ;;  %s7201_s1 = inlined_call_operand.vmem [shape: f32[2,16,64], index: 1, kind: input, shape index: {}]   ;;  %s7202_s2 = inlined_call_operand.vmem [shape: bf16[3,8,24], index: 2, kind: input, shape index: {}]   ;;  %s7203_s3 = inlined_call_operand.vmem [shape: f32[8,1], index: 3, kind: input, shape index: {}]   ;;  %s7204_s4 = inlined_call_operand.vmem [shape: bf16[3,8,24], index: 4, kind: input, shape index: {}]   ;;  %s7205_s5 = inlined_call_operand.vmem [shape: f32[8,1], index: 5, kind: input, shape index: {}]   ;;  %s7206_s6 = inlined_call_operand.vmem [shape: bf16[3,8,24], index: 6, kind: input, shape index: {}]   ;;  %s7207_s7 = inlined_call_operand.vmem [shape: f32[8,1], index: 7, kind: input, shape index: {}]   ;;  %s7208_s8 = inlined_call_operand.vmem [shape: bf16[3,8,24], index: 8, kind: input, shape index: {}]   ;;  %s7209_s9 = inlined_call_operand.vmem [shape: f32[8,1], index: 9, kind: input, shape index: {}]   ;;  %s7210_s10 = inlined_call_operand.vmem [shape: bf16[3,16,48], index: 10, kind: input, shape index: {}]   ;;  %s7211_s11 = inlined_call_operand.vmem [shape: f32[16,1], index: 11, kind: input, shape index: {}]   ;;  %s7212_s12 = inlined_call_operand.vmem [shape: bf16[3,16,48], index: 12, kind: input, shape index: {}]   ;;  %s7213_s13 = inlined_call_operand.vmem [shape: f32[16,1], index: 13, kind: input, shape index: {}]   ;;  %s7214_s14 = inlined_call_operand.vmem [shape: bf16[3,16,48], index: 14, kind: input, shape index: {}]   ;;  %s7215_s15 = inlined_call_operand.vmem [shape: f32[16,1], index: 15, kind: input, shape index: {}]   ;;  %s7216_s16 = inlined_call_operand.vmem [shape: bf16[3,16,48], index: 16, kind: input, shape index: {}]   ;;  %s7217_s17 = inlined_call_operand.vmem [shape: f32[16,1], index: 17, kind: input, shape index: {}]   ;;  %s7218_s18 = inlined_call_operand.vmem [shape: bf16[8,16], index: 18, kind: input, shape index: {}]   ;;  %s7219_s19 = inlined_call_operand.vmem [shape: f32[8,1], index: 19, kind: input, shape index: {}]   ;;  %s7220_s20 = inlined_call_operand.vmem [shape: bf16[3,16,24], index: 20, kind: input, shape index: {}]   ;;  %s7221_s21 = inlined_call_operand.vmem [shape: f32[16,1], index: 21, kind: input, shape index: {}]   ;;  %s7222_s22 = inlined_call_operand.vmem [shape: bf16[8,16], index: 22, kind: input, shape index: {}]   ;;  %s7223_s23 = inlined_call_operand.vmem [shape: bf16[16,8], index: 23, kind: input, shape index: {}]   ;;  %s7224_s24 = inlined_call_operand.vmem [shape: f32[2,8,256], index: 24, kind: output, shape index: {0}]   ;;  %s7225_s25 = inlined_call_operand.vmem [shape: f32[2,16,64], index: 25, kind: output, shape index: {1}]  }
   0x1   :  { %7261 = sst [smem:[#allocation2_spill]] %s7200_s0 }
   0x2   :  { %7262 = sst [smem:[#allocation3_spill]] %s7201_s1 }
   0x3   :  { %7263 = sst [smem:[#allocation4_spill]] %s7202_s2 }
   0x4   :  { %7264 = sst [smem:[#allocation5_spill]] %s7203_s3 }
   0x5   :  { %7265 = sst [smem:[#allocation6_spill]] %s7204_s4 }
   0x6   :  { %7266 = sst [smem:[#allocation7_spill]] %s7205_s5 }
   0x7   :  { %7267 = sst [smem:[#allocation8_spill]] %s7206_s6 }
   0x8   :  { %7268 = sst [smem:[#allocation9_spill]] %s7207_s7 }
   0x9   :  { %7269 = sst [smem:[#allocation10_spill]] %s7208_s8 }
   0xa   :  { %7270 = sst [smem:[#allocation11_spill]] %s7209_s9 }
   0xb   :  { %7271 = sst [smem:[#allocation12_spill]] %s7210_s10 }
   0xc   :  { %7272 = sst [smem:[#allocation13_spill]] %s7211_s11 }
   0xd LB: > { %s4904_s2 = sadd.s32 4294967295, %s5594_s29   ;;  %p4908_p0 = scmp.ge.s32.totalorder %s5594_s29, 1  ;;  %s5594_s29 = sphi %s5751_s29, %s36_s29  }
   0xe   : > { %p700_p1 = scmp.lt.s32.totalorder %s5594_s29, 3 }
  0x10   : > { %p701_p2 = pnand %p4908_p0, %p700_p1 }
  0x11   : > { %p778_p3 = scmp.lt.s32.totalorder (!%p701_p2), %s4904_s2, 1  ;;  %s7273_s3 = sld [smem:[#allocation2_spill]] (!%p701_p2)  ;;  %v799_v2 = vlaneseq (!%p701_p2)  ;;  %v5600_v9 = vmov (!%p701_p2), 0   ;;  %v5601_v16 = vmov (!%p701_p2), 0.0   ;;  %vm915_vm8 = vcmask (!%p701_p2), 1043456  }
  0x12   : > { %704 = sbr.rel (%p701_p2) target bundleno = 6578 (0x19b2), region = 116  ;;  %s7236_s1 = smov (!%p701_p2), 112   ;;  %954 = vmatprep.mubr.bf16.mxu0 (!%p701_p2), %v5600_v9  ;;  %1004 = vmatprep.mubr.bf16.mxu1 (!%p701_p2), %v5600_v9  ;;  %vm911_vm9 = vcmask (!%p701_p2), 195584  }
  0x13   : > { %s7238_s8 = smov (!%p701_p2), 16   ;;  %s7242_s27 = smov (!%p701_p2), 1   ;;  %v5785_v3 = vand.u32 (!%p701_p2), 127, %v799_v2  ;;  %5443 = vset.pattern.permute.xlu0 (!%p701_p2), %v5600_v9  ;;  %5444 = vset.pattern.permute.xlu1 (!%p701_p2), %v5600_v9 }
  0x14   : > { %s7240_s4 = smov (!%p701_p2), 127   ;;  %s7282_s5 = sld [smem:[#allocation5_spill]] (!%p701_p2) }
  0x15   : > { %v5788_v4 = vadd.s32 (!%p701_p2), 128, %v5785_v3  ;;  %v802_v8 = vand.u32 (!%p701_p2), 15, %v5785_v3  ;;  %vm861_vm0 = vcmp.lt.s32.totalorder (!%p701_p2), %v5785_v3, 16  ;;  %vm868_vm3 = vcmp.lt.s32.totalorder (!%p701_p2), %v5785_v3, 1  ;;  %s7283_s30 = sld [smem:[#allocation4_spill]] (!%p701_p2)  ;;  %s7284_s0 = sld [smem:[#allocation7_spill]] (!%p701_p2) }
  0x16   : > { %vm1017_vm4 = vcmp.lt.s32.totalorder (!%p701_p2), %v5785_v3, 112  ;;  %vm879_vm7 = vcmp.lt.s32.totalorder (!%p701_p2), %v5785_v3, 127  ;;  %vm804_vm10 = vcmp.ge.s32.totalorder (!%p701_p2), %v5785_v3, 16  ;;  %s7286_s7 = sld [smem:[#allocation3_spill]] (!%p701_p2)  ;;  %s7256_s28 = smov (!%p701_p2), 64  }
  0x17   : > { %v803_v7 = vand.u32 (!%p701_p2), 15, %v5788_v4  ;;  %vm5801_vm2 = vcmp.ge.s32.totalorder (!%p701_p2), %v802_v8, 1  ;;  %vm5830_vm6 = vcmp.le.s32.totalorder (!%p701_p2), %v802_v8, 14  ;;  %vm807_vm12 = vcmp.lt.s32.totalorder (!%p701_p2), %v5788_v4, 240  ;;  %s7234_s9 = smov (!%p701_p2), 8   ;;  %s7293_s11 = sld [smem:[#allocation13_spill]] (!%p701_p2) }
  0x18   : > { %v5824_v18 = vsel (!%p701_p2), %vm5801_vm2, 1.0, %v5601_v16  ;;  %v5858_v30 = vsel (!%p701_p2), %vm5830_vm6, 1.0, %v5601_v16  ;;  %vm812_vm11 = vmand (!%p701_p2), %vm804_vm10, %vm5801_vm2  ;;  %v5896_v45 = vsel (!%p701_p2), %vm804_vm10, 1.0, %v5601_v16  ;;  %v5912_v53 = vsel (!%p701_p2), %vm807_vm12, 1.0, %v5601_v16  ;;  %s7295_s10 = sld [smem:[#allocation12_spill]] (!%p701_p2) }
  0x19   : > { %s7312_s2 = smov (!%p778_p3, %s4904_s2), 1  ;;  %vm5797_vm1 = vcmp.ge.s32.totalorder %v803_v7, 1  ;;  %vm5826_vm5 = vcmp.le.s32.totalorder %v803_v7, 14  ;;  %v5891_v44 = vsel %vm812_vm11, 1.0, %v5601_v16  ;;  %vm818_vm14 = vmand %vm804_vm10, %vm5830_vm6  ;;  %vm838_vm6 = vcmp.lt.s32.totalorder %v5785_v3, 56 }
  0x1a   : > { %s5759_s6 = sshll.u32 %s7312_s2, 4  ;;  %v5819_v17 = vsel %vm5797_vm1, 1.0, %v5601_v16  ;;  %v5853_v29 = vsel %vm5826_vm5, 1.0, %v5601_v16  ;;  %v1096_v42 = vld [vmem:[%s7282_s5] sm:$0xff]  ;;  %vm827_vm13 = vmand %vm807_vm12, %vm5797_vm1  ;;  %v5930_v2 = vsel %vm818_vm14, 1.0, %v5601_v16  ;;  %vm1839_vm1 = vcmask 1048064  }
  0x1b   : > { %s782_s26 = scalar_lea.vmem %s7273_s3, %s5759_s6  ;;  %v4917_v43 = vld [vmem:[%s7283_s30 + $0x4] sm:$0xf]  ;;  %v5915_v54 = vsel %vm827_vm13, 1.0, %v5601_v16  ;;  %vm833_vm15 = vmand %vm807_vm12, %vm5826_vm5  ;;  %s7285_s3 = sld [smem:[#allocation6_spill]]  ;;  %vm837_vm5 = vcmp.ge.s32.totalorder %v5785_v3, 8 }
  0x1c   : > { %v5765_v0 = vld [vmem:[%s782_s26] sm:$0xff]  ;;  %v5771_v1 = vld [vmem:[%s782_s26 + $0x8] sm:$0xff]  ;;  %s6103_s26 = scalar_lea.vmem %s7286_s7, %s5759_s6  ;;  %s7254_s2 = smov 72  }
  0x1d   : > { %1013 = vrot.lane.b32.xlu1 %v5765_v0, %s7236_s1  ;;  %857 = vrot.lane.b32.xlu0 %v5765_v0, %s7238_s8  ;;  %s7230_s7 = smov 120   ;;  %s7252_s5 = smov 63  }
  0x21   : > { %1015 = vrot.lane.b32.xlu1 %v5771_v1, %s7236_s1  ;;  %859 = vrot.lane.b32.xlu0 %v5771_v1, %s7238_s8 }
  0x25   : > { %891 = vrot.lane.b32.xlu1 %v5771_v1, %s7242_s27  ;;  %889 = vrot.lane.b32.xlu0 %v5765_v0, %s7242_s27 }
  0x29   : > { %899 = vrot.lane.b32.xlu1 %v5771_v1, %s7240_s4  ;;  %897 = vrot.lane.b32.xlu0 %v5765_v0, %s7240_s4 }
  0x8f   : > { %v1014_v5 = vpop.permute.xlu1 %1013  ;;  %v858_v6 = vpop.permute.xlu0 %857 }
  0x93   : > { %v1016_v10 = vpop.permute.xlu1 %1015  ;;  %v860_v11 = vpop.permute.xlu0 %859 }
  0x94   : > { %v863_v14 = vsel %vm861_vm0, %v860_v11, %v858_v6  ;;  %v5809_v15 = vsel %vm861_vm0, %v858_v6, %v860_v11  ;;  %v5836_v23 = vsel %vm1017_vm4, %v1014_v5, %v1016_v10  ;;  %v1019_v24 = vsel %vm1017_vm4, %v1016_v10, %v1014_v5 }
  0x95   : > { %864 = vrot.lane.b32.xlu0 %v863_v14, %s7242_s27  ;;  %866 = vrot.lane.b32.xlu1 %v5809_v15, %s7242_s27  ;;  %v873_v52 = vmul.f32 %v863_v14, %v5896_v45  ;;  %v1029_v61 = vmul.f32 %v1019_v24, %v5912_v53 }
  0x97   : > { %v892_v20 = vpop.permute.xlu1 %891  ;;  %v890_v21 = vpop.permute.xlu0 %889 }
  0x98   : > { %v894_v25 = vsel %vm868_vm3, %v892_v20, %v890_v21  ;;  %v893_v26 = vsel %vm868_vm3, %v890_v21, %v892_v20 }
  0x99   : > { %1020 = vrot.lane.b32.xlu0 %v5836_v23, %s7242_s27  ;;  %1022 = vrot.lane.b32.xlu1 %v1019_v24, %s7242_s27  ;;  %v896_v27 = vmul.f32 %v893_v26, %v5819_v17  ;;  %v895_v28 = vmul.f32 %v894_v25, %v5824_v18  ;;  %v888_v26 = vld [vmem:[%s7283_s30] sm:$0xf] }
  0x9b   : > { %v900_v31 = vpop.permute.xlu1 %899  ;;  %v898_v32 = vpop.permute.xlu0 %897  ;;  %v906_v33 = vpack.c.bf16 %v5771_v1, %v896_v27  ;;  %v905_v34 = vpack.c.bf16 %v5765_v0, %v895_v28 }
  0x9c   : > { %v901_v35 = vsel %vm879_vm7, %v898_v32, %v900_v31  ;;  %v902_v36 = vsel %vm879_vm7, %v900_v31, %v898_v32  ;;  %v4922_v32 = vld [vmem:[%s7283_s30 + $0x8] sm:$0xf] }
  0x9d   : > { %875 = vrot.lane.b32.xlu0 %v863_v14, %s7240_s4  ;;  %877 = vrot.lane.b32.xlu1 %v5809_v15, %s7240_s4  ;;  %v904_v37 = vmul.f32 %v902_v36, %v5853_v29  ;;  %v903_v38 = vmul.f32 %v901_v35, %v5858_v30  ;;  %v5944_v14 = vsel %vm833_vm15, 1.0, %v5601_v16  ;;  %vm5612_vm15 = vmmov 0  }
  0x9e   : > { %922 = vmatprep.subr.bf16.mxu0 %v906_v33 }
  0x9f   : > { %v908_v39 = vpack.c.bf16 %v904_v37, %v904_v37  ;;  %923 = vmatpush1.bf16.msra.mxu0 %v905_v34  ;;  %v907_v40 = vpack.c.bf16 %v903_v38, %v903_v38 }
  0xa1   : > { %1030 = vrot.lane.b32.xlu0 %v5836_v23, %s7240_s4  ;;  %1032 = vrot.lane.b32.xlu1 %v1019_v24, %s7240_s4  ;;  %v917_v41 = vsel %vm915_vm8, %v907_v40, 0 }
  0xa2   : > { %4918 = vmatprep.subr.msk.bf16.mxu0 %vm915_vm8, %v908_v39 }
  0xa3   : > { %925 = vmatpush1.bf16.msra.mxu0 %v917_v41 }
  0xa5   : > { %1099 = vperm.xlu0 %5443, %v1096_v42  }
  0xa6   : > { %4919 = vmatmul.mubr.msk.bf16.vlgmr.msra.gmra.mrb[0].mxu0 %vm911_vm9, %v4917_v43 }
  0xa7   : > { %1085 = vmatprep.mubr.bf16.mxu0 %v5600_v9 }
 0x107   : > { %v867_v46 = vpop.permute.xlu1 %866  ;;  %v865_v47 = vpop.permute.xlu0 %864 }
 0x108   : > { %v870_v48 = vsel %vm868_vm3, %v867_v46, %v865_v47  ;;  %v869_v49 = vsel %vm868_vm3, %v865_v47, %v867_v46 }
 0x109   : > { %v872_v50 = vmul.f32 %v869_v49, %v5819_v17  ;;  %v871_v51 = vmul.f32 %v870_v48, %v5891_v44 }
 0x10b   : > { %v1023_v55 = vpop.permute.xlu1 %1022  ;;  %v1021_v56 = vpop.permute.xlu0 %1020  ;;  %v885_v57 = vpack.c.bf16 %v5809_v15, %v872_v50  ;;  %v884_v58 = vpack.c.bf16 %v873_v52, %v871_v51 }
 0x10c   : > { %v1024_v59 = vsel %vm868_vm3, %v1021_v56, %v1023_v55  ;;  %v1025_v60 = vsel %vm868_vm3, %v1023_v55, %v1021_v56 }
 0x10d   : > { %v1026_v62 = vmul.f32 %v1025_v60, %v5824_v18  ;;  %v1027_v63 = vmul.f32 %v1024_v59, %v5915_v54  ;;  %972 = vmatprep.subr.bf16.mxu1 %v885_v57 }
 0x10e   : > { %973 = vmatpush1.bf16.msra.mxu1 %v884_v58 }
 0x10f   : > { %v1038_v5 = vpack.c.bf16 %v5836_v23, %v1026_v62  ;;  %v878_v6 = vpop.permute.xlu1 %877  ;;  %v876_v7 = vpop.permute.xlu0 %875  ;;  %v1039_v8 = vpack.c.bf16 %v1029_v61, %v1027_v63 }
 0x110   : > { %v880_v10 = vsel %vm879_vm7, %v876_v7, %v878_v6  ;;  %v881_v11 = vsel %vm879_vm7, %v878_v6, %v876_v7 }
 0x111   : > { %v883_v12 = vmul.f32 %v881_v11, %v5853_v29  ;;  %1053 = vmatprep.subr.bf16.mxu0 %v1039_v8  ;;  %v882_v13 = vmul.f32 %v880_v10, %v5930_v2 }
 0x112   : > { %1054 = vmatpush1.bf16.msra.mxu0 %v1038_v5 }
 0x113   : > { %v887_v15 = vpack.c.bf16 %v883_v12, %v883_v12  ;;  %v1033_v19 = vpop.permute.xlu1 %1032  ;;  %v1031_v20 = vpop.permute.xlu0 %1030  ;;  %v886_v4 = vpack.c.bf16 %v882_v13, %v882_v13 }
 0x114   : > { %v1034_v21 = vsel %vm879_vm7, %v1031_v20, %v1033_v19  ;;  %v1035_v22 = vsel %vm879_vm7, %v1033_v19, %v1031_v20 }
 0x115   : > { %v1036_v23 = vmul.f32 %v1034_v21, %v5858_v30  ;;  %v1037_v24 = vmul.f32 %v1035_v22, %v5944_v14  ;;  %4920 = vmatprep.subr.msk.bf16.mxu1 %vm915_vm8, %v887_v15  ;;  %v967_v25 = vsel %vm915_vm8, %v886_v4, 0 }
 0x116   : > { %975 = vmatpush1.bf16.msra.mxu1 %v967_v25  ;;  %v1339_v25 = vld [vmem:[%s7284_s0] sm:$0xff]  ;;  %s7287_s0 = sld [smem:[#allocation8_spill]] }
 0x117   : > { %v1040_v27 = vpack.c.bf16 %v1036_v23, %v1036_v23  ;;  %v1041_v28 = vpack.c.bf16 %v1037_v24, %v1037_v24 }
 0x119   : > { %4921 = vmatmul.mubr.msk.bf16.vlgmr.msra.gmra.mrb[0].mxu1 %vm911_vm9, %v888_v26  ;;  %4923 = vmatprep.subr.msk.bf16.mxu0 %vm915_vm8, %v1041_v28  ;;  %v1048_v31 = vsel %vm915_vm8, %v1040_v27, 0 }
 0x11a   : > { %1056 = vmatpush1.bf16.msra.mxu0 %v1048_v31  ;;  %1198 = vmatprep.mubr.bf16.mxu1 %v5600_v9  ;;  %v4925_v31 = vld [vmem:[%s7285_s3 + $0x4] sm:$0xf] }
 0x11d   : > { %4924 = vmatmul.mubr.msk.bf16.vlgmr.msra.gmra.mrb[4].mxu0 %vm911_vm9, %v4922_v32 }
 0x11e   : > { %1248 = vmatprep.mubr.bf16.mxu0 %v5600_v9 }
 0x124   : > { %v1100_v46 = vpop.permute.xlu0 %1099 }
 0x179   : > { %v956_v33 = vpop.f32.mrb[0].mxu0 }
 0x17a   : > { %v958_v34 = vpop.f32.mrb[1].mxu0 }
 0x17b   : > { %v960_v35 = vpop.f32.mrb[2].mxu0 }
 0x17c   : > { %v961_v36 = vpop.f32.mrb[3].mxu0 }
 0x1ec   : > { %v1006_v37 = vpop.f32.mrb[0].mxu1 }
 0x1ed   : > { %v1007_v38 = vadd.f32 %v1006_v37, %v956_v33  ;;  %v1008_v39 = vpop.f32.mrb[1].mxu1 }
 0x1ee   : > { %v1009_v40 = vadd.f32 %v1008_v39, %v958_v34  ;;  %v1010_v41 = vpop.f32.mrb[2].mxu1 }
 0x1ef   : > { %v1011_v42 = vpop.f32.mrb[3].mxu1 }
 0x1f0   : > { %v1087_v43 = vpop.f32.mrb[4].mxu0 }
 0x1f1   : > { %v1094_v47 = vadd.f32 %v1087_v43, %v1007_v38  ;;  %v1089_v48 = vpop.f32.mrb[5].mxu0 }
 0x1f2   : > { %v1095_v49 = vadd.f32 %v1089_v48, %v1009_v40  ;;  %v1091_v50 = vpop.f32.mrb[6].mxu0 }
 0x1f3   : > { %v1102_v51 = vadd.f32 %v1100_v46, %v1094_v47  ;;  %v1092_v52 = vpop.f32.mrb[7].mxu0 }
 0x1f4   : > { %v1103_v55 = vadd.f32 %v1100_v46, %v1095_v49 }
 0x1f5   : > { %v1104_v56 = vmax.f32 %v1102_v51, 0.0 }
 0x1f6   : > { %v1105_v57 = vmax.f32 %v1103_v55, 0.0 }
 0x1f7   : > { %1257 = vrot.lane.b32.xlu0 %v1104_v56, %s7236_s1  ;;  %1106 = vrot.lane.b32.xlu1 %v1104_v56, %s7238_s8 }
 0x1fb   : > { %1135 = vrot.lane.b32.xlu0 %v1104_v56, %s7242_s27  ;;  %1108 = vrot.lane.b32.xlu1 %v1105_v57, %s7238_s8 }
 0x1ff   : > { %1143 = vrot.lane.b32.xlu0 %v1104_v56, %s7240_s4  ;;  %1259 = vrot.lane.b32.xlu1 %v1105_v57, %s7236_s1 }
 0x203   : > { %1137 = vrot.lane.b32.xlu1 %v1105_v57, %s7242_s27 }
 0x207   : > { %1145 = vrot.lane.b32.xlu1 %v1105_v57, %s7240_s4 }
 0x269   : > { %v1107_v58 = vpop.permute.xlu1 %1106  ;;  %v1258_v59 = vpop.permute.xlu0 %1257 }
 0x26d   : > { %v1109_v60 = vpop.permute.xlu1 %1108  ;;  %v1136_v7 = vpop.permute.xlu0 %1135 }
 0x26e   : > { %v1111_v61 = vsel %vm861_vm0, %v1109_v60, %v1107_v58  ;;  %v1110_v62 = vsel %vm861_vm0, %v1107_v58, %v1109_v60 }
 0x26f   : > { %1112 = vrot.lane.b32.xlu0 %v1111_v61, %s7242_s27  ;;  %1114 = vrot.lane.b32.xlu1 %v1110_v62, %s7242_s27  ;;  %v1120_v36 = vmul.f32 %v1111_v61, %v5896_v45 }
 0x271   : > { %v1260_v63 = vpop.permute.xlu1 %1259  ;;  %v1144_v15 = vpop.permute.xlu0 %1143 }
 0x272   : > { %v1262_v5 = vsel %vm1017_vm4, %v1260_v63, %v1258_v59  ;;  %v1261_v6 = vsel %vm1017_vm4, %v1258_v59, %v1260_v63 }
 0x273   : > { %1265 = vrot.lane.b32.xlu1 %v1262_v5, %s7242_s27  ;;  %1263 = vrot.lane.b32.xlu0 %v1261_v6, %s7242_s27  ;;  %v1272_v47 = vmul.f32 %v1262_v5, %v5912_v53 }
 0x275   : > { %v1138_v8 = vpop.permute.xlu1 %1137 }
 0x276   : > { %v1139_v10 = vsel %vm868_vm3, %v1136_v7, %v1138_v8  ;;  %v1140_v11 = vsel %vm868_vm3, %v1138_v8, %v1136_v7 }
 0x277   : > { %v1141_v12 = vmul.f32 %v1140_v11, %v5824_v18  ;;  %v1142_v13 = vmul.f32 %v1139_v10, %v5819_v17  ;;  %1124 = vrot.lane.b32.xlu1 %v1110_v62, %s7240_s4  ;;  %1122 = vrot.lane.b32.xlu0 %v1111_v61, %s7240_s4  ;;  %v1134_v11 = vld [vmem:[%s7285_s3] sm:$0xf] }
 0x279   : > { %v1151_v19 = vpack.c.bf16 %v1104_v56, %v1141_v12  ;;  %v1146_v20 = vpop.permute.xlu1 %1145  ;;  %v1152_v4 = vpack.c.bf16 %v1105_v57, %v1142_v13 }
 0x27a   : > { %v1147_v21 = vsel %vm879_vm7, %v1144_v15, %v1146_v20  ;;  %v1148_v22 = vsel %vm879_vm7, %v1146_v20, %v1144_v15 }
 0x27b   : > { %v1149_v23 = vmul.f32 %v1147_v21, %v5858_v30  ;;  %v1150_v24 = vmul.f32 %v1148_v22, %v5853_v29  ;;  %1275 = vrot.lane.b32.xlu1 %v1262_v5, %s7240_s4  ;;  %1273 = vrot.lane.b32.xlu0 %v1261_v6, %s7240_s4 }
 0x27c   : > { %1166 = vmatprep.subr.bf16.mxu1 %v1152_v4 }
 0x27d   : > { %v1153_v26 = vpack.c.bf16 %v1149_v23, %v1149_v23  ;;  %v1154_v27 = vpack.c.bf16 %v1150_v24, %v1150_v24  ;;  %1167 = vmatpush1.bf16.msra.mxu1 %v1151_v19  ;;  %v4930_v19 = vld [vmem:[%s7285_s3 + $0x8] sm:$0xf]  ;;  %s7303_s3 = smov 62  }
 0x27f   : > { %1342 = vperm.xlu0 %5443, %v1339_v25   ;;  %4926 = vmatprep.subr.msk.bf16.mxu1 %vm915_vm8, %v1154_v27  ;;  %v1161_v28 = vsel %vm915_vm8, %v1153_v26, 0 }
 0x281   : > { %1169 = vmatpush1.bf16.msra.mxu1 %v1161_v28 }
 0x284   : > { %4927 = vmatmul.mubr.msk.bf16.vlgmr.msra.gmra.mrb[4].mxu1 %vm911_vm9, %v4925_v31 }
 0x285   : > { %1328 = vmatprep.mubr.bf16.mxu1 %v5600_v9 }
 0x2e1   : > { %v1113_v32 = vpop.permute.xlu0 %1112  ;;  %v1115_v33 = vpop.permute.xlu1 %1114 }
 0x2e2   : > { %v1116_v34 = vsel %vm868_vm3, %v1113_v32, %v1115_v33  ;;  %v1117_v35 = vsel %vm868_vm3, %v1115_v33, %v1113_v32 }
 0x2e3   : > { %v1118_v37 = vmul.f32 %v1117_v35, %v5891_v44  ;;  %v1119_v38 = vmul.f32 %v1116_v34, %v5819_v17 }
 0x2e5   : > { %v1130_v39 = vpack.c.bf16 %v1120_v36, %v1118_v37  ;;  %v1264_v40 = vpop.permute.xlu0 %1263  ;;  %v1266_v41 = vpop.permute.xlu1 %1265  ;;  %v1131_v42 = vpack.c.bf16 %v1110_v62, %v1119_v38 }
 0x2e6   : > { %v1267_v43 = vsel %vm868_vm3, %v1264_v40, %v1266_v41  ;;  %v1268_v46 = vsel %vm868_vm3, %v1266_v41, %v1264_v40 }
 0x2e7   : > { %v1269_v48 = vmul.f32 %v1268_v46, %v5824_v18  ;;  %v1270_v49 = vmul.f32 %v1267_v43, %v5915_v54  ;;  %1216 = vmatprep.subr.bf16.mxu0 %v1131_v42 }
 0x2e8   : > { %1217 = vmatpush1.bf16.msra.mxu0 %v1130_v39 }
 0x2e9   : > { %v1281_v50 = vpack.c.bf16 %v1261_v6, %v1269_v48  ;;  %v1123_v51 = vpop.permute.xlu0 %1122  ;;  %v1125_v52 = vpop.permute.xlu1 %1124  ;;  %v1282_v55 = vpack.c.bf16 %v1272_v47, %v1270_v49 }
 0x2ea   : > { %v1126_v56 = vsel %vm879_vm7, %v1123_v51, %v1125_v52  ;;  %v1127_v57 = vsel %vm879_vm7, %v1125_v52, %v1123_v51 }
 0x2eb   : > { %v1128_v58 = vmul.f32 %v1126_v56, %v5930_v2  ;;  %v1129_v59 = vmul.f32 %v1127_v57, %v5853_v29  ;;  %1296 = vmatprep.subr.bf16.mxu1 %v1282_v55 }
 0x2ec   : > { %1297 = vmatpush1.bf16.msra.mxu1 %v1281_v50 }
 0x2ed   : > { %v1132_v60 = vpack.c.bf16 %v1128_v58, %v1128_v58  ;;  %v1133_v61 = vpack.c.bf16 %v1129_v59, %v1129_v59  ;;  %v1274_v62 = vpop.permute.xlu0 %1273  ;;  %v1276_v63 = vpop.permute.xlu1 %1275 }
 0x2ee   : > { %v1277_v5 = vsel %vm879_vm7, %v1274_v62, %v1276_v63  ;;  %v1278_v6 = vsel %vm879_vm7, %v1276_v63, %v1274_v62 }
 0x2ef   : > { %v1279_v7 = vmul.f32 %v1277_v5, %v5858_v30  ;;  %v1280_v8 = vmul.f32 %v1278_v6, %v5944_v14  ;;  %4928 = vmatprep.subr.msk.bf16.mxu0 %vm915_vm8, %v1133_v61  ;;  %v1211_v10 = vsel %vm915_vm8, %v1132_v60, 0 }
 0x2f0   : > { %1219 = vmatpush1.bf16.msra.mxu0 %v1211_v10  ;;  %v6115_v10 = vld [vmem:[%s6103_s26 + $0x8] sm:$0xff] }
 0x2f1   : > { %v1283_v12 = vpack.c.bf16 %v1279_v7, %v1279_v7  ;;  %v1284_v13 = vpack.c.bf16 %v1280_v8, %v1280_v8 }
 0x2f3   : > { %4929 = vmatmul.mubr.msk.bf16.vlgmr.msra.gmra.mrb[8].mxu0 %vm911_vm9, %v1134_v11  ;;  %4931 = vmatprep.subr.msk.bf16.mxu1 %vm915_vm8, %v1284_v13  ;;  %v1291_v15 = vsel %vm915_vm8, %v1283_v12, 0  ;;  %v6118_v11 = vld [vmem:[%s6103_s26] sm:$0xff] }
 0x2f4   : > { %1299 = vmatpush1.bf16.msra.mxu1 %v1291_v15  ;;  %1443 = vmatprep.mubr.bf16.mxu0 %v5600_v9 }
 0x2f7   : > { %4932 = vmatmul.mubr.msk.bf16.vlgmr.msra.gmra.mrb[8].mxu1 %vm911_vm9, %v4930_v19  ;;  %v4933_v19 = vld [vmem:[%s7287_s0 + $0x4] sm:$0xf] }
 0x2f8   : > { %1493 = vmatprep.mubr.bf16.mxu1 %v5600_v9 }
 0x2fe   : > { %v1343_v34 = vpop.permute.xlu0 %1342 }
 0x357   : > { %v1200_v20 = vpop.f32.mrb[4].mxu1 }
 0x358   : > { %v1202_v4 = vpop.f32.mrb[5].mxu1 }
 0x359   : > { %v1204_v21 = vpop.f32.mrb[6].mxu1 }
 0x35a   : > { %v1205_v22 = vpop.f32.mrb[7].mxu1 }
 0x3c6   : > { %v1250_v23 = vpop.f32.mrb[8].mxu0 }
 0x3c7   : > { %v1251_v24 = vadd.f32 %v1250_v23, %v1200_v20  ;;  %v1252_v25 = vpop.f32.mrb[9].mxu0 }
 0x3c8   : > { %v1253_v26 = vadd.f32 %v1252_v25, %v1202_v4  ;;  %v1254_v27 = vpop.f32.mrb[10].mxu0 }
 0x3c9   : > { %v1255_v28 = vpop.f32.mrb[11].mxu0 }
 0x3ca   : > { %v1330_v31 = vpop.f32.mrb[8].mxu1 }
 0x3cb   : > { %v1337_v32 = vadd.f32 %v1330_v31, %v1251_v24  ;;  %v1332_v33 = vpop.f32.mrb[9].mxu1 }
 0x3cc   : > { %v1338_v35 = vadd.f32 %v1332_v33, %v1253_v26  ;;  %v1334_v36 = vpop.f32.mrb[10].mxu1 }
 0x3cd   : > { %v1345_v37 = vadd.f32 %v1343_v34, %v1337_v32  ;;  %v1335_v38 = vpop.f32.mrb[11].mxu1 }
 0x3ce   : > { %v1346_v39 = vadd.f32 %v1343_v34, %v1338_v35 }
 0x3cf   : > { %v1347_v40 = vadd.f32 %v1345_v37, %v5765_v0 }
 0x3d0   : > { %v1348_v41 = vadd.f32 %v1346_v39, %v5771_v1 }
 0x3d1   : > { %v6054_v42 = vmax.f32 %v1347_v40, 0.0 }
 0x3d2   : > { %v6056_v43 = vmax.f32 %v1348_v41, 0.0 }
 0x3d3   : > { %1351 = vrot.lane.b32.xlu1 %v6054_v42, %s7238_s8 }
 0x3d4   : > { %1353 = vrot.lane.b32.xlu0 %v6056_v43, %s7238_s8 }
 0x3d7   : > { %1502 = vrot.lane.b32.xlu1 %v6054_v42, %s7236_s1 }
 0x3d8   : > { %1504 = vrot.lane.b32.xlu0 %v6056_v43, %s7236_s1 }
 0x3db   : > { %1380 = vrot.lane.b32.xlu1 %v6054_v42, %s7242_s27 }
 0x3dc   : > { %1382 = vrot.lane.b32.xlu0 %v6056_v43, %s7242_s27 }
 0x3df   : > { %1388 = vrot.lane.b32.xlu1 %v6054_v42, %s7240_s4 }
 0x3e0   : > { %1390 = vrot.lane.b32.xlu0 %v6056_v43, %s7240_s4 }
 0x445   : > { %v1352_v0 = vpop.permute.xlu1 %1351 }
 0x446   : > { %v1354_v1 = vpop.permute.xlu0 %1353 }
 0x447   : > { %v1356_v46 = vsel %vm861_vm0, %v1354_v1, %v1352_v0  ;;  %v1355_v47 = vsel %vm861_vm0, %v1352_v0, %v1354_v1 }
 0x448   : > { %1357 = vrot.lane.b32.xlu1 %v1356_v46, %s7242_s27  ;;  %1359 = vrot.lane.b32.xlu0 %v1355_v47, %s7242_s27  ;;  %v1365_v23 = vmul.f32 %v1356_v46, %v5896_v45 }
 0x449   : > { %v1503_v48 = vpop.permute.xlu1 %1502 }
 0x44a   : > { %v1505_v49 = vpop.permute.xlu0 %1504 }
 0x44b   : > { %v1507_v50 = vsel %vm1017_vm4, %v1505_v49, %v1503_v48  ;;  %v6084_v51 = vsel %vm1017_vm4, %v1503_v48, %v1505_v49 }
 0x44c   : > { %1510 = vrot.lane.b32.xlu0 %v1507_v50, %s7242_s27  ;;  %1508 = vrot.lane.b32.xlu1 %v6084_v51, %s7242_s27  ;;  %v1517_v34 = vmul.f32 %v1507_v50, %v5912_v53 }
 0x44d   : > { %v1381_v52 = vpop.permute.xlu1 %1380 }
 0x44e   : > { %v1383_v55 = vpop.permute.xlu0 %1382 }
 0x44f   : > { %v1384_v56 = vsel %vm868_vm3, %v1381_v52, %v1383_v55  ;;  %v1385_v57 = vsel %vm868_vm3, %v1383_v55, %v1381_v52 }
 0x450   : > { %v1386_v58 = vmul.f32 %v1385_v57, %v5824_v18  ;;  %v1387_v59 = vmul.f32 %v1384_v56, %v5819_v17  ;;  %1369 = vrot.lane.b32.xlu0 %v1355_v47, %s7240_s4  ;;  %1367 = vrot.lane.b32.xlu1 %v1356_v46, %s7240_s4 }
 0x451   : > { %v1389_v60 = vpop.permute.xlu1 %1388 }
 0x452   : > { %v1396_v61 = vpack.c.bf16 %v6054_v42, %v1386_v58  ;;  %v1391_v62 = vpop.permute.xlu0 %1390  ;;  %v1397_v63 = vpack.c.bf16 %v6056_v43, %v1387_v59 }
 0x453   : > { %v1392_v5 = vsel %vm879_vm7, %v1389_v60, %v1391_v62  ;;  %v1393_v6 = vsel %vm879_vm7, %v1391_v62, %v1389_v60 }
 0x454   : > { %v1394_v7 = vmul.f32 %v1392_v5, %v5858_v30  ;;  %v1395_v8 = vmul.f32 %v1393_v6, %v5853_v29  ;;  %1520 = vrot.lane.b32.xlu0 %v1507_v50, %s7240_s4  ;;  %1518 = vrot.lane.b32.xlu1 %v6084_v51, %s7240_s4  ;;  %v1379_v5 = vld [vmem:[%s7287_s0] sm:$0xf] }
 0x455   : > { %1411 = vmatprep.subr.bf16.mxu0 %v1397_v63 }
 0x456   : > { %v1398_v12 = vpack.c.bf16 %v1394_v7, %v1394_v7  ;;  %v1399_v13 = vpack.c.bf16 %v1395_v8, %v1395_v8  ;;  %1412 = vmatpush1.bf16.msra.mxu0 %v1396_v61  ;;  %v4938_v7 = vld [vmem:[%s7287_s0 + $0x8] sm:$0xf]  ;;  %s7305_s0 = smov 16  }
 0x458   : > { %1843 = vrot.lane.b32.xlu0 %v6115_v10, %s7256_s28  ;;  %1840 = vrot.lane.b32.xlu1 %v6118_v11, %s7256_s28  ;;  %v1406_v15 = vsel %vm915_vm8, %v1398_v12, 0 }
 0x459   : > { %4934 = vmatprep.subr.msk.bf16.mxu0 %vm915_vm8, %v1399_v13 }
 0x45a   : > { %1414 = vmatpush1.bf16.msra.mxu0 %v1406_v15 }
 0x45d   : > { %4935 = vmatmul.mubr.msk.bf16.vlgmr.msra.gmra.mrb[12].mxu0 %vm911_vm9, %v4933_v19 }
 0x45e   : > { %1573 = vmatprep.mubr.bf16.mxu0 %v5600_v9 }
 0x4ba   : > { %v1358_v20 = vpop.permute.xlu1 %1357  ;;  %v1360_v4 = vpop.permute.xlu0 %1359 }
 0x4bb   : > { %v1361_v21 = vsel %vm868_vm3, %v1358_v20, %v1360_v4  ;;  %v1362_v22 = vsel %vm868_vm3, %v1360_v4, %v1358_v20  ;;  %v836_v20 = vand.u32 7, %v5785_v3  ;;  %v5584_v3 = vld [vmem:[%s7220_s20 + $0x10] sm:$0xff]  }
 0x4bc   : > { %v1363_v24 = vmul.f32 %v1362_v22, %v5891_v44  ;;  %v1364_v25 = vmul.f32 %v1361_v21, %v5819_v17 }
 0x4bd   : > { %vm6205_vm2 = vcmp.le.s32.totalorder %v836_v20, 6  ;;  %vm6256_vm12 = vcmp.ge.s32.totalorder %v836_v20, 1 }
 0x4be   : > { %v1375_v26 = vpack.c.bf16 %v1365_v23, %v1363_v24  ;;  %v1509_v27 = vpop.permute.xlu1 %1508  ;;  %v1511_v28 = vpop.permute.xlu0 %1510  ;;  %v1376_v31 = vpack.c.bf16 %v1355_v47, %v1364_v25  ;;  %vm844_vm10 = vmand %vm837_vm5, %vm6205_vm2 }
 0x4bf   : > { %v1512_v32 = vsel %vm868_vm3, %v1509_v27, %v1511_v28  ;;  %v1513_v33 = vsel %vm868_vm3, %v1511_v28, %v1509_v27  ;;  %vm851_vm11 = vmand %vm838_vm6, %vm6205_vm2 }
 0x4c0   : > { %v1514_v35 = vmul.f32 %v1513_v33, %v5824_v18  ;;  %v1515_v36 = vmul.f32 %v1512_v32, %v5915_v54  ;;  %1461 = vmatprep.subr.bf16.mxu1 %v1376_v31  ;;  %vm841_vm13 = vmand %vm837_vm5, %vm6256_vm12 }
 0x4c1   : > { %1462 = vmatpush1.bf16.msra.mxu1 %v1375_v26  ;;  %vm848_vm14 = vmand %vm838_vm6, %vm6256_vm12 }
 0x4c2   : > { %v1526_v37 = vpack.c.bf16 %v6084_v51, %v1514_v35  ;;  %v1368_v38 = vpop.permute.xlu1 %1367  ;;  %v1370_v39 = vpop.permute.xlu0 %1369  ;;  %v1527_v40 = vpack.c.bf16 %v1517_v34, %v1515_v36 }
 0x4c3   : > { %v1371_v41 = vsel %vm879_vm7, %v1368_v38, %v1370_v39  ;;  %v1372_v0 = vsel %vm879_vm7, %v1370_v39, %v1368_v38 }
 0x4c4   : > { %v1373_v1 = vmul.f32 %v1371_v41, %v5930_v2  ;;  %v1374_v46 = vmul.f32 %v1372_v0, %v5853_v29  ;;  %1541 = vmatprep.subr.bf16.mxu0 %v1527_v40  ;;  %v847_v41 = vsel %vm6205_vm2, 1.0, %v5601_v16  ;;  %vm1962_vm2 = vcmask 392192  }
 0x4c5   : > { %1542 = vmatpush1.bf16.msra.mxu0 %v1526_v37 }
 0x4c6   : > { %v1377_v47 = vpack.c.bf16 %v1373_v1, %v1373_v1  ;;  %v1378_v48 = vpack.c.bf16 %v1374_v46, %v1374_v46  ;;  %v1519_v49 = vpop.permute.xlu1 %1518  ;;  %v1521_v50 = vpop.permute.xlu0 %1520  ;;  %v843_v46 = vsel %vm837_vm5, 1.0, %v5601_v16  ;;  %vm3259_vm5 = vcmask 64512  }
 0x4c7   : > { %v1522_v51 = vsel %vm879_vm7, %v1519_v49, %v1521_v50  ;;  %v1523_v52 = vsel %vm879_vm7, %v1521_v50, %v1519_v49 }
 0x4c8   : > { %v1524_v55 = vmul.f32 %v1522_v51, %v5858_v30  ;;  %v1525_v56 = vmul.f32 %v1523_v52, %v5944_v14  ;;  %4936 = vmatprep.subr.msk.bf16.mxu1 %vm915_vm8, %v1378_v48  ;;  %v1456_v57 = vsel %vm915_vm8, %v1377_v47, 0  ;;  %v850_v47 = vsel %vm838_vm6, 1.0, %v5601_v16 }
 0x4c9   : > { %1464 = vmatpush1.bf16.msra.mxu1 %v1456_v57  ;;  %v845_v52 = vsel %vm844_vm10, 1.0, %v5601_v16  ;;  %vm4060_vm6 = vcmask 785408  }
 0x4ca   : > { %v1528_v58 = vpack.c.bf16 %v1524_v55, %v1524_v55  ;;  %v1529_v59 = vpack.c.bf16 %v1525_v56, %v1525_v56  ;;  %v1841_v60 = vpop.permute.xlu1 %1840  ;;  %v1844_v61 = vpop.permute.xlu0 %1843 }
 0x4cb   : > { %v1842_v62 = vsel %vm1839_vm1, %v1841_v60, %v6118_v11  ;;  %v1845_v63 = vsel %vm1839_vm1, %v1844_v61, %v6115_v10 }
 0x4cc   : > { %1846 = vrot.lane.b32.xlu1 %v1842_v62, %s7256_s28  ;;  %4939 = vmatprep.subr.msk.bf16.mxu0 %vm915_vm8, %v1529_v59  ;;  %v1536_v6 = vsel %vm915_vm8, %v1528_v58, 0  ;;  %v852_v58 = vsel %vm851_vm11, 1.0, %v5601_v16 }
 0x4cd   : > { %1848 = vrot.lane.b32.xlu0 %v1845_v63, %s7256_s28  ;;  %1544 = vmatpush1.bf16.msra.mxu0 %v1536_v6 }
 0x4ce   : > { %4937 = vmatmul.mubr.msk.bf16.vlgmr.msra.gmra.mrb[12].mxu1 %vm911_vm9, %v1379_v5 }
 0x4cf   : > { %1686 = vmatprep.mubr.bf16.mxu1 %v5600_v9 }
 0x4d0   : > { %4940 = vmatmul.mubr.msk.bf16.vlgmr.msra.gmra.mrb[16].mxu0 %vm911_vm9, %v4938_v7 }
 0x4d1   : > { %1736 = vmatprep.mubr.bf16.mxu0 %v5600_v9 }
 0x530   : > { %v1445_v4 = vpop.f32.mrb[12].mxu0 }
 0x531   : > { %v1447_v22 = vpop.f32.mrb[13].mxu0 }
 0x532   : > { %v1449_v23 = vpop.f32.mrb[14].mxu0 }
 0x533   : > { %v1450_v26 = vpop.f32.mrb[15].mxu0 }
 0x53e   : > { %v1847_v8 = vpop.permute.xlu1 %1846 }
 0x53f   : > { %v6180_v12 = vsel %vm1839_vm1, %v1847_v8, %v6118_v11  ;;  %v1849_v13 = vpop.permute.xlu0 %1848  ;;  %v842_v8 = vsel %vm841_vm13, 1.0, %v5601_v16 }
 0x540   : > { %v6184_v15 = vsel %vm1839_vm1, %v1849_v13, %v6115_v10  ;;  %1854 = vrot.lane.b32.xlu1 %v6180_v12, %s7254_s2  ;;  %v846_v13 = vsel %vm6256_vm12, 1.0, %v5601_v16  ;;  %v5450_v20 = vpack.i.bf16 %v842_v8, %v6115_v10  ;;  %v849_v10 = vsel %vm848_vm14, 1.0, %v5601_v16 }
 0x541   : > { %1856 = vrot.lane.b32.xlu0 %v6184_v15, %s7254_s2 }
 0x544   : > { %2068 = vrot.lane.b32.xlu1 %v6180_v12, %s7230_s7 }
 0x545   : > { %2070 = vrot.lane.b32.xlu0 %v6184_v15, %s7230_s7  ;;  %s7290_s7 = sld [smem:[#allocation9_spill]] }
 0x54b   : > { %v1584_v37 = vld [vmem:[%s7290_s7] sm:$0xff]  ;;  %s7232_s7 = smov 56  }
 0x5a1   : > { %v1495_v24 = vpop.f32.mrb[12].mxu1 }
 0x5a2   : > { %v1496_v25 = vadd.f32 %v1495_v24, %v1445_v4  ;;  %v1497_v27 = vpop.f32.mrb[13].mxu1  ;;  %v5445_v4 = vpack.i.bf16 %v6118_v11, %v846_v13 }
 0x5a3   : > { %v1498_v32 = vadd.f32 %v1497_v27, %v1447_v22  ;;  %v1575_v33 = vpop.f32.mrb[16].mxu0  ;;  %v1499_v39 = vpop.f32.mrb[14].mxu1 }
 0x5a4   : > { %v1582_v35 = vadd.f32 %v1575_v33, %v1496_v25  ;;  %v1577_v36 = vpop.f32.mrb[17].mxu0  ;;  %v1500_v0 = vpop.f32.mrb[15].mxu1 }
 0x5a5   : > { %v1583_v38 = vadd.f32 %v1577_v36, %v1498_v32  ;;  %v1579_v40 = vpop.f32.mrb[18].mxu0 }
 0x5a6   : > { %v1580_v1 = vpop.f32.mrb[19].mxu0 }
 0x5b2   : > { %v6194_v19 = vpop.permute.xlu1 %1854 }
 0x5b3   : > { %v6197_v21 = vpop.permute.xlu0 %1856  ;;  %1860 = vrot.lane.b32.xlu1 %v6194_v19, %s7256_s28 }
 0x5b4   : > { %1863 = vrot.lane.b32.xlu0 %v6197_v21, %s7256_s28 }
 0x5b6   : > { %v6203_v28 = vpop.permute.xlu1 %2068 }
 0x5b7   : > { %v6209_v34 = vpop.permute.xlu0 %2070  ;;  %2074 = vrot.lane.b32.xlu1 %v6203_v28, %s7256_s28 }
 0x5b8   : > { %2077 = vrot.lane.b32.xlu0 %v6209_v34, %s7256_s28 }
 0x5bb   : > { %1587 = vperm.xlu1 %5444, %v1584_v37  }
 0x5bc   : > { %1918 = vrot.lane.b32.xlu0 %v847_v41, %s7242_s27 }
 0x5bf   : > { %1879 = vrot.lane.b32.xlu1 %v843_v46, %s7232_s7  ;;  %s7250_s7 = smov 62  }
 0x5c0   : > { %2093 = vrot.lane.b32.xlu0 %v850_v47, %s7234_s9  ;;  %s7244_s9 = smov 55  }
 0x625   : > { %v1861_v48 = vpop.permute.xlu1 %1860 }
 0x626   : > { %v1864_v49 = vpop.permute.xlu0 %1863  ;;  %v1862_v50 = vsel %vm1839_vm1, %v1861_v48, %v6194_v19 }
 0x627   : > { %1866 = vrot.lane.b32.xlu1 %v1862_v50, %s7256_s28  ;;  %v1865_v51 = vsel %vm1839_vm1, %v1864_v49, %v6197_v21 }
 0x628   : > { %1868 = vrot.lane.b32.xlu0 %v1865_v51, %s7256_s28 }
 0x629   : > { %v2075_v55 = vpop.permute.xlu1 %2074 }
 0x62a   : > { %v2076_v56 = vsel %vm1839_vm1, %v2075_v55, %v6203_v28  ;;  %v2078_v57 = vpop.permute.xlu0 %2077 }
 0x62b   : > { %1885 = vrot.lane.b32.xlu1 %v845_v52, %s7242_s27  ;;  %v2079_v59 = vsel %vm1839_vm1, %v2078_v57, %v6209_v34 }
 0x62c   : > { %2080 = vrot.lane.b32.xlu0 %v2076_v56, %s7256_s28 }
 0x62e   : > { %v6272_v7 = vpop.permute.xlu0 %1918 }
 0x62f   : > { %2082 = vrot.lane.b32.xlu1 %v2079_v59, %s7256_s28  ;;  %v1921_v22 = vmul.f32 %v6272_v7, %v6180_v12  ;;  %v1922_v23 = vmul.f32 %v6272_v7, %v6184_v15 }
 0x630   : > { %2099 = vrot.lane.b32.xlu0 %v852_v58, %s7242_s27 }
 0x631   : > { %v5455_v11 = vpack.i.bf16 %v1922_v23, %v1921_v22 }
 0x632   : > { %v6292_v24 = vpop.permute.xlu0 %2093 }
 0x633   : > { %v2096_v26 = vmul.f32 %v6292_v24, %v6180_v12  ;;  %v2097_v27 = vmul.f32 %v6292_v24, %v6184_v15 }
 0x635   : > { %v5465_v33 = vpack.i.bf16 %v2097_v27, %v2096_v26 }
 0x63a   : > { %v1588_v61 = vpop.permute.xlu1 %1587 }
 0x63b   : > { %v1590_v62 = vadd.f32 %v1588_v61, %v1582_v35  ;;  %v1591_v63 = vadd.f32 %v1588_v61, %v1583_v38 }
 0x63d   : > { %v6260_v5 = vmax.f32 %v1590_v62, 0.0  ;;  %v6262_v6 = vmax.f32 %v1591_v63, 0.0 }
 0x63e   : > { %v6294_v25 = vpop.permute.xlu1 %1879 }
 0x63f   : > { %1596 = vrot.lane.b32.xlu0 %v6262_v6, %s7238_s8  ;;  %1594 = vrot.lane.b32.xlu1 %v6260_v5, %s7238_s8  ;;  %v1882_v31 = vmul.f32 %v6294_v25, %v6180_v12  ;;  %v1883_v32 = vmul.f32 %v6294_v25, %v6184_v15  ;;  %s7248_s8 = smov 65  }
 0x641   : > { %v5460_v35 = vpack.i.bf16 %v1883_v32, %v1882_v31 }
 0x643   : > { %1747 = vrot.lane.b32.xlu0 %v6262_v6, %s7236_s1  ;;  %1745 = vrot.lane.b32.xlu1 %v6260_v5, %s7236_s1  ;;  %s7246_s1 = smov 7  }
 0x647   : > { %5451 = vrot.lane.b32.xlu0 %v5450_v20, %s7252_s5  ;;  %5446 = vrot.lane.b32.xlu1 %v5445_v4, %s7252_s5 }
 0x64b   : > { %2087 = vrot.lane.b32.xlu0 %v849_v10, %s7252_s5  ;;  %5456 = vrot.lane.b32.xlu1 %v5455_v11, %s7250_s7 }
 0x64f   : > { %5466 = vrot.lane.b32.xlu0 %v5465_v33, %s7244_s9  ;;  %5461 = vrot.lane.b32.xlu1 %v5460_v35, %s7246_s1  ;;  %s7298_s9 = smov 55   ;;  %s7299_s1 = smov 65  }
 0x699   : > { %v1867_v36 = vpop.permute.xlu1 %1866 }
 0x69a   : > { %v1869_v37 = vpop.permute.xlu0 %1868  ;;  %v1870_v38 = vsel %vm1839_vm1, %v1867_v36, %v6194_v19 }
 0x69b   : > { %v1871_v39 = vsel %vm1839_vm1, %v1869_v37, %v6197_v21 }
 0x69d   : > { %v6315_v40 = vpop.permute.xlu1 %1885 }
 0x69e   : > { %v2081_v41 = vpop.permute.xlu0 %2080  ;;  %v1888_v0 = vmul.f32 %v6315_v40, %v1870_v38  ;;  %v1889_v1 = vmul.f32 %v6315_v40, %v1871_v39 }
 0x69f   : > { %v2084_v48 = vsel %vm1839_vm1, %v2081_v41, %v6203_v28 }
 0x6a0   : > { %v5470_v46 = vpack.i.bf16 %v1889_v1, %v1888_v0 }
 0x6a1   : > { %v2083_v47 = vpop.permute.xlu1 %2082 }
 0x6a2   : > { %v2085_v49 = vsel %vm1839_vm1, %v2083_v47, %v6209_v34  ;;  %v6323_v50 = vpop.permute.xlu0 %2099  ;;  %5471 = vrot.lane.b32.xlu1 %v5470_v46, %s7250_s7 }
 0x6a3   : > { %v2102_v19 = vmul.f32 %v6323_v50, %v2084_v48  ;;  %v2103_v21 = vmul.f32 %v6323_v50, %v2085_v49 }
 0x6a5   : > { %v5475_v51 = vpack.i.bf16 %v2103_v21, %v2102_v19 }
 0x6a6   : > { %1623 = vrot.lane.b32.xlu1 %v6260_v5, %s7242_s27 }
 0x6a7   : > { %5476 = vrot.lane.b32.xlu0 %v5475_v51, %s7250_s7 }
 0x6aa   : > { %1631 = vrot.lane.b32.xlu1 %v6260_v5, %s7240_s4 }
 0x6ab   : > { %1625 = vrot.lane.b32.xlu0 %v6262_v6, %s7242_s27 }
 0x6b1   : > { %v1597_v28 = vpop.permute.xlu0 %1596  ;;  %v1595_v34 = vpop.permute.xlu1 %1594 }
 0x6b2   : > { %v6337_v52 = vsel %vm861_vm0, %v1597_v28, %v1595_v34  ;;  %v6341_v55 = vsel %vm861_vm0, %v1595_v34, %v1597_v28 }
 0x6b3   : > { %1600 = vrot.lane.b32.xlu1 %v6337_v52, %s7242_s27  ;;  %1602 = vrot.lane.b32.xlu0 %v6341_v55, %s7242_s27 }
 0x6b5   : > { %v1748_v56 = vpop.permute.xlu0 %1747  ;;  %v1746_v57 = vpop.permute.xlu1 %1745 }
 0x6b6   : > { %v6353_v58 = vsel %vm1017_vm4, %v1746_v57, %v1748_v56  ;;  %v6363_v62 = vsel %vm1017_vm4, %v1748_v56, %v1746_v57  ;;  %v2189_v56 = vld [vmem:[%s7293_s11] sm:$0xff] }
 0x6b7   : > { %1610 = vrot.lane.b32.xlu1 %v6337_v52, %s7240_s4  ;;  %1612 = vrot.lane.b32.xlu0 %v6341_v55, %s7240_s4 }
 0x6b9   : > { %v5447_v59 = vpop.permute.xlu1 %5446  ;;  %v5452_v60 = vpop.permute.xlu0 %5451 }
 0x6ba   : > { %v6355_v61 = vunpack.i.l.bf16 %v5447_v59  ;;  %v5453_v20 = vunpack.i.l.bf16 %v5452_v60  ;;  %v5449_v4 = vunpack.i.h.bf16 %v5447_v59  ;;  %v6373_v22 = vunpack.i.h.bf16 %v5452_v60 }
 0x6bb   : > { %1633 = vrot.lane.b32.xlu0 %v6262_v6, %s7240_s4  ;;  %1751 = vrot.lane.b32.xlu1 %v6353_v58, %s7242_s27 }
 0x6bc   : > { %v1915_v63 = vmul.f32 %v6355_v61, %v6180_v12  ;;  %v1916_v8 = vmul.f32 %v6355_v61, %v6184_v15  ;;  %v1940_v12 = vpack.c.bf16 %v5453_v20, %v5449_v4  ;;  %v1876_v15 = vmul.f32 %v6373_v22, %v1870_v38  ;;  %v2190_v4 = vld [vmem:[%s7293_s11 + $0x8] sm:$0xff] }
 0x6bd   : > { %v5457_v13 = vpop.permute.xlu1 %5456  ;;  %v6375_v23 = vpop.permute.xlu0 %2087  ;;  %v1877_v27 = vmul.f32 %v6373_v22, %v1871_v39 }
 0x6be   : > { %v5459_v10 = vunpack.i.h.bf16 %v5457_v13  ;;  %v5458_v11 = vunpack.i.l.bf16 %v5457_v13  ;;  %v1939_v26 = vpack.c.bf16 %v1916_v8, %v1915_v63  ;;  %v2090_v31 = vmul.f32 %v6375_v23, %v2084_v48 }
 0x6bf   : > { %1753 = vrot.lane.b32.xlu0 %v6363_v62, %s7242_s27  ;;  %1761 = vrot.lane.b32.xlu1 %v6353_v58, %s7240_s4  ;;  %v2091_v32 = vmul.f32 %v6375_v23, %v2085_v49  ;;  %v1906_v37 = vpack.c.bf16 %v1877_v27, %v1876_v15  ;;  %s7297_s27 = smov 7  }
 0x6c0   : > { %v1941_v33 = vpack.c.bf16 %v5459_v10, %v5458_v11 }
 0x6c1   : > { %v5467_v35 = vpop.permute.xlu0 %5466  ;;  %v5462_v36 = vpop.permute.xlu1 %5461  ;;  %v2120_v41 = vpack.c.bf16 %v2091_v32, %v2090_v31  ;;  %v1608_v32 = vmul.f32 %v6337_v52, %v5896_v45 }
 0x6c2   : > { %v5469_v0 = vunpack.i.h.bf16 %v5467_v35  ;;  %v5468_v1 = vunpack.i.l.bf16 %v5467_v35  ;;  %v5464_v46 = vunpack.i.h.bf16 %v5462_v36  ;;  %v5463_v47 = vunpack.i.l.bf16 %v5462_v36 }
 0x6c3   : > { %1763 = vrot.lane.b32.xlu0 %v6363_v62, %s7240_s4  ;;  %1953 = vrot.lane.b32.xlu1 %v1939_v26, %s7248_s8  ;;  %s7294_s4 = sld [smem:[#allocation10_spill]] }
 0x6c4   : > { %v2121_v38 = vpack.c.bf16 %v5469_v0, %v5468_v1  ;;  %v1907_v39 = vpack.c.bf16 %v5464_v46, %v5463_v47 }
 0x6c7   : > { %1955 = vrot.lane.b32.xlu0 %v1940_v12, %s7248_s8  ;;  %1957 = vrot.lane.b32.xlu1 %v1941_v33, %s7248_s8 }
 0x6cb   : > { %2015 = vrot.lane.b32.xlu0 %v1906_v37, %s7248_s8  ;;  %2134 = vrot.lane.b32.xlu1 %v2120_v41, %s7248_s8 }
 0x6cf   : > { %2017 = vrot.lane.b32.xlu0 %v1907_v39, %s7248_s8  ;;  %2136 = vrot.lane.b32.xlu1 %v2121_v38, %s7248_s8 }
 0x714   : > { %v5472_v48 = vpop.permute.xlu1 %5471 }
 0x715   : > { %v5474_v49 = vunpack.i.h.bf16 %v5472_v48  ;;  %v5473_v19 = vunpack.i.l.bf16 %v5472_v48 }
 0x717   : > { %v1908_v21 = vpack.c.bf16 %v5474_v49, %v5473_v19 }
 0x718   : > { %v1624_v57 = vpop.permute.xlu1 %1623 }
 0x719   : > { %v5477_v51 = vpop.permute.xlu0 %5476  ;;  %2019 = vrot.lane.b32.xlu0 %v1908_v21, %s7248_s8 }
 0x71a   : > { %v5479_v28 = vunpack.i.h.bf16 %v5477_v51  ;;  %v5478_v34 = vunpack.i.l.bf16 %v5477_v51  ;;  %v1622_v51 = vld [vmem:[%s7294_s4] sm:$0xf] }
 0x71c   : > { %v2122_v59 = vpack.c.bf16 %v5479_v28, %v5478_v34  ;;  %v1632_v10 = vpop.permute.xlu1 %1631 }
 0x71d   : > { %v1626_v60 = vpop.permute.xlu0 %1625  ;;  %2193 = vperm.xlu0 %5443, %v2189_v56  }
 0x71e   : > { %v1627_v63 = vsel %vm868_vm3, %v1624_v57, %v1626_v60  ;;  %v1628_v8 = vsel %vm868_vm3, %v1626_v60, %v1624_v57  ;;  %2138 = vrot.lane.b32.xlu1 %v2122_v59, %s7248_s8  ;;  %s7296_s8 = smov 120  }
 0x71f   : > { %v1629_v13 = vmul.f32 %v1628_v8, %v5824_v18  ;;  %v1630_v20 = vmul.f32 %v1627_v63, %v5819_v17  ;;  %v1760_v63 = vmul.f32 %v6363_v62, %v5912_v53 }
 0x721   : > { %v1639_v11 = vpack.c.bf16 %v6260_v5, %v1629_v13  ;;  %v1640_v26 = vpack.c.bf16 %v6262_v6, %v1630_v20 }
 0x722   : > { %2198 = vperm.xlu1 %5444, %v2190_v4   ;;  %v4941_v4 = vld [vmem:[%s7294_s4 + $0x4] sm:$0xf] }
 0x723   : > { %1654 = vmatprep.subr.bf16.mxu1 %v1640_v26 }
 0x724   : > { %1655 = vmatpush1.bf16.msra.mxu1 %v1639_v11 }
 0x725   : > { %v1603_v12 = vpop.permute.xlu0 %1602  ;;  %v1601_v15 = vpop.permute.xlu1 %1600 }
 0x726   : > { %v1604_v27 = vsel %vm868_vm3, %v1601_v15, %v1603_v12  ;;  %v1605_v31 = vsel %vm868_vm3, %v1603_v12, %v1601_v15 }
 0x727   : > { %v1606_v33 = vmul.f32 %v1605_v31, %v5891_v44  ;;  %v1607_v5 = vmul.f32 %v1604_v27, %v5819_v17 }
 0x729   : > { %v1618_v35 = vpack.c.bf16 %v1608_v32, %v1606_v33  ;;  %v1613_v6 = vpop.permute.xlu0 %1612  ;;  %v1611_v36 = vpop.permute.xlu1 %1610  ;;  %v1619_v37 = vpack.c.bf16 %v6341_v55, %v1607_v5 }
 0x72a   : > { %v1614_v41 = vsel %vm879_vm7, %v1611_v36, %v1613_v6  ;;  %v1615_v0 = vsel %vm879_vm7, %v1613_v6, %v1611_v36  ;;  %v4946_v6 = vld [vmem:[%s7294_s4 + $0x8] sm:$0xf]  ;;  %s7306_s4 = smov 112  }
 0x72b   : > { %v1616_v1 = vmul.f32 %v1614_v41, %v5930_v2  ;;  %v1617_v46 = vmul.f32 %v1615_v0, %v5853_v29  ;;  %1704 = vmatprep.subr.bf16.mxu0 %v1619_v37  ;;  %v5570_v37 = vld [vmem:[%s7295_s10 + $0x8] sm:$0xff]  }
 0x72c   : > { %1705 = vmatpush1.bf16.msra.mxu0 %v1618_v35 }
 0x72d   : > { %v1620_v52 = vpack.c.bf16 %v1616_v1, %v1616_v1  ;;  %v1621_v47 = vpack.c.bf16 %v1617_v46, %v1617_v46  ;;  %v1634_v38 = vpop.permute.xlu0 %1633  ;;  %v1752_v39 = vpop.permute.xlu1 %1751 }
 0x72e   : > { %v1635_v48 = vsel %vm879_vm7, %v1632_v10, %v1634_v38  ;;  %v1636_v55 = vsel %vm879_vm7, %v1634_v38, %v1632_v10  ;;  %v5572_v38 = vld [vmem:[%s7295_s10 + $0x10] sm:$0xff]  }
 0x72f   : > { %v1637_v49 = vmul.f32 %v1635_v48, %v5858_v30  ;;  %v1638_v19 = vmul.f32 %v1636_v55, %v5853_v29  ;;  %4944 = vmatprep.subr.msk.bf16.mxu0 %vm915_vm8, %v1621_v47  ;;  %v1699_v21 = vsel %vm915_vm8, %v1620_v52, 0  ;;  %v5571_v52 = vld [vmem:[%s7295_s10] sm:$0xff]   ;;  %s7310_s10 = smov 56  }
 0x730   : > { %1707 = vmatpush1.bf16.msra.mxu0 %v1699_v21 }
 0x731   : > { %v1641_v28 = vpack.c.bf16 %v1637_v49, %v1637_v49  ;;  %v1642_v34 = vpack.c.bf16 %v1638_v19, %v1638_v19  ;;  %v1754_v56 = vpop.permute.xlu0 %1753  ;;  %v1762_v57 = vpop.permute.xlu1 %1761  ;;  %5132 = vmatprep.subr.bf16.mxu0 %v5601_v16 }
 0x732   : > { %v1755_v59 = vsel %vm868_vm3, %v1752_v39, %v1754_v56  ;;  %v1756_v60 = vsel %vm868_vm3, %v1754_v56, %v1752_v39 }
 0x733   : > { %v1757_v8 = vmul.f32 %v1756_v60, %v5824_v18  ;;  %v1758_v13 = vmul.f32 %v1755_v59, %v5915_v54  ;;  %4942 = vmatprep.subr.msk.bf16.mxu1 %vm915_vm8, %v1642_v34  ;;  %v1649_v20 = vsel %vm915_vm8, %v1641_v28, 0  ;;  %4945 = vmatmul.mubr.msk.bf16.vlgmr.msra.gmra.mrb[20].mxu0 %vm911_vm9, %v1622_v51 }
 0x734   : > { %1657 = vmatpush1.bf16.msra.mxu1 %v1649_v20  ;;  %5138 = vmatprep.mubr.msk.bf16.mxu0 %vm5612_vm15, %v5601_v16 }
 0x735   : > { %v1769_v62 = vpack.c.bf16 %v6353_v58, %v1757_v8  ;;  %v1764_v10 = vpop.permute.xlu0 %1763  ;;  %v1954_v11 = vpop.permute.xlu1 %1953  ;;  %v1770_v26 = vpack.c.bf16 %v1760_v63, %v1758_v13 }
 0x736   : > { %v1765_v12 = vsel %vm879_vm7, %v1762_v57, %v1764_v10  ;;  %v1766_v15 = vsel %vm879_vm7, %v1764_v10, %v1762_v57  ;;  %5133 = vmatpush3.bf16.msra.mxu0 %v1954_v11 }
 0x737   : > { %v1767_v27 = vmul.f32 %v1765_v12, %v5858_v30  ;;  %v1768_v31 = vmul.f32 %v1766_v15, %v5944_v14  ;;  %1784 = vmatprep.subr.bf16.mxu1 %v1770_v26  ;;  %4943 = vmatmul.mubr.msk.bf16.vlgmr.msra.gmra.mrb[16].mxu1 %vm911_vm9, %v4941_v4 }
 0x738   : > { %1785 = vmatpush1.bf16.msra.mxu1 %v1769_v62  ;;  %5134 = vmatprep.subr.bf16.mxu0 %v5601_v16 }
 0x739   : > { %v1771_v58 = vpack.c.bf16 %v1767_v27, %v1767_v27  ;;  %v1772_v32 = vpack.c.bf16 %v1768_v31, %v1768_v31  ;;  %v1956_v33 = vpop.permute.xlu0 %1955  ;;  %v1958_v5 = vpop.permute.xlu1 %1957  ;;  %1816 = vmatprep.mubr.bf16.mxu1 %v5600_v9 }
 0x73a   : > { %5135 = vmatpush3.bf16.msra.mxu0 %v1956_v33 }
 0x73b   : > { %4947 = vmatprep.subr.msk.bf16.mxu1 %vm915_vm8, %v1772_v32  ;;  %v1779_v35 = vsel %vm915_vm8, %v1771_v58, 0  ;;  %5136 = vmatprep.subr.bf16.mxu0 %v5601_v16 }
 0x73c   : > { %1787 = vmatpush1.bf16.msra.mxu1 %v1779_v35 }
 0x73d   : > { %v2016_v36 = vpop.permute.xlu0 %2015  ;;  %5142 = vmatprep.subr.bf16.mxu1 %v5601_v16  ;;  %v2135_v41 = vpop.permute.xlu1 %2134 }
 0x73e   : > { %5137 = vmatpush3.bf16.msra.mxu0 %v1958_v5 }
 0x73f   : > { %4948 = vmatmul.mubr.msk.bf16.vlgmr.msra.gmra.mrb[20].mxu1 %vm911_vm9, %v4946_v6  ;;  %5152 = vmatprep.subr.bf16.mxu0 %v5601_v16 }
 0x740   : > { %5143 = vmatpush3.bf16.msra.mxu1 %v2016_v36  ;;  %5148 = vmatprep.mubr.msk.bf16.mxu1 %vm5612_vm15, %v5601_v16 }
 0x741   : > { %5139 = vmatmul.mubr.msk.bf16.vlgmr.msra.gmra.mrb[24].mxu0 %vm1962_vm2, %v5570_v37  ;;  %5144 = vmatprep.subr.bf16.mxu1 %v5601_v16  ;;  %v2018_v0 = vpop.permute.xlu0 %2017  ;;  %v2137_v1 = vpop.permute.xlu1 %2136 }
 0x742   : > { %5153 = vmatpush3.bf16.msra.mxu0 %v2135_v41  ;;  %5158 = vmatprep.mubr.msk.bf16.mxu0 %vm5612_vm15, %v5601_v16 }
 0x743   : > { %5154 = vmatprep.subr.bf16.mxu0 %v5601_v16 }
 0x744   : > { %5145 = vmatpush3.bf16.msra.mxu1 %v2018_v0 }
 0x745   : > { %5146 = vmatprep.subr.bf16.mxu1 %v5601_v16 }
 0x746   : > { %5155 = vmatpush3.bf16.msra.mxu0 %v2137_v1 }
 0x747   : > { %5156 = vmatprep.subr.bf16.mxu0 %v5601_v16 }
 0x78b   : > { %v2020_v46 = vpop.permute.xlu0 %2019 }
 0x78c   : > { %5147 = vmatpush3.bf16.msra.mxu1 %v2020_v46 }
 0x78d   : > { %5162 = vmatprep.subr.bf16.mxu1 %v5601_v16 }
 0x78f   : > { %5149 = vmatmul.mubr.msk.bf16.vlgmr.msra.gmra.mrb[24].mxu1 %vm1962_vm2, %v5571_v52 }
 0x790   : > { %v2139_v47 = vpop.permute.xlu1 %2138  ;;  %5168 = vmatprep.mubr.msk.bf16.mxu1 %vm5612_vm15, %v5601_v16 }
 0x791   : > { %5157 = vmatpush3.bf16.msra.mxu0 %v2139_v47 }
 0x792   : > { %5172 = vmatprep.subr.bf16.mxu0 %v5601_v16 }
 0x794   : > { %5159 = vmatmul.mubr.msk.bf16.vlgmr.msra.gmra.mrb[28].mxu0 %vm1962_vm2, %v5572_v38 }
 0x795   : > { %5178 = vmatprep.mubr.msk.bf16.mxu0 %vm5612_vm15, %v5601_v16 }
 0x79c   : > { %v2194_v5 = vpop.permute.xlu0 %2193 }
 0x7a1   : > { %v2199_v41 = vpop.permute.xlu1 %2198 }
 0x806   : > { %v1738_v39 = vpop.f32.mrb[20].mxu0 }
 0x807   : > { %v1740_v48 = vpop.f32.mrb[21].mxu0 }
 0x808   : > { %v1742_v55 = vpop.f32.mrb[22].mxu0 }
 0x809   : > { %v1743_v49 = vpop.f32.mrb[23].mxu0 }
 0x80a   : > { %v1688_v19 = vpop.f32.mrb[16].mxu1 }
 0x80b   : > { %v1739_v21 = vadd.f32 %v1738_v39, %v1688_v19  ;;  %v1690_v51 = vpop.f32.mrb[17].mxu1 }
 0x80c   : > { %v1741_v28 = vadd.f32 %v1740_v48, %v1690_v51  ;;  %v1692_v34 = vpop.f32.mrb[18].mxu1 }
 0x80d   : > { %v1693_v56 = vpop.f32.mrb[19].mxu1 }
 0x812   : > { %v1818_v57 = vpop.f32.mrb[20].mxu1 }
 0x813   : > { %v6494_v59 = vadd.f32 %v1818_v57, %v1739_v21  ;;  %v1820_v60 = vpop.f32.mrb[21].mxu1 }
 0x814   : > { %v6496_v63 = vadd.f32 %v1820_v60, %v1741_v28  ;;  %v1822_v8 = vpop.f32.mrb[22].mxu1  ;;  %v2000_v13 = vpop.f32.mrb[24].mxu0 }
 0x815   : > { %v1823_v20 = vpop.f32.mrb[23].mxu1  ;;  %v5140_v4 = vpop.f32.mrb[25].mxu0 }
 0x816   : > { %v2003_v62 = vpop.f32.mrb[26].mxu0 }
 0x817   : > { %v5141_v10 = vpop.f32.mrb[27].mxu0 }
 0x862   : > { %v2061_v11 = vpop.f32.mrb[24].mxu1 }
 0x863   : > { %v2062_v26 = vadd.f32 %v2061_v11, %v2000_v13  ;;  %v5150_v12 = vpop.f32.mrb[25].mxu1 }
 0x864   : > { %v2064_v15 = vpop.f32.mrb[26].mxu1 }
 0x865   : > { %v2065_v27 = vadd.f32 %v2064_v15, %v2003_v62  ;;  %v5151_v31 = vpop.f32.mrb[27].mxu1 }
 0x867   : > { %v2180_v58 = vpop.f32.mrb[28].mxu0 }
 0x868   : > { %v2187_v32 = vadd.f32 %v2180_v58, %v2062_v26  ;;  %v5160_v33 = vpop.f32.mrb[29].mxu0 }
 0x869   : > { %v2183_v35 = vpop.f32.mrb[30].mxu0 }
 0x86a   : > { %v2201_v6 = vadd.f32 %v2194_v5, %v2187_v32  ;;  %v2188_v36 = vadd.f32 %v2183_v35, %v2065_v27  ;;  %v5161_v37 = vpop.f32.mrb[31].mxu0 }
 0x86c   : > { %v2203_v0 = vmax.f32 %v2201_v6, 0.0  ;;  %v2202_v1 = vadd.f32 %v2199_v41, %v2188_v36 }
 0x86e   : > { %v2204_v46 = vmax.f32 %v2202_v1, 0.0  ;;  %2205 = vrot.lane.b32.xlu0 %v2203_v0, %s7256_s28 }
 0x870   : > { %2208 = vrot.lane.b32.xlu1 %v2204_v46, %s7256_s28  ;;  %v5480_v6 = vpack.i.bf16 %v2204_v46, %v2203_v0 }
 0x8e0   : > { %v2206_v52 = vpop.permute.xlu0 %2205 }
 0x8e1   : > { %v2207_v47 = vsel %vm1839_vm1, %v2206_v52, %v2203_v0 }
 0x8e2   : > { %2211 = vrot.lane.b32.xlu0 %v2207_v47, %s7256_s28  ;;  %v2209_v38 = vpop.permute.xlu1 %2208 }
 0x8e3   : > { %v2210_v39 = vsel %vm1839_vm1, %v2209_v38, %v2204_v46 }
 0x8e4   : > { %2213 = vrot.lane.b32.xlu1 %v2210_v39, %s7256_s28 }
 0x954   : > { %v2212_v48 = vpop.permute.xlu0 %2211 }
 0x955   : > { %v2215_v55 = vsel %vm1839_vm1, %v2212_v48, %v2203_v0 }
 0x956   : > { %2219 = vrot.lane.b32.xlu0 %v2215_v55, %s7254_s2  ;;  %v2214_v49 = vpop.permute.xlu1 %2213  ;;  %v2266_v19 = vmul.f32 %v2215_v55, %v6272_v7  ;;  %v2239_v51 = vmul.f32 %v2215_v55, %v6294_v25  ;;  %v2432_v28 = vmul.f32 %v2215_v55, %v6292_v24  ;;  %v2264_v34 = vmul.f32 %v6355_v61, %v2215_v55 }
 0x957   : > { %v2216_v21 = vsel %vm1839_vm1, %v2214_v49, %v2204_v46 }
 0x958   : > { %2221 = vrot.lane.b32.xlu1 %v2216_v21, %s7254_s2  ;;  %v2267_v56 = vmul.f32 %v2216_v21, %v6272_v7  ;;  %v2240_v57 = vmul.f32 %v2216_v21, %v6294_v25  ;;  %v2433_v60 = vmul.f32 %v2216_v21, %v6292_v24  ;;  %v2265_v8 = vmul.f32 %v6355_v61, %v2216_v21  ;;  %s5616_s2 = smov 80  }
 0x95a   : > { %2412 = vrot.lane.b32.xlu0 %v2215_v55, %s7296_s8  ;;  %v5485_v13 = vpack.i.bf16 %v2267_v56, %v2266_v19  ;;  %v5490_v20 = vpack.i.bf16 %v2240_v57, %v2239_v51  ;;  %v5495_v4 = vpack.i.bf16 %v2433_v60, %v2432_v28  ;;  %v2284_v62 = vpack.c.bf16 %v2265_v8, %v2264_v34 }
 0x95c   : > { %2414 = vrot.lane.b32.xlu1 %v2216_v21, %s7296_s8 }
 0x9c8   : > { %v2220_v10 = vpop.permute.xlu0 %2219 }
 0x9c9   : > { %2225 = vrot.lane.b32.xlu0 %v2220_v10, %s7256_s28 }
 0x9ca   : > { %v2222_v11 = vpop.permute.xlu1 %2221 }
 0x9cb   : > { %2228 = vrot.lane.b32.xlu1 %v2222_v11, %s7256_s28 }
 0x9cc   : > { %v2413_v26 = vpop.permute.xlu0 %2412 }
 0x9cd   : > { %2418 = vrot.lane.b32.xlu0 %v2413_v26, %s7256_s28 }
 0x9ce   : > { %v2415_v12 = vpop.permute.xlu1 %2414 }
 0x9cf   : > { %2421 = vrot.lane.b32.xlu1 %v2415_v12, %s7256_s28 }
 0xa3b   : > { %v2226_v15 = vpop.permute.xlu0 %2225 }
 0xa3c   : > { %v2227_v27 = vsel %vm1839_vm1, %v2226_v15, %v2220_v10 }
 0xa3d   : > { %2231 = vrot.lane.b32.xlu0 %v2227_v27, %s7256_s28  ;;  %v2229_v31 = vpop.permute.xlu1 %2228 }
 0xa3e   : > { %v2230_v58 = vsel %vm1839_vm1, %v2229_v31, %v2222_v11 }
 0xa3f   : > { %v2419_v32 = vpop.permute.xlu0 %2418  ;;  %2233 = vrot.lane.b32.xlu1 %v2230_v58, %s7256_s28 }
 0xa40   : > { %v2420_v33 = vsel %vm1839_vm1, %v2419_v32, %v2413_v26 }
 0xa41   : > { %2424 = vrot.lane.b32.xlu0 %v2420_v33, %s7256_s28  ;;  %v2422_v5 = vpop.permute.xlu1 %2421 }
 0xa42   : > { %v2423_v35 = vsel %vm1839_vm1, %v2422_v5, %v2415_v12 }
 0xa43   : > { %2426 = vrot.lane.b32.xlu1 %v2423_v35, %s7256_s28  ;;  %s7304_s28 = sld [smem:[#allocation11_spill]] }
 0xa45   : > { %5481 = vrot.lane.b32.xlu0 %v5480_v6, %s7252_s5  ;;  %s7302_s5 = smov 63  }
 0xa47   : > { %5486 = vrot.lane.b32.xlu1 %v5485_v13, %s7250_s7 }
 0xa49   : > { %5491 = vrot.lane.b32.xlu0 %v5490_v20, %s7297_s27 }
 0xa4b   : > { %5496 = vrot.lane.b32.xlu1 %v5495_v4, %s7298_s9 }
 0xaaf   : > { %v2232_v36 = vpop.permute.xlu0 %2231 }
 0xab0   : > { %v2235_v37 = vsel %vm1839_vm1, %v2232_v36, %v2220_v10 }
 0xab1   : > { %v2234_v41 = vpop.permute.xlu1 %2233  ;;  %v2241_v52 = vmul.f32 %v2235_v37, %v6315_v40  ;;  %v2237_v4 = vmul.f32 %v6373_v22, %v2235_v37 }
 0xab2   : > { %v2236_v1 = vsel %vm1839_vm1, %v2234_v41, %v2222_v11 }
 0xab3   : > { %v2242_v47 = vmul.f32 %v2236_v1, %v6315_v40  ;;  %v2425_v38 = vpop.permute.xlu0 %2424  ;;  %v2238_v60 = vmul.f32 %v6373_v22, %v2236_v1 }
 0xab4   : > { %v2428_v0 = vsel %vm1839_vm1, %v2425_v38, %v2413_v26  ;;  %v2521_v38 = vld [vmem:[%s7213_s13] sm:$0xff] }
 0xab5   : > { %v5500_v46 = vpack.i.bf16 %v2242_v47, %v2241_v52  ;;  %v2427_v39 = vpop.permute.xlu1 %2426  ;;  %v2434_v55 = vmul.f32 %v2428_v0, %v6323_v50  ;;  %v2430_v10 = vmul.f32 %v2428_v0, %v6375_v23 }
 0xab6   : > { %v2429_v48 = vsel %vm1839_vm1, %v2427_v39, %v2415_v12  ;;  %v2259_v12 = vpack.c.bf16 %v2238_v60, %v2237_v4  ;;  %v2522_v39 = vld [vmem:[%s7213_s13 + $0x8] sm:$0xff] }
 0xab7   : > { %v2435_v49 = vmul.f32 %v2429_v48, %v6323_v50  ;;  %v5482_v19 = vpop.permute.xlu0 %5481  ;;  %5501 = vrot.lane.b32.xlu0 %v5500_v46, %s7250_s7  ;;  %v2431_v8 = vmul.f32 %v2429_v48, %v6375_v23 }
 0xab8   : > { %v5484_v51 = vunpack.i.h.bf16 %v5482_v19  ;;  %v5483_v28 = vunpack.i.l.bf16 %v5482_v19 }
 0xab9   : > { %v5505_v21 = vpack.i.bf16 %v2435_v49, %v2434_v55  ;;  %v5487_v34 = vpop.permute.xlu1 %5486  ;;  %v2452_v15 = vpack.c.bf16 %v2431_v8, %v2430_v10  ;;  %v5573_v55 = vld [vmem:[%s7212_s12 + $0x8] sm:$0xff]  }
 0xaba   : > { %v5489_v56 = vunpack.i.h.bf16 %v5487_v34  ;;  %v5488_v57 = vunpack.i.l.bf16 %v5487_v34  ;;  %v2285_v20 = vpack.c.bf16 %v5484_v51, %v5483_v28  ;;  %v5574_v28 = vld [vmem:[%s7212_s12] sm:$0xff]  }
 0xabb   : > { %5506 = vrot.lane.b32.xlu1 %v5505_v21, %s7250_s7  ;;  %2298 = vrot.lane.b32.xlu0 %v2284_v62, %s7299_s1  ;;  %v5492_v11 = vpop.permute.xlu0 %5491  ;;  %s7300_s7 = smov 64  }
 0xabc   : > { %v2286_v13 = vpack.c.bf16 %v5489_v56, %v5488_v57  ;;  %v5494_v27 = vunpack.i.h.bf16 %v5492_v11  ;;  %v5493_v62 = vunpack.i.l.bf16 %v5492_v11  ;;  %v5575_v56 = vld [vmem:[%s7212_s12 + $0x10] sm:$0xff]  }
 0xabd   : > { %v5497_v26 = vpop.permute.xlu1 %5496 }
 0xabe   : > { %v5499_v31 = vunpack.i.h.bf16 %v5497_v26  ;;  %v5498_v58 = vunpack.i.l.bf16 %v5497_v26  ;;  %v2260_v32 = vpack.c.bf16 %v5494_v27, %v5493_v62 }
 0xabf   : > { %2300 = vrot.lane.b32.xlu1 %v2285_v20, %s7299_s1  ;;  %2302 = vrot.lane.b32.xlu0 %v2286_v13, %s7299_s1 }
 0xac0   : > { %v2453_v33 = vpack.c.bf16 %v5499_v31, %v5498_v58 }
 0xac3   : > { %2359 = vrot.lane.b32.xlu1 %v2259_v12, %s7299_s1  ;;  %2466 = vrot.lane.b32.xlu0 %v2452_v15, %s7299_s1 }
 0xac7   : > { %2468 = vrot.lane.b32.xlu0 %v2453_v33, %s7299_s1  ;;  %2361 = vrot.lane.b32.xlu1 %v2260_v32, %s7299_s1 }
 0xb29   : > { %v5502_v5 = vpop.permute.xlu0 %5501 }
 0xb2a   : > { %v5504_v35 = vunpack.i.h.bf16 %v5502_v5  ;;  %v5503_v6 = vunpack.i.l.bf16 %v5502_v5 }
 0xb2c   : > { %v2261_v36 = vpack.c.bf16 %v5504_v35, %v5503_v6  ;;  %v5586_v6 = vld [vmem:[%s6103_s26] sm:$0xff] }
 0xb2d   : > { %v5507_v37 = vpop.permute.xlu1 %5506  ;;  %v2299_v41 = vpop.permute.xlu0 %2298 }
 0xb2e   : > { %v5509_v1 = vunpack.i.h.bf16 %v5507_v37  ;;  %v5508_v52 = vunpack.i.l.bf16 %v5507_v37  ;;  %5163 = vmatpush3.bf16.msra.mxu1 %v2299_v41  ;;  %2363 = vrot.lane.b32.xlu1 %v2261_v36, %s7299_s1 }
 0xb2f   : > { %5164 = vmatprep.subr.bf16.mxu1 %v5601_v16 }
 0xb30   : > { %v2454_v47 = vpack.c.bf16 %v5509_v1, %v5508_v52  ;;  %v5587_v1 = vld [vmem:[%s6103_s26 + $0x8] sm:$0xff]  ;;  %s7301_s26 = smov 72  }
 0xb31   : > { %v2301_v0 = vpop.permute.xlu1 %2300  ;;  %v2303_v46 = vpop.permute.xlu0 %2302 }
 0xb32   : > { %2470 = vrot.lane.b32.xlu0 %v2454_v47, %s7299_s1  ;;  %5165 = vmatpush3.bf16.msra.mxu1 %v2301_v0 }
 0xb33   : > { %2525 = vperm.xlu1 %5444, %v2521_v38   ;;  %5166 = vmatprep.subr.bf16.mxu1 %v5601_v16 }
 0xb35   : > { %v2360_v48 = vpop.permute.xlu1 %2359  ;;  %v2467_v49 = vpop.permute.xlu0 %2466 }
 0xb36   : > { %5173 = vmatpush3.bf16.msra.mxu0 %v2360_v48  ;;  %2530 = vperm.xlu0 %5443, %v2522_v39  }
 0xb37   : > { %5167 = vmatpush3.bf16.msra.mxu1 %v2303_v46  ;;  %5174 = vmatprep.subr.bf16.mxu0 %v5601_v16 }
 0xb38   : > { %5182 = vmatprep.subr.bf16.mxu1 %v5601_v16 }
 0xb39   : > { %v2362_v19 = vpop.permute.xlu1 %2361  ;;  %v2469_v21 = vpop.permute.xlu0 %2468 }
 0xb3a   : > { %5169 = vmatmul.mubr.msk.bf16.vlgmr.msra.gmra.mrb[28].mxu1 %vm1962_vm2, %v5573_v55  ;;  %5175 = vmatpush3.bf16.msra.mxu0 %v2362_v19 }
 0xb3b   : > { %5183 = vmatpush3.bf16.msra.mxu1 %v2467_v49  ;;  %5176 = vmatprep.subr.bf16.mxu0 %v5601_v16 }
 0xb3c   : > { %5184 = vmatprep.subr.bf16.mxu1 %v5601_v16  ;;  %5188 = vmatprep.mubr.msk.bf16.mxu1 %vm5612_vm15, %v5601_v16 }
 0xb3f   : > { %5185 = vmatpush3.bf16.msra.mxu1 %v2469_v21 }
 0xb40   : > { %5186 = vmatprep.subr.bf16.mxu1 %v5601_v16 }
 0xba0   : > { %v2364_v51 = vpop.permute.xlu1 %2363 }
 0xba1   : > { %5177 = vmatpush3.bf16.msra.mxu0 %v2364_v51 }
 0xba2   : > { %5192 = vmatprep.subr.bf16.mxu0 %v5601_v16 }
 0xba4   : > { %v2471_v34 = vpop.permute.xlu0 %2470  ;;  %5179 = vmatmul.mubr.msk.bf16.vlgmr.msra.gmra.mrb[32].mxu0 %vm1962_vm2, %v5574_v28 }
 0xba5   : > { %5187 = vmatpush3.bf16.msra.mxu1 %v2471_v34  ;;  %5198 = vmatprep.mubr.msk.bf16.mxu0 %vm5612_vm15, %v5601_v16 }
 0xba6   : > { %5202 = vmatprep.subr.bf16.mxu1 %v5601_v16 }
 0xba8   : > { %5189 = vmatmul.mubr.msk.bf16.vlgmr.msra.gmra.mrb[32].mxu1 %vm1962_vm2, %v5575_v56 }
 0xba9   : > { %5208 = vmatprep.mubr.msk.bf16.mxu1 %vm5612_vm15, %v5601_v16 }
 0xbb2   : > { %v2526_v31 = vpop.permute.xlu1 %2525 }
 0xbb5   : > { %v2531_v35 = vpop.permute.xlu0 %2530 }
 0xc0d   : > { %v2344_v57 = vpop.f32.mrb[28].mxu1 }
 0xc0e   : > { %v5170_v60 = vpop.f32.mrb[29].mxu1 }
 0xc0f   : > { %v2347_v8 = vpop.f32.mrb[30].mxu1 }
 0xc10   : > { %v5171_v13 = vpop.f32.mrb[31].mxu1 }
 0xc77   : > { %v2405_v20 = vpop.f32.mrb[32].mxu0 }
 0xc78   : > { %v2406_v4 = vadd.f32 %v2405_v20, %v2344_v57  ;;  %v5180_v10 = vpop.f32.mrb[33].mxu0 }
 0xc79   : > { %v2408_v11 = vpop.f32.mrb[34].mxu0 }
 0xc7a   : > { %v2409_v26 = vadd.f32 %v2408_v11, %v2347_v8  ;;  %v5181_v12 = vpop.f32.mrb[35].mxu0 }
 0xc7b   : > { %v2512_v15 = vpop.f32.mrb[32].mxu1 }
 0xc7c   : > { %v2519_v27 = vadd.f32 %v2512_v15, %v2406_v4  ;;  %v5190_v62 = vpop.f32.mrb[33].mxu1 }
 0xc7d   : > { %v2515_v58 = vpop.f32.mrb[34].mxu1 }
 0xc7e   : > { %v2533_v32 = vadd.f32 %v2526_v31, %v2519_v27  ;;  %v2520_v33 = vadd.f32 %v2515_v58, %v2409_v26  ;;  %v5191_v5 = vpop.f32.mrb[35].mxu1 }
 0xc80   : > { %v2535_v36 = vadd.f32 %v5586_v6, %v2533_v32  ;;  %v2534_v37 = vadd.f32 %v2531_v35, %v2520_v33 }
 0xc82   : > { %v6591_v41 = vmax.f32 %v2535_v36, 0.0  ;;  %v2536_v52 = vadd.f32 %v5587_v1, %v2534_v37 }
 0xc84   : > { %v6594_v47 = vmax.f32 %v2536_v52, 0.0  ;;  %2539 = vrot.lane.b32.xlu1 %v6591_v41, %s7300_s7 }
 0xc86   : > { %2542 = vrot.lane.b32.xlu0 %v6594_v47, %s7300_s7  ;;  %v5510_v6 = vpack.i.bf16 %v6594_v47, %v6591_v41 }
 0xcf6   : > { %v2540_v38 = vpop.permute.xlu1 %2539 }
 0xcf7   : > { %v2541_v0 = vsel %vm1839_vm1, %v2540_v38, %v6591_v41 }
 0xcf8   : > { %v2543_v46 = vpop.permute.xlu0 %2542  ;;  %2545 = vrot.lane.b32.xlu1 %v2541_v0, %s7300_s7 }
 0xcf9   : > { %v2544_v39 = vsel %vm1839_vm1, %v2543_v46, %v6594_v47 }
 0xcfa   : > { %2547 = vrot.lane.b32.xlu0 %v2544_v39, %s7300_s7 }
 0xd6a   : > { %v2546_v48 = vpop.permute.xlu1 %2545 }
 0xd6b   : > { %v2549_v55 = vsel %vm1839_vm1, %v2546_v48, %v6591_v41 }
 0xd6c   : > { %v2548_v49 = vpop.permute.xlu0 %2547  ;;  %2553 = vrot.lane.b32.xlu1 %v2549_v55, %s7301_s26  ;;  %v2600_v19 = vmul.f32 %v2549_v55, %v6272_v7  ;;  %v2573_v51 = vmul.f32 %v2549_v55, %v6294_v25  ;;  %v2766_v28 = vmul.f32 %v2549_v55, %v6292_v24  ;;  %v2598_v34 = vmul.f32 %v6355_v61, %v2549_v55 }
 0xd6d   : > { %v2550_v21 = vsel %vm1839_vm1, %v2548_v49, %v6594_v47 }
 0xd6e   : > { %2555 = vrot.lane.b32.xlu0 %v2550_v21, %s7301_s26  ;;  %v2601_v56 = vmul.f32 %v2550_v21, %v6272_v7  ;;  %v2574_v57 = vmul.f32 %v2550_v21, %v6294_v25  ;;  %v2767_v60 = vmul.f32 %v2550_v21, %v6292_v24  ;;  %v2599_v8 = vmul.f32 %v6355_v61, %v2550_v21 }
 0xd70   : > { %2746 = vrot.lane.b32.xlu1 %v2549_v55, %s7296_s8  ;;  %v5515_v13 = vpack.i.bf16 %v2601_v56, %v2600_v19  ;;  %v5520_v20 = vpack.i.bf16 %v2574_v57, %v2573_v51  ;;  %v5525_v4 = vpack.i.bf16 %v2767_v60, %v2766_v28  ;;  %v2618_v10 = vpack.c.bf16 %v2599_v8, %v2598_v34 }
 0xd72   : > { %2748 = vrot.lane.b32.xlu0 %v2550_v21, %s7296_s8 }
 0xdde   : > { %v2554_v11 = vpop.permute.xlu1 %2553 }
 0xddf   : > { %2559 = vrot.lane.b32.xlu1 %v2554_v11, %s7300_s7 }
 0xde0   : > { %v2556_v26 = vpop.permute.xlu0 %2555 }
 0xde1   : > { %2562 = vrot.lane.b32.xlu0 %v2556_v26, %s7300_s7 }
 0xde2   : > { %v2747_v12 = vpop.permute.xlu1 %2746 }
 0xde3   : > { %2752 = vrot.lane.b32.xlu1 %v2747_v12, %s7300_s7 }
 0xde4   : > { %v2749_v15 = vpop.permute.xlu0 %2748 }
 0xde5   : > { %2755 = vrot.lane.b32.xlu0 %v2749_v15, %s7300_s7 }
 0xe51   : > { %v2560_v27 = vpop.permute.xlu1 %2559 }
 0xe52   : > { %v2561_v62 = vsel %vm1839_vm1, %v2560_v27, %v2554_v11 }
 0xe53   : > { %v2563_v31 = vpop.permute.xlu0 %2562  ;;  %2565 = vrot.lane.b32.xlu1 %v2561_v62, %s7300_s7 }
 0xe54   : > { %v2564_v58 = vsel %vm1839_vm1, %v2563_v31, %v2556_v26 }
 0xe55   : > { %2567 = vrot.lane.b32.xlu0 %v2564_v58, %s7300_s7  ;;  %v2753_v32 = vpop.permute.xlu1 %2752 }
 0xe56   : > { %v2754_v33 = vsel %vm1839_vm1, %v2753_v32, %v2747_v12 }
 0xe57   : > { %v2756_v5 = vpop.permute.xlu0 %2755  ;;  %2758 = vrot.lane.b32.xlu1 %v2754_v33, %s7300_s7 }
 0xe58   : > { %v2757_v35 = vsel %vm1839_vm1, %v2756_v5, %v2749_v15 }
 0xe59   : > { %2760 = vrot.lane.b32.xlu0 %v2757_v35, %s7300_s7 }
 0xe5b   : > { %5511 = vrot.lane.b32.xlu1 %v5510_v6, %s7302_s5 }
 0xe5d   : > { %5516 = vrot.lane.b32.xlu0 %v5515_v13, %s7303_s3 }
 0xe5f   : > { %5521 = vrot.lane.b32.xlu1 %v5520_v20, %s7297_s27 }
 0xe61   : > { %5526 = vrot.lane.b32.xlu0 %v5525_v4, %s7298_s9 }
 0xec5   : > { %v2566_v36 = vpop.permute.xlu1 %2565 }
 0xec6   : > { %v2569_v37 = vsel %vm1839_vm1, %v2566_v36, %v2554_v11 }
 0xec7   : > { %v2568_v1 = vpop.permute.xlu0 %2567  ;;  %v2575_v38 = vmul.f32 %v2569_v37, %v6315_v40 }
 0xec8   : > { %v2570_v52 = vsel %vm1839_vm1, %v2568_v1, %v2556_v26  ;;  %v2571_v26 = vmul.f32 %v6373_v22, %v2569_v37 }
 0xec9   : > { %v2576_v0 = vmul.f32 %v2570_v52, %v6315_v40  ;;  %v2759_v46 = vpop.permute.xlu1 %2758  ;;  %v2572_v13 = vmul.f32 %v6373_v22, %v2570_v52 }
 0xeca   : > { %v2762_v39 = vsel %vm1839_vm1, %v2759_v46, %v2747_v12 }
 0xecb   : > { %v5530_v48 = vpack.i.bf16 %v2576_v0, %v2575_v38  ;;  %v2761_v55 = vpop.permute.xlu0 %2760  ;;  %v2768_v19 = vmul.f32 %v2762_v39, %v6323_v50  ;;  %v2764_v12 = vmul.f32 %v2762_v39, %v6375_v23  ;;  %v2593_v62 = vpack.c.bf16 %v2572_v13, %v2571_v26  ;;  %v5578_v13 = vld [vmem:[%s7214_s14 + $0x10] sm:$0xff]  }
 0xecc   : > { %v2763_v49 = vsel %vm1839_vm1, %v2761_v55, %v2749_v15 }
 0xecd   : > { %v2769_v21 = vmul.f32 %v2763_v49, %v6323_v50  ;;  %v5512_v51 = vpop.permute.xlu1 %5511  ;;  %5531 = vrot.lane.b32.xlu1 %v5530_v48, %s7303_s3  ;;  %v2765_v20 = vmul.f32 %v2763_v49, %v6375_v23  ;;  %v2855_v48 = vld [vmem:[%s7215_s15] sm:$0xff] }
 0xece   : > { %v5514_v34 = vunpack.i.h.bf16 %v5512_v51  ;;  %v5513_v56 = vunpack.i.l.bf16 %v5512_v51  ;;  %v5576_v51 = vld [vmem:[%s7214_s14 + $0x8] sm:$0xff]  }
 0xecf   : > { %v5535_v28 = vpack.i.bf16 %v2769_v21, %v2768_v19  ;;  %v5517_v57 = vpop.permute.xlu0 %5516  ;;  %v2786_v31 = vpack.c.bf16 %v2765_v20, %v2764_v12  ;;  %v2856_v19 = vld [vmem:[%s7215_s15 + $0x8] sm:$0xff] }
 0xed0   : > { %v5519_v60 = vunpack.i.h.bf16 %v5517_v57  ;;  %v5518_v8 = vunpack.i.l.bf16 %v5517_v57  ;;  %v2619_v11 = vpack.c.bf16 %v5514_v34, %v5513_v56 }
 0xed1   : > { %5536 = vrot.lane.b32.xlu0 %v5535_v28, %s7303_s3  ;;  %2632 = vrot.lane.b32.xlu1 %v2618_v10, %s7299_s1  ;;  %v5522_v15 = vpop.permute.xlu1 %5521 }
 0xed2   : > { %v2620_v4 = vpack.c.bf16 %v5519_v60, %v5518_v8  ;;  %v5524_v58 = vunpack.i.h.bf16 %v5522_v15  ;;  %v5523_v10 = vunpack.i.l.bf16 %v5522_v15  ;;  %v5577_v60 = vld [vmem:[%s7214_s14] sm:$0xff]  }
 0xed3   : > { %v5527_v27 = vpop.permute.xlu0 %5526 }
 0xed4   : > { %v5529_v32 = vunpack.i.h.bf16 %v5527_v27  ;;  %v5528_v33 = vunpack.i.l.bf16 %v5527_v27  ;;  %v2594_v5 = vpack.c.bf16 %v5524_v58, %v5523_v10 }
 0xed5   : > { %2634 = vrot.lane.b32.xlu0 %v2619_v11, %s7299_s1  ;;  %2636 = vrot.lane.b32.xlu1 %v2620_v4, %s7299_s1 }
 0xed6   : > { %v2787_v35 = vpack.c.bf16 %v5529_v32, %v5528_v33 }
 0xed9   : > { %2693 = vrot.lane.b32.xlu0 %v2593_v62, %s7299_s1  ;;  %2800 = vrot.lane.b32.xlu1 %v2786_v31, %s7299_s1 }
 0xedd   : > { %2802 = vrot.lane.b32.xlu1 %v2787_v35, %s7299_s1  ;;  %2695 = vrot.lane.b32.xlu0 %v2594_v5, %s7299_s1 }
 0xf3f   : > { %v5532_v6 = vpop.permute.xlu1 %5531 }
 0xf40   : > { %v5534_v36 = vunpack.i.h.bf16 %v5532_v6  ;;  %v5533_v37 = vunpack.i.l.bf16 %v5532_v6 }
 0xf42   : > { %v2595_v1 = vpack.c.bf16 %v5534_v36, %v5533_v37 }
 0xf43   : > { %v5537_v52 = vpop.permute.xlu0 %5536  ;;  %v2633_v38 = vpop.permute.xlu1 %2632 }
 0xf44   : > { %v5539_v0 = vunpack.i.h.bf16 %v5537_v52  ;;  %v5538_v46 = vunpack.i.l.bf16 %v5537_v52  ;;  %5193 = vmatpush3.bf16.msra.mxu0 %v2633_v38  ;;  %2697 = vrot.lane.b32.xlu0 %v2595_v1, %s7299_s1 }
 0xf45   : > { %5194 = vmatprep.subr.bf16.mxu0 %v5601_v16 }
 0xf46   : > { %v2788_v39 = vpack.c.bf16 %v5539_v0, %v5538_v46 }
 0xf47   : > { %v2635_v55 = vpop.permute.xlu0 %2634  ;;  %v2637_v49 = vpop.permute.xlu1 %2636 }
 0xf48   : > { %2804 = vrot.lane.b32.xlu1 %v2788_v39, %s7299_s1  ;;  %5195 = vmatpush3.bf16.msra.mxu0 %v2635_v55 }
 0xf49   : > { %2859 = vperm.xlu0 %5443, %v2855_v48   ;;  %5196 = vmatprep.subr.bf16.mxu0 %v5601_v16 }
 0xf4b   : > { %v2694_v21 = vpop.permute.xlu0 %2693  ;;  %v2801_v28 = vpop.permute.xlu1 %2800 }
 0xf4c   : > { %5203 = vmatpush3.bf16.msra.mxu1 %v2694_v21  ;;  %2864 = vperm.xlu1 %5444, %v2856_v19  }
 0xf4d   : > { %5197 = vmatpush3.bf16.msra.mxu0 %v2637_v49  ;;  %5204 = vmatprep.subr.bf16.mxu1 %v5601_v16 }
 0xf4e   : > { %5212 = vmatprep.subr.bf16.mxu0 %v5601_v16 }
 0xf4f   : > { %v2696_v34 = vpop.permute.xlu0 %2695  ;;  %v2803_v56 = vpop.permute.xlu1 %2802 }
 0xf50   : > { %5199 = vmatmul.mubr.msk.bf16.vlgmr.msra.gmra.mrb[36].mxu0 %vm1962_vm2, %v5576_v51  ;;  %5205 = vmatpush3.bf16.msra.mxu1 %v2696_v34 }
 0xf51   : > { %5213 = vmatpush3.bf16.msra.mxu0 %v2801_v28  ;;  %5206 = vmatprep.subr.bf16.mxu1 %v5601_v16 }
 0xf52   : > { %5214 = vmatprep.subr.bf16.mxu0 %v5601_v16  ;;  %5218 = vmatprep.mubr.msk.bf16.mxu0 %vm5612_vm15, %v5601_v16 }
 0xf55   : > { %5215 = vmatpush3.bf16.msra.mxu0 %v2803_v56 }
 0xf56   : > { %5216 = vmatprep.subr.bf16.mxu0 %v5601_v16 }
 0xfb6   : > { %v2698_v57 = vpop.permute.xlu0 %2697 }
 0xfb7   : > { %5207 = vmatpush3.bf16.msra.mxu1 %v2698_v57 }
 0xfb8   : > { %5222 = vmatprep.subr.bf16.mxu1 %v5601_v16 }
 0xfba   : > { %v2805_v8 = vpop.permute.xlu1 %2804  ;;  %5209 = vmatmul.mubr.msk.bf16.vlgmr.msra.gmra.mrb[36].mxu1 %vm1962_vm2, %v5577_v60 }
 0xfbb   : > { %5217 = vmatpush3.bf16.msra.mxu0 %v2805_v8  ;;  %5228 = vmatprep.mubr.msk.bf16.mxu1 %vm5612_vm15, %v5601_v16 }
 0xfbc   : > { %5232 = vmatprep.subr.bf16.mxu0 %v5601_v16 }
 0xfbe   : > { %5219 = vmatmul.mubr.msk.bf16.vlgmr.msra.gmra.mrb[40].mxu0 %vm1962_vm2, %v5578_v13 }
 0xfbf   : > { %5238 = vmatprep.mubr.msk.bf16.mxu0 %vm5612_vm15, %v5601_v16 }
 0xfc8   : > { %v2860_v5 = vpop.permute.xlu0 %2859 }
 0xfcb   : > { %v2865_v1 = vpop.permute.xlu1 %2864 }
0x1023   : > { %v2678_v20 = vpop.f32.mrb[36].mxu0 }
0x1024   : > { %v5200_v4 = vpop.f32.mrb[37].mxu0 }
0x1025   : > { %v2681_v11 = vpop.f32.mrb[38].mxu0 }
0x1026   : > { %v5201_v26 = vpop.f32.mrb[39].mxu0 }
0x108d   : > { %v2739_v12 = vpop.f32.mrb[36].mxu1 }
0x108e   : > { %v2740_v15 = vadd.f32 %v2739_v12, %v2678_v20  ;;  %v5210_v27 = vpop.f32.mrb[37].mxu1 }
0x108f   : > { %v2742_v62 = vpop.f32.mrb[38].mxu1 }
0x1090   : > { %v2743_v31 = vadd.f32 %v2742_v62, %v2681_v11  ;;  %v5211_v58 = vpop.f32.mrb[39].mxu1 }
0x1091   : > { %v2846_v10 = vpop.f32.mrb[40].mxu0 }
0x1092   : > { %v2853_v32 = vadd.f32 %v2846_v10, %v2740_v15  ;;  %v5220_v33 = vpop.f32.mrb[41].mxu0 }
0x1093   : > { %v2849_v35 = vpop.f32.mrb[42].mxu0 }
0x1094   : > { %v2867_v6 = vadd.f32 %v2860_v5, %v2853_v32  ;;  %v2854_v36 = vadd.f32 %v2849_v35, %v2743_v31  ;;  %v5221_v37 = vpop.f32.mrb[43].mxu0 }
0x1096   : > { %v2869_v52 = vmax.f32 %v2867_v6, 0.0  ;;  %v2868_v38 = vadd.f32 %v2865_v1, %v2854_v36 }
0x1098   : > { %v2870_v0 = vmax.f32 %v2868_v38, 0.0  ;;  %2871 = vrot.lane.b32.xlu0 %v2869_v52, %s7300_s7 }
0x109a   : > { %2874 = vrot.lane.b32.xlu1 %v2870_v0, %s7300_s7  ;;  %v5540_v5 = vpack.i.bf16 %v2870_v0, %v2869_v52 }
0x110a   : > { %v2872_v46 = vpop.permute.xlu0 %2871 }
0x110b   : > { %v2873_v39 = vsel %vm1839_vm1, %v2872_v46, %v2869_v52 }
0x110c   : > { %v2875_v48 = vpop.permute.xlu1 %2874  ;;  %2877 = vrot.lane.b32.xlu0 %v2873_v39, %s7300_s7 }
0x110d   : > { %v2876_v55 = vsel %vm1839_vm1, %v2875_v48, %v2870_v0 }
0x110e   : > { %2879 = vrot.lane.b32.xlu1 %v2876_v55, %s7300_s7 }
0x117e   : > { %v2878_v49 = vpop.permute.xlu0 %2877 }
0x117f   : > { %v2881_v19 = vsel %vm1839_vm1, %v2878_v49, %v2869_v52 }
0x1180   : > { %v2880_v21 = vpop.permute.xlu1 %2879  ;;  %2885 = vrot.lane.b32.xlu0 %v2881_v19, %s7301_s26  ;;  %v2932_v51 = vmul.f32 %v2881_v19, %v6272_v7  ;;  %v2905_v34 = vmul.f32 %v2881_v19, %v6294_v25  ;;  %v3098_v56 = vmul.f32 %v2881_v19, %v6292_v24  ;;  %v2930_v57 = vmul.f32 %v6355_v61, %v2881_v19 }
0x1181   : > { %v2882_v28 = vsel %vm1839_vm1, %v2880_v21, %v2870_v0 }
0x1182   : > { %2887 = vrot.lane.b32.xlu1 %v2882_v28, %s7301_s26  ;;  %v2933_v60 = vmul.f32 %v2882_v28, %v6272_v7  ;;  %v2906_v8 = vmul.f32 %v2882_v28, %v6294_v25  ;;  %v3099_v13 = vmul.f32 %v2882_v28, %v6292_v24  ;;  %v2931_v20 = vmul.f32 %v6355_v61, %v2882_v28 }
0x1184   : > { %3078 = vrot.lane.b32.xlu0 %v2881_v19, %s7296_s8  ;;  %v5545_v4 = vpack.i.bf16 %v2933_v60, %v2932_v51  ;;  %v5550_v11 = vpack.i.bf16 %v2906_v8, %v2905_v34  ;;  %v5555_v26 = vpack.i.bf16 %v3099_v13, %v3098_v56  ;;  %v2950_v12 = vpack.c.bf16 %v2931_v20, %v2930_v57 }
0x1186   : > { %3080 = vrot.lane.b32.xlu1 %v2882_v28, %s7296_s8 }
0x11f2   : > { %v2886_v15 = vpop.permute.xlu0 %2885 }
0x11f3   : > { %2891 = vrot.lane.b32.xlu0 %v2886_v15, %s7300_s7 }
0x11f4   : > { %v2888_v27 = vpop.permute.xlu1 %2887 }
0x11f5   : > { %2894 = vrot.lane.b32.xlu1 %v2888_v27, %s7300_s7 }
0x11f6   : > { %v3079_v7 = vpop.permute.xlu0 %3078 }
0x11f7   : > { %3084 = vrot.lane.b32.xlu0 %v3079_v7, %s7300_s7 }
0x11f8   : > { %v3081_v24 = vpop.permute.xlu1 %3080 }
0x11f9   : > { %3087 = vrot.lane.b32.xlu1 %v3081_v24, %s7300_s7 }
0x1265   : > { %v2892_v25 = vpop.permute.xlu0 %2891 }
0x1266   : > { %v2893_v61 = vsel %vm1839_vm1, %v2892_v25, %v2886_v15 }
0x1267   : > { %v2895_v62 = vpop.permute.xlu1 %2894  ;;  %2897 = vrot.lane.b32.xlu0 %v2893_v61, %s7300_s7 }
0x1268   : > { %v2896_v31 = vsel %vm1839_vm1, %v2895_v62, %v2888_v27 }
0x1269   : > { %2899 = vrot.lane.b32.xlu1 %v2896_v31, %s7300_s7  ;;  %v3085_v58 = vpop.permute.xlu0 %3084 }
0x126a   : > { %v3086_v10 = vsel %vm1839_vm1, %v3085_v58, %v3079_v7 }
0x126b   : > { %v3088_v32 = vpop.permute.xlu1 %3087  ;;  %3090 = vrot.lane.b32.xlu0 %v3086_v10, %s7300_s7 }
0x126c   : > { %v3089_v33 = vsel %vm1839_vm1, %v3088_v32, %v3081_v24 }
0x126d   : > { %3092 = vrot.lane.b32.xlu1 %v3089_v33, %s7300_s7 }
0x126f   : > { %5541 = vrot.lane.b32.xlu0 %v5540_v5, %s7302_s5  ;;  %s7308_s5 = smov 127  }
0x1271   : > { %5546 = vrot.lane.b32.xlu1 %v5545_v4, %s7303_s3 }
0x1273   : > { %5551 = vrot.lane.b32.xlu0 %v5550_v11, %s7297_s27  ;;  %s7307_s27 = smov 1  }
0x1275   : > { %5556 = vrot.lane.b32.xlu1 %v5555_v26, %s7298_s9  ;;  %s5614_s9 = smov 104  }
0x12d9   : > { %v2898_v35 = vpop.permute.xlu0 %2897 }
0x12da   : > { %v2901_v6 = vsel %vm1839_vm1, %v2898_v35, %v2886_v15  ;;  %v3187_v35 = vld [vmem:[%s7217_s17] sm:$0xff] }
0x12db   : > { %v2900_v36 = vpop.permute.xlu1 %2899  ;;  %v2907_v1 = vmul.f32 %v2901_v6, %v6315_v40 }
0x12dc   : > { %v2902_v37 = vsel %vm1839_vm1, %v2900_v36, %v2888_v27 }
0x12dd   : > { %v2908_v38 = vmul.f32 %v2902_v37, %v6315_v40  ;;  %v3091_v46 = vpop.permute.xlu0 %3090  ;;  %v2904_v57 = vmul.f32 %v6373_v22, %v2902_v37  ;;  %v3188_v37 = vld [vmem:[%s7217_s17 + $0x8] sm:$0xff] }
0x12de   : > { %v3094_v52 = vsel %vm1839_vm1, %v3091_v46, %v3079_v7  ;;  %v5579_v46 = vld [vmem:[%s7216_s16 + $0x8] sm:$0xff]  }
0x12df   : > { %v5560_v0 = vpack.i.bf16 %v2908_v38, %v2907_v1  ;;  %v3093_v39 = vpop.permute.xlu1 %3092  ;;  %v3100_v55 = vmul.f32 %v3094_v52, %v6323_v50  ;;  %v3096_v20 = vmul.f32 %v3094_v52, %v6375_v23  ;;  %v3207_v1 = vld [vmem:[%s7219_s19] sm:$0xff] }
0x12e0   : > { %v3095_v48 = vsel %vm1839_vm1, %v3093_v39, %v3081_v24  ;;  %v1827_v52 = vld [vmem:[%s7304_s28] sm:$0xff]  ;;  %vm3213_vm1 = vcmask 130048   ;;  %s5613_s28 = smov 96  }
0x12e1   : > { %v3101_v49 = vmul.f32 %v3095_v48, %v6323_v50  ;;  %v5542_v19 = vpop.permute.xlu0 %5541  ;;  %5561 = vrot.lane.b32.xlu0 %v5560_v0, %s7303_s3  ;;  %v3097_v60 = vmul.f32 %v3095_v48, %v6375_v23  ;;  %v2903_v50 = vmul.f32 %v6373_v22, %v2901_v6 }
0x12e2   : > { %v5544_v51 = vunpack.i.h.bf16 %v5542_v19  ;;  %v5543_v28 = vunpack.i.l.bf16 %v5542_v19 }
0x12e3   : > { %v5565_v21 = vpack.i.bf16 %v3101_v49, %v3100_v55  ;;  %v5547_v34 = vpop.permute.xlu1 %5546  ;;  %v2925_v26 = vpack.c.bf16 %v2904_v57, %v2903_v50  ;;  %v3118_v15 = vpack.c.bf16 %v3097_v60, %v3096_v20  ;;  %v5580_v49 = vld [vmem:[%s7216_s16] sm:$0xff]  }
0x12e4   : > { %v5549_v56 = vunpack.i.h.bf16 %v5547_v34  ;;  %v5548_v40 = vunpack.i.l.bf16 %v5547_v34  ;;  %v2951_v13 = vpack.c.bf16 %v5544_v51, %v5543_v28 }
0x12e5   : > { %5566 = vrot.lane.b32.xlu1 %v5565_v21, %s7303_s3  ;;  %2964 = vrot.lane.b32.xlu0 %v2950_v12, %s7299_s1  ;;  %v5552_v4 = vpop.permute.xlu0 %5551  ;;  %v5581_v21 = vld [vmem:[%s7216_s16 + $0x10] sm:$0xff]   ;;  %s5615_s3 = smov 88  }
0x12e6   : > { %v2952_v8 = vpack.c.bf16 %v5549_v56, %v5548_v40  ;;  %v5554_v27 = vunpack.i.h.bf16 %v5552_v4  ;;  %v5553_v12 = vunpack.i.l.bf16 %v5552_v4 }
0x12e7   : > { %v5557_v11 = vpop.permute.xlu1 %5556 }
0x12e8   : > { %v5559_v7 = vunpack.i.h.bf16 %v5557_v11  ;;  %v5558_v24 = vunpack.i.l.bf16 %v5557_v11  ;;  %v2926_v25 = vpack.c.bf16 %v5554_v27, %v5553_v12 }
0x12e9   : > { %2966 = vrot.lane.b32.xlu1 %v2951_v13, %s7299_s1  ;;  %2968 = vrot.lane.b32.xlu0 %v2952_v8, %s7299_s1 }
0x12ea   : > { %v3119_v22 = vpack.c.bf16 %v5559_v7, %v5558_v24 }
0x12ed   : > { %3025 = vrot.lane.b32.xlu1 %v2925_v26, %s7299_s1  ;;  %3132 = vrot.lane.b32.xlu0 %v3118_v15, %s7299_s1 }
0x12f1   : > { %3134 = vrot.lane.b32.xlu0 %v3119_v22, %s7299_s1  ;;  %3027 = vrot.lane.b32.xlu1 %v2926_v25, %s7299_s1 }
0x1353   : > { %v5562_v23 = vpop.permute.xlu0 %5561 }
0x1354   : > { %v5564_v61 = vunpack.i.h.bf16 %v5562_v23  ;;  %v5563_v62 = vunpack.i.l.bf16 %v5562_v23 }
0x1356   : > { %v2927_v31 = vpack.c.bf16 %v5564_v61, %v5563_v62 }
0x1357   : > { %v5567_v58 = vpop.permute.xlu1 %5566  ;;  %v2965_v10 = vpop.permute.xlu0 %2964 }
0x1358   : > { %v5569_v32 = vunpack.i.h.bf16 %v5567_v58  ;;  %v5568_v33 = vunpack.i.l.bf16 %v5567_v58  ;;  %5223 = vmatpush3.bf16.msra.mxu1 %v2965_v10  ;;  %3029 = vrot.lane.b32.xlu1 %v2927_v31, %s7299_s1 }
0x1359   : > { %5224 = vmatprep.subr.bf16.mxu1 %v5601_v16 }
0x135a   : > { %v3120_v5 = vpack.c.bf16 %v5569_v32, %v5568_v33  ;;  %v3205_v32 = vld [vmem:[%s7218_s18] sm:$0xf] }
0x135b   : > { %v2967_v6 = vpop.permute.xlu1 %2966  ;;  %v2969_v36 = vpop.permute.xlu0 %2968 }
0x135c   : > { %3136 = vrot.lane.b32.xlu0 %v3120_v5, %s7299_s1  ;;  %5225 = vmatpush3.bf16.msra.mxu1 %v2967_v6 }
0x135d   : > { %3191 = vperm.xlu1 %5444, %v3187_v35   ;;  %5226 = vmatprep.subr.bf16.mxu1 %v5601_v16 }
0x135f   : > { %v3026_v38 = vpop.permute.xlu1 %3025  ;;  %v3133_v0 = vpop.permute.xlu0 %3132 }
0x1360   : > { %5233 = vmatpush3.bf16.msra.mxu0 %v3026_v38  ;;  %3196 = vperm.xlu0 %5443, %v3188_v37  }
0x1361   : > { %5227 = vmatpush3.bf16.msra.mxu1 %v2969_v36  ;;  %3210 = vperm.xlu1 %5444, %v3207_v1  }
0x1362   : > { %5234 = vmatprep.subr.bf16.mxu0 %v5601_v16  ;;  %5242 = vmatprep.subr.bf16.mxu1 %v5601_v16 }
0x1363   : > { %v3028_v39 = vpop.permute.xlu1 %3027  ;;  %v3135_v48 = vpop.permute.xlu0 %3134 }
0x1364   : > { %1830 = vperm.xlu0 %5443, %v1827_v52   ;;  %5229 = vmatmul.mubr.msk.bf16.vlgmr.msra.gmra.mrb[40].mxu1 %vm1962_vm2, %v5579_v46 }
0x1365   : > { %5235 = vmatpush3.bf16.msra.mxu0 %v3028_v39  ;;  %5243 = vmatpush3.bf16.msra.mxu1 %v3133_v0 }
0x1366   : > { %5244 = vmatprep.subr.bf16.mxu1 %v5601_v16  ;;  %5236 = vmatprep.subr.bf16.mxu0 %v5601_v16 }
0x1367   : > { %5248 = vmatprep.mubr.msk.bf16.mxu1 %vm5612_vm15, %v5601_v16 }
0x1369   : > { %5245 = vmatpush3.bf16.msra.mxu1 %v3135_v48 }
0x136a   : > { %5246 = vmatprep.subr.bf16.mxu1 %v5601_v16 }
0x13ca   : > { %v3030_v55 = vpop.permute.xlu1 %3029 }
0x13cb   : > { %5237 = vmatpush3.bf16.msra.mxu0 %v3030_v55 }
0x13cc   : > { %5252 = vmatprep.subr.bf16.mxu0 %v5601_v16 }
0x13ce   : > { %v3137_v19 = vpop.permute.xlu0 %3136  ;;  %5239 = vmatmul.mubr.msk.bf16.vlgmr.msra.gmra.mrb[44].mxu0 %vm1962_vm2, %v5580_v49 }
0x13cf   : > { %5247 = vmatpush3.bf16.msra.mxu1 %v3137_v19  ;;  %5254 = vmatprep.mubr.msk.bf16.mxu0 %vm5612_vm15, %v5601_v16 }
0x13d0   : > { %5258 = vmatprep.subr.bf16.mxu1 %v5601_v16 }
0x13d2   : > { %5249 = vmatmul.mubr.msk.bf16.vlgmr.msra.gmra.mrb[44].mxu1 %vm1962_vm2, %v5581_v21 }
0x13d3   : > { %5260 = vmatprep.mubr.msk.bf16.mxu1 %vm5612_vm15, %v5601_v16 }
0x13dc   : > { %v3192_v7 = vpop.permute.xlu1 %3191 }
0x13df   : > { %v3197_v51 = vpop.permute.xlu0 %3196 }
0x13e0   : > { %v3211_v5 = vpop.permute.xlu1 %3210 }
0x13e3   : > { %v1831_v28 = vpop.permute.xlu0 %1830 }
0x13e4   : > { %v1833_v34 = vadd.f32 %v1831_v28, %v6494_v59  ;;  %v1834_v33 = vadd.f32 %v1831_v28, %v6496_v63 }
0x13e6   : > { %v1835_v56 = vadd.f32 %v1833_v34, %v6054_v42  ;;  %v1836_v1 = vadd.f32 %v1834_v33, %v6056_v43 }
0x13e8   : > { %v6796_v40 = vmax.f32 %v1835_v56, 0.0  ;;  %v6839_v63 = vmax.f32 %v1836_v1, 0.0 }
0x13ea   : > { %4077 = vrot.lane.b32.xlu0 %v6796_v40, %s7305_s0 }
0x1437   : > { %v3010_v57 = vpop.f32.mrb[40].mxu1 }
0x1438   : > { %v5230_v60 = vpop.f32.mrb[41].mxu1 }
0x1439   : > { %v3013_v8 = vpop.f32.mrb[42].mxu1 }
0x143a   : > { %v5231_v13 = vpop.f32.mrb[43].mxu1 }
0x145c   : > { %v4078_v49 = vpop.permute.xlu0 %4077 }
0x14a1   : > { %v3071_v50 = vpop.f32.mrb[44].mxu0 }
0x14a2   : > { %v3072_v20 = vadd.f32 %v3071_v50, %v3010_v57  ;;  %v5240_v4 = vpop.f32.mrb[45].mxu0 }
0x14a3   : > { %v3074_v11 = vpop.f32.mrb[46].mxu0 }
0x14a4   : > { %v3075_v26 = vadd.f32 %v3074_v11, %v3013_v8  ;;  %v5241_v15 = vpop.f32.mrb[47].mxu0 }
0x14a5   : > { %v3178_v27 = vpop.f32.mrb[44].mxu1 }
0x14a6   : > { %v3185_v12 = vadd.f32 %v3178_v27, %v3072_v20  ;;  %v5250_v59 = vpop.f32.mrb[45].mxu1 }
0x14a7   : > { %v3181_v42 = vpop.f32.mrb[46].mxu1 }
0x14a8   : > { %v3199_v24 = vadd.f32 %v3192_v7, %v3185_v12  ;;  %v3186_v25 = vadd.f32 %v3181_v42, %v3075_v26  ;;  %v5251_v22 = vpop.f32.mrb[47].mxu1 }
0x14aa   : > { %v6801_v23 = vadd.f32 %v3199_v24, %v6591_v41  ;;  %v3200_v61 = vadd.f32 %v3197_v51, %v3186_v25  ;;  %v3257_v41 = vld [vmem:[%s7222_s22] sm:$0xf] }
0x14ac   : > { %v6804_v62 = vadd.f32 %v3200_v61, %v6594_v47  ;;  %v3203_v31 = vmax.f32 %v6801_v23, 0.0  ;;  %v6823_v47 = vsel %vm915_vm8, %v3257_v41, 0 }
0x14ad   : > { %5259 = vmatpush3.bf16.msra.mxu1 %v6823_v47 }
0x14ae   : > { %v3204_v58 = vmax.f32 %v6804_v62, 0.0  ;;  %5270 = vmatprep.subr.bf16.mxu1 %v5601_v16 }
0x14b0   : > { %v3206_v10 = vpack.c.bf16 %v3204_v58, %v3203_v31 }
0x14b2   : > { %5253 = vmatpush3.bf16.msra.mxu0 %v3206_v10 }
0x14b3   : > { %5264 = vmatprep.subr.bf16.mxu0 %v5601_v16 }
0x14b5   : > { %5255 = vmatmul.mubr.msk.bf16.vlgmr.msra.gmra.mrb[48].mxu0 %vm3213_vm1, %v3205_v32 }
0x14b6   : > { %5266 = vmatprep.mubr.msk.bf16.mxu0 %vm5612_vm15, %v5601_v16  ;;  %5265 = vmatpush3.bf16.msra.mxu0 %v6823_v47 }
0x14b7   : > { %5276 = vmatprep.subr.bf16.mxu0 %v5601_v16 }
0x1588   : > { %v3251_v35 = vpop.f32.mrb[48].mxu0 }
0x1589   : > { %v3252_v6 = vadd.f32 %v3251_v35, %v3211_v5  ;;  %v5256_v36 = vpop.f32.mrb[49].mxu0 }
0x158a   : > { %v3254_v37 = vpop.f32.mrb[50].mxu0 }
0x158b   : > { %v3258_v38 = vpack.c.bf16 %v3252_v6, %v3252_v6  ;;  %v6831_v46 = vmul.f32 0.75, %v3252_v6  ;;  %v5257_v52 = vpop.f32.mrb[51].mxu0  ;;  %v6846_v43 = vmul.f32 0.25, %v3252_v6 }
0x158d   : > { %3358 = vrot.lane.b32.xlu1 %v6831_v46, %s7296_s8  ;;  %5261 = vmatmul.mubr.msk.bf16.vlgmr.msra.gmra.mrb[48].mxu1 %vm3259_vm5, %v3258_v38 }
0x158e   : > { %5271 = vmatpush3.bf16.msra.mxu1 %v6823_v47  ;;  %5272 = vmatprep.mubr.msk.bf16.mxu1 %vm5612_vm15, %v5601_v16 }
0x158f   : > { %5282 = vmatprep.subr.bf16.mxu1 %v5601_v16 }
0x1591   : > { %4079 = vrot.lane.b32.xlu1 %v6839_v63, %s7305_s0 }
0x1595   : > { %4244 = vrot.lane.b32.xlu1 %v6796_v40, %s7306_s4 }
0x15ff   : > { %v3359_v0 = vpop.permute.xlu1 %3358 }
0x1600   : > { %v3361_v39 = vadd.f32 %v3359_v0, %v6846_v43 }
0x1602   : > { %v3362_v48 = vpack.c.bf16 %v3361_v39, %v3361_v39 }
0x1603   : > { %v4080_v55 = vpop.permute.xlu1 %4079 }
0x1604   : > { %3543 = vrot.lane.b32.xlu1 %v3362_v48, %s7306_s4  ;;  %3453 = vrot.lane.b32.xlu0 %v3362_v48, %s7296_s8  ;;  %v6870_v19 = vsel %vm861_vm0, %v4078_v49, %v4080_v55  ;;  %v6878_v21 = vsel %vm861_vm0, %v4080_v55, %v4078_v49  ;;  %vm4053_vm0 = vcmask 261120  }
0x1605   : > { %5273 = vmatmul.mubr.msk.bf16.vlgmr.msra.gmra.mrb[52].mxu1 %vm3259_vm5, %v3362_v48 }
0x1606   : > { %5283 = vmatpush3.bf16.msra.mxu1 %v6823_v47  ;;  %5284 = vmatprep.mubr.msk.bf16.mxu1 %vm5612_vm15, %v5601_v16 }
0x1607   : > { %5294 = vmatprep.subr.bf16.mxu1 %v5601_v16  ;;  %v4245_v60 = vpop.permute.xlu1 %4244 }
0x1608   : > { %3723 = vrot.lane.b32.xlu1 %v3362_v48, %s5613_s28  ;;  %4246 = vrot.lane.b32.xlu0 %v6839_v63, %s7306_s4 }
0x160c   : > { %4107 = vrot.lane.b32.xlu1 %v6796_v40, %s7307_s27  ;;  %3633 = vrot.lane.b32.xlu0 %v3362_v48, %s5614_s9 }
0x1610   : > { %4115 = vrot.lane.b32.xlu1 %v6796_v40, %s7308_s5  ;;  %3813 = vrot.lane.b32.xlu0 %v3362_v48, %s5615_s3 }
0x1614   : > { %3903 = vrot.lane.b32.xlu1 %v3362_v48, %s5616_s2  ;;  %4109 = vrot.lane.b32.xlu0 %v6839_v63, %s7307_s27 }
0x1618   : > { %4117 = vrot.lane.b32.xlu0 %v6839_v63, %s7308_s5  ;;  %4085 = vrot.lane.b32.xlu1 %v6870_v19, %s7307_s27 }
0x161c   : > { %4083 = vrot.lane.b32.xlu0 %v6878_v21, %s7307_s27  ;;  %4095 = vrot.lane.b32.xlu1 %v6870_v19, %s7308_s5 }
0x1620   : > { %4093 = vrot.lane.b32.xlu0 %v6878_v21, %s7308_s5 }
0x1660   : > { %v6886_v51 = vpop.f32.mrb[48].mxu1 }
0x1661   : > { %v5262_v28 = vpop.f32.mrb[49].mxu1 }
0x1662   : > { %v3303_v34 = vpop.f32.mrb[50].mxu1 }
0x1663   : > { %v5263_v56 = vpop.f32.mrb[51].mxu1 }
0x1676   : > { %v3454_v57 = vpop.permute.xlu0 %3453  ;;  %v3544_v13 = vpop.permute.xlu1 %3543 }
0x1677   : > { %5285 = vmatmul.mubr.msk.bf16.vlgmr.msra.gmra.mrb[56].mxu1 %vm3259_vm5, %v3454_v57  ;;  %v5582_v57 = vld [vmem:[%s7220_s20 + $0x8] sm:$0xff]  }
0x1678   : > { %5295 = vmatpush3.bf16.msra.mxu1 %v6823_v47  ;;  %5296 = vmatprep.mubr.msk.bf16.mxu1 %vm5612_vm15, %v5601_v16 }
0x1679   : > { %5306 = vmatprep.subr.bf16.mxu1 %v5601_v16 }
0x167a   : > { %v4247_v8 = vpop.permute.xlu0 %4246  ;;  %v3724_v11 = vpop.permute.xlu1 %3723 }
0x167b   : > { %v6895_v50 = vsel %vm1017_vm4, %v4245_v60, %v4247_v8  ;;  %v6899_v20 = vsel %vm1017_vm4, %v4247_v8, %v4245_v60  ;;  %v4091_v60 = vmul.f32 %v6878_v21, %v5896_v45  ;;  %vm4056_vm4 = vcmask 523264  }
0x167c   : > { %4252 = vrot.lane.b32.xlu1 %v6899_v20, %s7307_s27  ;;  %4250 = vrot.lane.b32.xlu0 %v6895_v50, %s7307_s27 }
0x167e   : > { %v3634_v4 = vpop.permute.xlu0 %3633  ;;  %v4108_v15 = vpop.permute.xlu1 %4107 }
0x167f   : > { %5297 = vmatmul.mubr.msk.bf16.vlgmr.msra.gmra.mrb[60].mxu1 %vm3259_vm5, %v3544_v13 }
0x1680   : > { %4262 = vrot.lane.b32.xlu1 %v6899_v20, %s7308_s5  ;;  %4260 = vrot.lane.b32.xlu0 %v6895_v50, %s7308_s5  ;;  %s5618_s5 = smov 48  }
0x1681   : > { %5307 = vmatpush3.bf16.msra.mxu1 %v6823_v47  ;;  %5308 = vmatprep.mubr.msk.bf16.mxu1 %vm5612_vm15, %v5601_v16 }
0x1682   : > { %5318 = vmatprep.subr.bf16.mxu1 %v5601_v16  ;;  %v3814_v26 = vpop.permute.xlu0 %3813  ;;  %v4116_v12 = vpop.permute.xlu1 %4115 }
0x1684   : > { %3309 = vrot.lane.b32.xlu0 %v6846_v43, %s7296_s8 }
0x1686   : > { %v4110_v27 = vpop.permute.xlu0 %4109  ;;  %v3904_v24 = vpop.permute.xlu1 %3903 }
0x1687   : > { %5309 = vmatmul.mubr.msk.bf16.vlgmr.msra.gmra.mrb[64].mxu1 %vm3259_vm5, %v3634_v4  ;;  %v4111_v59 = vsel %vm868_vm3, %v4108_v15, %v4110_v27  ;;  %v4112_v25 = vsel %vm868_vm3, %v4110_v27, %v4108_v15 }
0x1688   : > { %5319 = vmatpush3.bf16.msra.mxu1 %v6823_v47  ;;  %5320 = vmatprep.mubr.msk.bf16.mxu1 %vm5612_vm15, %v5601_v16  ;;  %v4114_v42 = vmul.f32 %v4111_v59, %v5819_v17  ;;  %v4113_v33 = vmul.f32 %v4112_v25, %v5824_v18 }
0x1689   : > { %5330 = vmatprep.subr.bf16.mxu1 %v5601_v16 }
0x168a   : > { %v4118_v7 = vpop.permute.xlu0 %4117  ;;  %v4124_v61 = vpack.c.bf16 %v6839_v63, %v4114_v42  ;;  %v4086_v41 = vpop.permute.xlu1 %4085  ;;  %v4123_v37 = vpack.c.bf16 %v6796_v40, %v4113_v33 }
0x168b   : > { %v4119_v10 = vsel %vm879_vm7, %v4116_v12, %v4118_v7  ;;  %v4120_v32 = vsel %vm879_vm7, %v4118_v7, %v4116_v12  ;;  %v4259_v12 = vmul.f32 %v6899_v20, %v5912_v53 }
0x168c   : > { %v4121_v5 = vmul.f32 %v4119_v10, %v5858_v30  ;;  %v4122_v35 = vmul.f32 %v4120_v32, %v5853_v29 }
0x168e   : > { %v4084_v22 = vpop.permute.xlu0 %4083  ;;  %v4125_v1 = vpack.c.bf16 %v4121_v5, %v4121_v5  ;;  %v4126_v38 = vpack.c.bf16 %v4122_v35, %v4122_v35  ;;  %v4096_v39 = vpop.permute.xlu1 %4095 }
0x168f   : > { %5321 = vmatmul.mubr.msk.bf16.vlgmr.msra.gmra.mrb[68].mxu1 %vm3259_vm5, %v3724_v11  ;;  %v4087_v6 = vsel %vm868_vm3, %v4084_v22, %v4086_v41  ;;  %v4088_v52 = vsel %vm868_vm3, %v4086_v41, %v4084_v22 }
0x1690   : > { %5331 = vmatpush3.bf16.msra.mxu1 %v6823_v47  ;;  %5332 = vmatprep.mubr.msk.bf16.mxu1 %vm5612_vm15, %v5601_v16  ;;  %v4090_v0 = vmul.f32 %v4087_v6, %v5819_v17  ;;  %v4089_v49 = vmul.f32 %v4088_v52, %v5891_v44  ;;  %v4139_v34 = vsel %vm915_vm8, %v4125_v1, 0 }
0x1691   : > { %5342 = vmatprep.subr.bf16.mxu1 %v5601_v16 }
0x1692   : > { %v4094_v36 = vpop.permute.xlu0 %4093  ;;  %v4102_v56 = vpack.c.bf16 %v6870_v19, %v4090_v0  ;;  %v4101_v8 = vpack.c.bf16 %v4091_v60, %v4089_v49 }
0x1693   : > { %v4097_v48 = vsel %vm879_vm7, %v4094_v36, %v4096_v39  ;;  %v4098_v55 = vsel %vm879_vm7, %v4096_v39, %v4094_v36  ;;  %v7021_v36 = vld [vmem:[%s7223_s23] sm:$0xff]  }
0x1694   : > { %v4099_v28 = vmul.f32 %v4097_v48, %v5930_v2  ;;  %v4100_v17 = vmul.f32 %v4098_v55, %v5853_v29  ;;  %v5583_v2 = vld [vmem:[%s7220_s20] sm:$0xff]  }
0x1696   : > { %v4103_v13 = vpack.c.bf16 %v4099_v28, %v4099_v28  ;;  %v4104_v44 = vpack.c.bf16 %v4100_v17, %v4100_v17 }
0x1697   : > { %5333 = vmatmul.mubr.msk.bf16.vlgmr.msra.gmra.mrb[72].mxu1 %vm3259_vm5, %v3814_v26 }
0x1698   : > { %5343 = vmatpush3.bf16.msra.mxu1 %v6823_v47  ;;  %5344 = vmatprep.mubr.msk.bf16.mxu1 %vm5612_vm15, %v5601_v16  ;;  %v4196_v29 = vsel %vm915_vm8, %v4103_v13, 0 }
0x1699   : > { %4144 = vmatprep.subr.bf16.mxu1 %v4124_v61 }
0x169f   : > { %5345 = vmatmul.mubr.msk.bf16.vlgmr.msra.gmra.mrb[76].mxu1 %vm3259_vm5, %v3904_v24 }
0x16a0   : > { %4145 = vmatpush1.bf16.msra.mxu1 %v4123_v37  ;;  %4176 = vmatprep.mubr.bf16.mxu1 %v5600_v9 }
0x16a1   : > { %5009 = vmatprep.subr.msk.bf16.mxu1 %vm915_vm8, %v4126_v38 }
0x16a4   : > { %4147 = vmatpush1.bf16.msra.mxu1 %v4139_v34 }
0x16a5   : > { %4201 = vmatprep.subr.bf16.mxu1 %v4102_v56 }
0x16a7   : > { %5010 = vmatmul.mubr.msk.bf16.vlgmr.msra.gmra.mrb[80].mxu1 %vm911_vm9, %v5582_v57 }
0x16a8   : > { %4202 = vmatpush1.bf16.msra.mxu1 %v4101_v8  ;;  %4233 = vmatprep.mubr.bf16.mxu1 %v5600_v9 }
0x16a9   : > { %5012 = vmatprep.subr.msk.bf16.mxu1 %vm915_vm8, %v4104_v44 }
0x16ac   : > { %4204 = vmatpush1.bf16.msra.mxu1 %v4196_v29 }
0x16b3   : > { %5013 = vmatmul.mubr.msk.bf16.vlgmr.msra.gmra.mrb[80].mxu1 %vm911_vm9, %v5583_v2 }
0x16b4   : > { %4321 = vmatprep.mubr.bf16.mxu1 %v5600_v9 }
0x16d8   : > { %v6975_v45 = vpop.f32.mrb[52].mxu1 }
0x16d9   : > { %v5274_v19 = vpop.f32.mrb[53].mxu1 }
0x16da   : > { %v3403_v21 = vpop.f32.mrb[54].mxu1 }
0x16db   : > { %v5275_v4 = vpop.f32.mrb[55].mxu1 }
0x16ee   : > { %v4251_v11 = vpop.permute.xlu0 %4250  ;;  %v4253_v26 = vpop.permute.xlu1 %4252 }
0x16ef   : > { %v4254_v15 = vsel %vm868_vm3, %v4251_v11, %v4253_v26  ;;  %v4255_v27 = vsel %vm868_vm3, %v4253_v26, %v4251_v11  ;;  %vm4776_vm3 = vcmask 326656  }
0x16f0   : > { %v4256_v59 = vmul.f32 %v4255_v27, %v5824_v18  ;;  %v4257_v9 = vmul.f32 %v4254_v15, %v5915_v54 }
0x16f2   : > { %v4268_v7 = vpack.c.bf16 %v6895_v50, %v4256_v59  ;;  %v4261_v42 = vpop.permute.xlu0 %4260  ;;  %v4263_v24 = vpop.permute.xlu1 %4262  ;;  %v4269_v25 = vpack.c.bf16 %v4259_v12, %v4257_v9 }
0x16f3   : > { %v4264_v22 = vsel %vm879_vm7, %v4261_v42, %v4263_v24  ;;  %v4265_v61 = vsel %vm879_vm7, %v4263_v24, %v4261_v42  ;;  %vm4781_vm7 = vcmask 457728  }
0x16f4   : > { %v4266_v10 = vmul.f32 %v4264_v22, %v5858_v30  ;;  %v4267_v32 = vmul.f32 %v4265_v61, %v5944_v14  ;;  %4289 = vmatprep.subr.bf16.mxu1 %v4269_v25  ;;  %v3948_v30 = vadd.f32 %v6846_v43, %v6831_v46  ;;  %v4784_v22 = vld [vmem:[%s7221_s21] sm:$0xff]  ;;  %v4785_v61 = vld [vmem:[%s7221_s21 + $0x8] sm:$0xff] }
0x16f5   : > { %4290 = vmatpush1.bf16.msra.mxu1 %v4268_v7 }
0x16f6   : > { %v4270_v18 = vpack.c.bf16 %v4266_v10, %v4266_v10  ;;  %v4271_v53 = vpack.c.bf16 %v4267_v32, %v4267_v32  ;;  %v3310_v54 = vpop.permute.xlu0 %3309  ;;  %v3949_v14 = vpack.c.bf16 %v3948_v30, %v3948_v30 }
0x16f7   : > { %v3312_v50 = vadd.f32 %v3310_v54, %v6831_v46 }
0x16f8   : > { %5017 = vmatprep.subr.msk.bf16.mxu1 %vm915_vm8, %v4271_v53  ;;  %v4284_v20 = vsel %vm915_vm8, %v4270_v18, 0  ;;  %vm4058_vm8 = vcmask 654336  }
0x16f9   : > { %v3313_v41 = vpack.c.bf16 %v3312_v50, %v3312_v50  ;;  %4292 = vmatpush1.bf16.msra.mxu1 %v4284_v20 }
0x16fa   : > { %5372 = vmatprep.subr.bf16.mxu1 %v5601_v16 }
0x16fb   : > { %3498 = vrot.lane.b32.xlu0 %v3313_v41, %s7306_s4  ;;  %3407 = vrot.lane.b32.xlu1 %v3313_v41, %s7296_s8  ;;  %s797_s8 = scalar_lea.vmem %s7225_s25, %s5759_s6 }
0x16fc   : > { %5267 = vmatmul.mubr.msk.bf16.vlgmr.msra.gmra.mrb[52].mxu0 %vm3259_vm5, %v3313_v41  ;;  %5018 = vmatmul.mubr.msk.bf16.vlgmr.msra.gmra.mrb[80].mxu1 %vm911_vm9, %v5584_v3 }
0x16fd   : > { %5277 = vmatpush3.bf16.msra.mxu0 %v6823_v47  ;;  %5278 = vmatprep.mubr.msk.bf16.mxu0 %vm5612_vm15, %v5601_v16 }
0x16fe   : > { %5288 = vmatprep.subr.bf16.mxu0 %v5601_v16  ;;  %5374 = vmatprep.mubr.msk.bf16.mxu1 %vm5612_vm15, %v5601_v16 }
0x16ff   : > { %3678 = vrot.lane.b32.xlu0 %v3313_v41, %s5613_s28  ;;  %3588 = vrot.lane.b32.xlu1 %v3313_v41, %s5614_s9  ;;  %s792_s9 = scalar_lea.vmem %s7224_s24, %s5759_s6 }
0x1700   : > { %5373 = vmatpush3.bf16.msra.mxu1 %v7021_v36 }
0x1701   : > { %5384 = vmatprep.subr.bf16.mxu1 %v5601_v16 }
0x1703   : > { %3858 = vrot.lane.b32.xlu0 %v3313_v41, %s5616_s2  ;;  %3768 = vrot.lane.b32.xlu1 %v3313_v41, %s5615_s3 }
0x1707   : > { %3951 = vrot.lane.b32.xlu1 %v3949_v14, %s7301_s26  ;;  %s5617_s26 = smov 32  }
0x174a   : > { %v7016_v33 = vpop.f32.mrb[56].mxu1 }
0x174b   : > { %v5286_v5 = vpop.f32.mrb[57].mxu1 }
0x174c   : > { %v3495_v35 = vpop.f32.mrb[58].mxu1 }
0x174d   : > { %v5287_v6 = vpop.f32.mrb[59].mxu1 }
0x1752   : > { %v7023_v37 = vpop.f32.mrb[60].mxu1 }
0x1753   : > { %v5298_v46 = vpop.f32.mrb[61].mxu1 }
0x1754   : > { %v3585_v43 = vpop.f32.mrb[62].mxu1 }
0x1755   : > { %v5299_v1 = vpop.f32.mrb[63].mxu1 }
0x175a   : > { %v7027_v38 = vpop.f32.mrb[64].mxu1 }
0x175b   : > { %v5310_v52 = vpop.f32.mrb[65].mxu1 }
0x175c   : > { %v3675_v0 = vpop.f32.mrb[66].mxu1 }
0x175d   : > { %v5311_v39 = vpop.f32.mrb[67].mxu1 }
0x1762   : > { %v7029_v48 = vpop.f32.mrb[68].mxu1 }
0x1763   : > { %v5322_v55 = vpop.f32.mrb[69].mxu1 }
0x1764   : > { %v3765_v49 = vpop.f32.mrb[70].mxu1 }
0x1765   : > { %v5323_v28 = vpop.f32.mrb[71].mxu1 }
0x176a   : > { %v7031_v17 = vpop.f32.mrb[72].mxu1 }
0x176b   : > { %v5334_v34 = vpop.f32.mrb[73].mxu1 }
0x176c   : > { %v3855_v56 = vpop.f32.mrb[74].mxu1 }
0x176d   : > { %v3408_v57 = vpop.permute.xlu1 %3407  ;;  %v5335_v60 = vpop.f32.mrb[75].mxu1 }
0x176e   : > { %5279 = vmatmul.mubr.msk.bf16.vlgmr.msra.gmra.mrb[56].mxu0 %vm3259_vm5, %v3408_v57  ;;  %v3499_v29 = vpop.permute.xlu0 %3498 }
0x176f   : > { %5289 = vmatpush3.bf16.msra.mxu0 %v6823_v47  ;;  %5290 = vmatprep.mubr.msk.bf16.mxu0 %vm5612_vm15, %v5601_v16 }
0x1770   : > { %5300 = vmatprep.subr.bf16.mxu0 %v5601_v16 }
0x1771   : > { %v3589_v19 = vpop.permute.xlu1 %3588 }
0x1772   : > { %v7038_v8 = vpop.f32.mrb[76].mxu1  ;;  %v3679_v21 = vpop.permute.xlu0 %3678 }
0x1773   : > { %v5346_v13 = vpop.f32.mrb[77].mxu1 }
0x1774   : > { %v3945_v44 = vpop.f32.mrb[78].mxu1 }
0x1775   : > { %v5347_v2 = vpop.f32.mrb[79].mxu1  ;;  %v3769_v4 = vpop.permute.xlu1 %3768 }
0x1776   : > { %5291 = vmatmul.mubr.msk.bf16.vlgmr.msra.gmra.mrb[60].mxu0 %vm3259_vm5, %v3499_v29  ;;  %v3859_v11 = vpop.permute.xlu0 %3858 }
0x1777   : > { %5301 = vmatpush3.bf16.msra.mxu0 %v6823_v47  ;;  %5302 = vmatprep.mubr.msk.bf16.mxu0 %vm5612_vm15, %v5601_v16 }
0x1778   : > { %5312 = vmatprep.subr.bf16.mxu0 %v5601_v16 }
0x1779   : > { %v3952_v26 = vpop.permute.xlu1 %3951 }
0x177e   : > { %5303 = vmatmul.mubr.msk.bf16.vlgmr.msra.gmra.mrb[64].mxu0 %vm3259_vm5, %v3589_v19 }
0x177f   : > { %5313 = vmatpush3.bf16.msra.mxu0 %v6823_v47  ;;  %5314 = vmatprep.mubr.msk.bf16.mxu0 %vm5612_vm15, %v5601_v16 }
0x1780   : > { %5324 = vmatprep.subr.bf16.mxu0 %v5601_v16 }
0x1786   : > { %5315 = vmatmul.mubr.msk.bf16.vlgmr.msra.gmra.mrb[68].mxu0 %vm3259_vm5, %v3679_v21 }
0x1787   : > { %5325 = vmatpush3.bf16.msra.mxu0 %v6823_v47  ;;  %5326 = vmatprep.mubr.msk.bf16.mxu0 %vm5612_vm15, %v5601_v16 }
0x1788   : > { %5336 = vmatprep.subr.bf16.mxu0 %v5601_v16 }
0x178e   : > { %5327 = vmatmul.mubr.msk.bf16.vlgmr.msra.gmra.mrb[72].mxu0 %vm3259_vm5, %v3769_v4 }
0x178f   : > { %5337 = vmatpush3.bf16.msra.mxu0 %v6823_v47  ;;  %5338 = vmatprep.mubr.msk.bf16.mxu0 %vm5612_vm15, %v5601_v16 }
0x1790   : > { %5348 = vmatprep.subr.bf16.mxu0 %v5601_v16 }
0x1796   : > { %5339 = vmatmul.mubr.msk.bf16.vlgmr.msra.gmra.mrb[76].mxu0 %vm3259_vm5, %v3859_v11 }
0x1797   : > { %5349 = vmatpush3.bf16.msra.mxu0 %v6823_v47  ;;  %5350 = vmatprep.mubr.msk.bf16.mxu0 %vm5612_vm15, %v5601_v16 }
0x1798   : > { %5354 = vmatprep.subr.bf16.mxu0 %v5601_v16 }
0x179e   : > { %5351 = vmatmul.mubr.msk.bf16.vlgmr.msra.gmra.mrb[80].mxu0 %vm3259_vm5, %v3952_v26 }
0x179f   : > { %5355 = vmatpush3.bf16.msra.mxu0 %v7021_v36  ;;  %5356 = vmatprep.mubr.msk.bf16.mxu0 %vm5612_vm15, %v5601_v16 }
0x17a0   : > { %5360 = vmatprep.subr.bf16.mxu0 %v5601_v16 }
0x17cf   : > { %v3351_v15 = vpop.f32.mrb[52].mxu0  ;;  %v4323_v27 = vpop.f32.mrb[80].mxu1 }
0x17d0   : > { %v5268_v12 = vpop.f32.mrb[53].mxu0  ;;  %v4325_v59 = vpop.f32.mrb[81].mxu1 }
0x17d1   : > { %v3354_v47 = vpop.f32.mrb[54].mxu0  ;;  %v4327_v9 = vpop.f32.mrb[82].mxu1 }
0x17d2   : > { %v5269_v7 = vpop.f32.mrb[55].mxu0  ;;  %v4338_v42 = vpack.c.bf16 %v4327_v9, %v4323_v27  ;;  %v4329_v24 = vpop.f32.mrb[83].mxu1 }
0x17d3   : > { %v4528_v25 = vpack.c.bf16 %v4329_v24, %v4325_v59 }
0x17d4   : > { %4436 = vrot.lane.b32.xlu1 %v4338_v42, %s7300_s7  ;;  %4390 = vrot.lane.b32.xlu0 %v4338_v42, %s5613_s28 }
0x17d5   : > { %5357 = vmatmul.mubr.msk.bf16.vlgmr.msra.gmra.mrb[84].mxu0 %vm3213_vm1, %v4338_v42 }
0x17d6   : > { %5361 = vmatpush3.bf16.msra.mxu0 %v7021_v36  ;;  %5362 = vmatprep.mubr.msk.bf16.mxu0 %vm5612_vm15, %v5601_v16 }
0x17d7   : > { %5366 = vmatprep.subr.bf16.mxu0 %v5601_v16 }
0x17d8   : > { %4482 = vrot.lane.b32.xlu0 %v4338_v42, %s5617_s26  ;;  %4574 = vrot.lane.b32.xlu1 %v4528_v25, %s5613_s28 }
0x17dc   : > { %4620 = vrot.lane.b32.xlu0 %v4528_v25, %s7300_s7  ;;  %4666 = vrot.lane.b32.xlu1 %v4528_v25, %s5617_s26 }
0x17e0   : > { %4788 = vperm.xlu0 %5443, %v4784_v22   ;;  %4793 = vperm.xlu1 %5444, %v4785_v61  }
0x17e4   : > { %3997 = vrot.lane.b32.xlu0 %v3351_v15, %s7305_s0 }
0x17e8   : > { %4001 = vrot.lane.b32.xlu0 %v6975_v45, %s5617_s26 }
0x1841   : > { %v3446_v10 = vpop.f32.mrb[56].mxu0 }
0x1842   : > { %v5280_v32 = vpop.f32.mrb[57].mxu0  ;;  %4005 = vrot.lane.b32.xlu0 %v3446_v10, %s5618_s5 }
0x1843   : > { %v3449_v18 = vpop.f32.mrb[58].mxu0 }
0x1844   : > { %v5281_v53 = vpop.f32.mrb[59].mxu0 }
0x1846   : > { %v4391_v54 = vpop.permute.xlu0 %4390  ;;  %4009 = vrot.lane.b32.xlu0 %v7016_v33, %s7300_s7  ;;  %v4437_v41 = vpop.permute.xlu1 %4436 }
0x1847   : > { %5363 = vmatmul.mubr.msk.bf16.vlgmr.msra.gmra.mrb[88].mxu0 %vm3213_vm1, %v4391_v54 }
0x1848   : > { %5367 = vmatpush3.bf16.msra.mxu0 %v7021_v36  ;;  %5368 = vmatprep.mubr.msk.bf16.mxu0 %vm5612_vm15, %v5601_v16 }
0x1849   : > { %v3537_v50 = vpop.f32.mrb[60].mxu0  ;;  %5378 = vmatprep.subr.bf16.mxu0 %v5601_v16 }
0x184a   : > { %v5292_v45 = vpop.f32.mrb[61].mxu0  ;;  %v4483_v20 = vpop.permute.xlu0 %4482  ;;  %4013 = vrot.lane.b32.xlu0 %v3537_v50, %s5616_s2 }
0x184b   : > { %v3540_v3 = vpop.f32.mrb[62].mxu0  ;;  %5375 = vmatmul.mubr.msk.bf16.vlgmr.msra.gmra.mrb[84].mxu1 %vm3213_vm1, %v4483_v20  ;;  %v4575_v33 = vpop.permute.xlu1 %4574 }
0x184c   : > { %v5293_v30 = vpop.f32.mrb[63].mxu0  ;;  %5385 = vmatpush3.bf16.msra.mxu1 %v7021_v36  ;;  %5386 = vmatprep.mubr.msk.bf16.mxu1 %vm5612_vm15, %v5601_v16 }
0x184d   : > { %5396 = vmatprep.subr.bf16.mxu1 %v5601_v16 }
0x184e   : > { %4017 = vrot.lane.b32.xlu0 %v7023_v37, %s5613_s28  ;;  %v4621_v0 = vpop.permute.xlu0 %4620 }
0x184f   : > { %5369 = vmatmul.mubr.msk.bf16.vlgmr.msra.gmra.mrb[92].mxu0 %vm3213_vm1, %v4437_v41  ;;  %v4667_v46 = vpop.permute.xlu1 %4666 }
0x1850   : > { %5379 = vmatpush3.bf16.msra.mxu0 %v7021_v36  ;;  %5380 = vmatprep.mubr.msk.bf16.mxu0 %vm5612_vm15, %v5601_v16 }
0x1851   : > { %v7110_v14 = vpop.f32.mrb[64].mxu0  ;;  %5390 = vmatprep.subr.bf16.mxu0 %v5601_v16 }
0x1852   : > { %v5304_v5 = vpop.f32.mrb[65].mxu0 }
0x1853   : > { %v3630_v35 = vpop.f32.mrb[66].mxu0  ;;  %5387 = vmatmul.mubr.msk.bf16.vlgmr.msra.gmra.mrb[88].mxu1 %vm3213_vm1, %v4575_v33 }
0x1854   : > { %v5305_v6 = vpop.f32.mrb[67].mxu0  ;;  %5397 = vmatpush3.bf16.msra.mxu1 %v7021_v36  ;;  %5398 = vmatprep.mubr.msk.bf16.mxu1 %vm5612_vm15, %v5601_v16 }
0x1857   : > { %5381 = vmatmul.mubr.msk.bf16.vlgmr.msra.gmra.mrb[96].mxu0 %vm3213_vm1, %v4528_v25 }
0x1858   : > { %5391 = vmatpush3.bf16.msra.mxu0 %v7021_v36  ;;  %5392 = vmatprep.mubr.msk.bf16.mxu0 %vm5612_vm15, %v5601_v16 }
0x1859   : > { %v3717_v37 = vpop.f32.mrb[68].mxu0 }
0x185a   : > { %v5316_v43 = vpop.f32.mrb[69].mxu0  ;;  %4025 = vrot.lane.b32.xlu1 %v3717_v37, %s7305_s0 }
0x185b   : > { %v3720_v1 = vpop.f32.mrb[70].mxu0  ;;  %5399 = vmatmul.mubr.msk.bf16.vlgmr.msra.gmra.mrb[92].mxu1 %vm3213_vm1, %v4667_v46 }
0x185c   : > { %v5317_v52 = vpop.f32.mrb[71].mxu0 }
0x185e   : > { %4029 = vrot.lane.b32.xlu1 %v7029_v48, %s5617_s26 }
0x185f   : > { %5393 = vmatmul.mubr.msk.bf16.vlgmr.msra.gmra.mrb[100].mxu0 %vm3213_vm1, %v4621_v0  ;;  %v4789_v30 = vpop.permute.xlu0 %4788  ;;  %v4794_v33 = vpop.permute.xlu1 %4793 }
0x1861   : > { %v3807_v39 = vpop.f32.mrb[72].mxu0 }
0x1862   : > { %v5328_v36 = vpop.f32.mrb[73].mxu0  ;;  %4033 = vrot.lane.b32.xlu1 %v3807_v39, %s5618_s5 }
0x1863   : > { %v3810_v16 = vpop.f32.mrb[74].mxu0  ;;  %v3998_v5 = vpop.permute.xlu0 %3997 }
0x1864   : > { %v5329_v55 = vpop.f32.mrb[75].mxu0 }
0x1866   : > { %4037 = vrot.lane.b32.xlu1 %v7031_v17, %s7300_s7  ;;  %s7309_s7 = smov 8  }
0x1867   : > { %v4002_v6 = vpop.permute.xlu0 %4001 }
0x1869   : > { %v3897_v49 = vpop.f32.mrb[76].mxu0 }
0x186a   : > { %v5340_v28 = vpop.f32.mrb[77].mxu0  ;;  %4041 = vrot.lane.b32.xlu1 %v3897_v49, %s5616_s2  ;;  %s5620_s2 = smov 40  }
0x186b   : > { %v3900_v34 = vpop.f32.mrb[78].mxu0 }
0x186c   : > { %v5341_v56 = vpop.f32.mrb[79].mxu0 }
0x186e   : > { %4045 = vrot.lane.b32.xlu1 %v7038_v8, %s5613_s28  ;;  %s5619_s28 = smov 24  }
0x1871   : > { %v3990_v48 = vpop.f32.mrb[80].mxu0 }
0x1872   : > { %v5352_v57 = vpop.f32.mrb[81].mxu0 }
0x1873   : > { %v3993_v60 = vpop.f32.mrb[82].mxu0 }
0x1874   : > { %v5353_v13 = vpop.f32.mrb[83].mxu0 }
0x18a8   : > { %v7132_v44 = vpop.f32.mrb[84].mxu0 }
0x18a9   : > { %v5358_v29 = vpop.f32.mrb[85].mxu0 }
0x18aa   : > { %v7134_v2 = vpop.f32.mrb[86].mxu0 }
0x18ab   : > { %v5359_v19 = vpop.f32.mrb[87].mxu0 }
0x18b4   : > { %v4006_v46 = vpop.permute.xlu0 %4005 }
0x18b8   : > { %v4010_v1 = vpop.permute.xlu0 %4009 }
0x18bc   : > { %v4014_v0 = vpop.permute.xlu0 %4013 }
0x18c0   : > { %v4018_v36 = vpop.permute.xlu0 %4017 }
0x18cc   : > { %v4026_v35 = vpop.permute.xlu1 %4025 }
0x18d0   : > { %v4030_v37 = vpop.permute.xlu1 %4029 }
0x18d4   : > { %v4034_v43 = vpop.permute.xlu1 %4033 }
0x18d8   : > { %v4038_v52 = vpop.permute.xlu1 %4037 }
0x18dc   : > { %v4042_v39 = vpop.permute.xlu1 %4041 }
0x18e0   : > { %v4046_v16 = vpop.permute.xlu1 %4045 }
0x191a   : > { %v4429_v17 = vpop.f32.mrb[88].mxu0 }
0x191b   : > { %v5364_v21 = vpop.f32.mrb[89].mxu0  ;;  %4714 = vrot.lane.b32.xlu0 %v4429_v17, %s7309_s7 }
0x191c   : > { %v4432_v4 = vpop.f32.mrb[90].mxu0 }
0x191d   : > { %v5365_v11 = vpop.f32.mrb[91].mxu0  ;;  %4716 = vrot.lane.b32.xlu1 %v4432_v4, %s7309_s7 }
0x191e   : > { %v4521_v26 = vpop.f32.mrb[84].mxu1 }
0x191f   : > { %4730 = vrot.lane.b32.xlu0 %v4521_v26, %s5619_s28  ;;  %v5376_v8 = vpop.f32.mrb[85].mxu1 }
0x1920   : > { %v4524_v15 = vpop.f32.mrb[86].mxu1  ;;  %v4052_v8 = vsel %vm3213_vm1, %v6886_v51, %v3998_v5  ;;  %v4064_v51 = vsel %vm3213_vm1, %v7027_v38, %v4026_v35 }
0x1921   : > { %4732 = vrot.lane.b32.xlu1 %v4524_v15, %s5619_s28  ;;  %v5377_v27 = vpop.f32.mrb[87].mxu1 }
0x1922   : > { %v4475_v12 = vpop.f32.mrb[92].mxu0  ;;  %v4054_v27 = vsel %vm4053_vm0, %v4052_v8, %v4002_v6 }
0x1923   : > { %v5370_v59 = vpop.f32.mrb[93].mxu0  ;;  %4722 = vrot.lane.b32.xlu0 %v4475_v12, %s7305_s0  ;;  %v4055_v12 = vsel %vm1962_vm2, %v4054_v27, %v4006_v46 }
0x1924   : > { %v4478_v47 = vpop.f32.mrb[94].mxu0 }
0x1925   : > { %v5371_v9 = vpop.f32.mrb[95].mxu0  ;;  %4724 = vrot.lane.b32.xlu1 %v4478_v47, %s7305_s0 }
0x1926   : > { %v4613_v7 = vpop.f32.mrb[88].mxu1  ;;  %v4057_v9 = vsel %vm4056_vm4, %v4055_v12, %v4010_v1 }
0x1927   : > { %4746 = vrot.lane.b32.xlu0 %v4613_v7, %s5620_s2  ;;  %v5388_v42 = vpop.f32.mrb[89].mxu1 }
0x1928   : > { %v4616_v24 = vpop.f32.mrb[90].mxu1  ;;  %v4065_v42 = vsel %vm4053_vm0, %v4064_v51, %v4030_v37 }
0x1929   : > { %4748 = vrot.lane.b32.xlu1 %v4616_v24, %s5620_s2  ;;  %v5389_v25 = vpop.f32.mrb[91].mxu1 }
0x192a   : > { %v4566_v22 = vpop.f32.mrb[96].mxu0 }
0x192b   : > { %v5382_v61 = vpop.f32.mrb[97].mxu0  ;;  %4738 = vrot.lane.b32.xlu0 %v4566_v22, %s5617_s26 }
0x192c   : > { %v4569_v10 = vpop.f32.mrb[98].mxu0  ;;  %v4059_v61 = vsel %vm4058_vm8, %v4057_v9, %v4014_v0 }
0x192d   : > { %v5383_v32 = vpop.f32.mrb[99].mxu0  ;;  %4740 = vrot.lane.b32.xlu1 %v4569_v10, %s5617_s26  ;;  %v4066_v10 = vsel %vm1962_vm2, %v4065_v42, %v4034_v43  ;;  %v4061_v38 = vsel %vm4060_vm6, %v4059_v61, %v4018_v36 }
0x192e   : > { %v4705_v18 = vpop.f32.mrb[92].mxu1 }
0x192f   : > { %4762 = vrot.lane.b32.xlu0 %v4705_v18, %s7310_s10  ;;  %v5400_v53 = vpop.f32.mrb[93].mxu1 }
0x1930   : > { %v4708_v54 = vpop.f32.mrb[94].mxu1  ;;  %v4067_v53 = vsel %vm4056_vm4, %v4066_v10, %v4038_v52 }
0x1931   : > { %4764 = vrot.lane.b32.xlu1 %v4708_v54, %s7310_s10  ;;  %v5401_v50 = vpop.f32.mrb[95].mxu1 }
0x1932   : > { %v4659_v45 = vpop.f32.mrb[100].mxu0 }
0x1933   : > { %v5394_v20 = vpop.f32.mrb[101].mxu0  ;;  %4754 = vrot.lane.b32.xlu0 %v4659_v45, %s5618_s5  ;;  %v4068_v45 = vsel %vm4058_vm8, %v4067_v53, %v4042_v39 }
0x1934   : > { %v4662_v3 = vpop.f32.mrb[102].mxu0 }
0x1935   : > { %v5395_v41 = vpop.f32.mrb[103].mxu0  ;;  %4756 = vrot.lane.b32.xlu1 %v4662_v3, %s5618_s5 }
0x1937   : > { %4021 = vrot.lane.b32.xlu0 %v7110_v14, %s7306_s4 }
0x1939   : > { %4049 = vrot.lane.b32.xlu1 %v3990_v48, %s7306_s4 }
0x198d   : > { %v4715_v55 = vpop.permute.xlu0 %4714 }
0x198e   : > { %v4768_v60 = vsel %vm3259_vm5, %v7132_v44, %v4715_v55 }
0x198f   : > { %v4717_v49 = vpop.permute.xlu1 %4716 }
0x1990   : > { %v4769_v19 = vsel %vm3259_vm5, %v7134_v2, %v4717_v49 }
0x1991   : > { %v4731_v28 = vpop.permute.xlu0 %4730 }
0x1993   : > { %v4733_v14 = vpop.permute.xlu1 %4732 }
0x1995   : > { %v4723_v34 = vpop.permute.xlu0 %4722 }
0x1996   : > { %v4770_v29 = vsel %vm3213_vm1, %v4768_v60, %v4723_v34 }
0x1997   : > { %v4725_v56 = vpop.permute.xlu1 %4724  ;;  %v4772_v4 = vsel %vm911_vm9, %v4770_v29, %v4731_v28 }
0x1998   : > { %v4771_v21 = vsel %vm3213_vm1, %v4769_v19, %v4725_v56 }
0x1999   : > { %v4747_v48 = vpop.permute.xlu0 %4746  ;;  %v4773_v44 = vsel %vm911_vm9, %v4771_v21, %v4733_v14  ;;  %vm4062_vm9 = vcmask 916480  }
0x199b   : > { %v4749_v57 = vpop.permute.xlu1 %4748 }
0x199d   : > { %v4739_v13 = vpop.permute.xlu0 %4738 }
0x199e   : > { %v4774_v26 = vsel %vm4053_vm0, %v4772_v4, %v4739_v13 }
0x199f   : > { %v4741_v17 = vpop.permute.xlu1 %4740  ;;  %v4777_v59 = vsel %vm4776_vm3, %v4774_v26, %v4747_v48 }
0x19a0   : > { %v4775_v2 = vsel %vm4053_vm0, %v4773_v44, %v4741_v17 }
0x19a1   : > { %v4763_v11 = vpop.permute.xlu0 %4762  ;;  %v4778_v25 = vsel %vm4776_vm3, %v4775_v2, %v4749_v57 }
0x19a3   : > { %v4765_v15 = vpop.permute.xlu1 %4764 }
0x19a5   : > { %v4755_v47 = vpop.permute.xlu0 %4754 }
0x19a6   : > { %v4779_v7 = vsel %vm1962_vm2, %v4777_v59, %v4755_v47 }
0x19a7   : > { %v4782_v24 = vsel %vm4781_vm7, %v4779_v7, %v4763_v11  ;;  %v4757_v22 = vpop.permute.xlu1 %4756 }
0x19a8   : > { %v4796_v32 = vadd.f32 %v4789_v30, %v4782_v24  ;;  %v4780_v18 = vsel %vm1962_vm2, %v4778_v25, %v4757_v22  ;;  %v4069_v30 = vsel %vm4060_vm6, %v4068_v45, %v4046_v16 }
0x19a9   : > { %v4783_v54 = vsel %vm4781_vm7, %v4780_v18, %v4765_v15  ;;  %v4022_v50 = vpop.permute.xlu0 %4021 }
0x19aa   : > { %v4798_v20 = vadd.f32 %v4796_v32, %v3203_v31  ;;  %v4797_v3 = vadd.f32 %v4794_v33, %v4783_v54  ;;  %v4063_v41 = vsel %vm4062_vm9, %v4061_v38, %v4022_v50 }
0x19ab   : > { %v4071_v5 = vadd.f32 %v4063_v41, %v6796_v40  ;;  %v4050_v35 = vpop.permute.xlu1 %4049 }
0x19ac   : > { %v4800_v6 = vmax.f32 %v4798_v20, 0.0  ;;  %v4799_v37 = vadd.f32 %v4797_v3, %v3204_v58  ;;  %v4070_v23 = vsel %vm4062_vm9, %v4069_v30, %v4050_v35 }
0x19ad   : > { %v4073_v31 = vmax.f32 %v4071_v5, 0.0  ;;  %v4072_v33 = vadd.f32 %v4070_v23, %v6839_v63 }
0x19ae   : > { %4802 = vst.msk [vmem:[%s797_s8] sm:$0xff] %vm4056_vm4, %v4800_v6  ;;  %v4801_v46 = vmax.f32 %v4799_v37, 0.0 }
0x19af   : > { %4075 = vst [vmem:[%s792_s9] sm:$0xff] %v4073_v31  ;;  %v4074_v43 = vmax.f32 %v4072_v33, 0.0 }
0x19b0   : > { %4803 = vst.msk [vmem:[%s797_s8 + $0x8] sm:$0xff] %vm4056_vm4, %v4801_v46 }
0x19b1   : > { %4076 = vst [vmem:[%s792_s9 + $0x8] sm:$0xff] %v4074_v43 }
0x19b2 PF: > { %s36_s29 = sadd.s32 1, %s5594_s29  }
0x19b3   : > { %p33_p4 = scmp.ge.s32.totalorder %s36_s29, 4  }
0x19b5   :  { %35 = sbr.rel (!%p33_p4) target bundleno = 13 (0xd), region = 179 }

</bundles_post_ra>
